<compile_context>
chip_gen: v5e
topology: v5e:2x2
jax: 0.10.0
libtpu: 0.0.40
codegen_flags: <defaults>
</compile_context>

<pallas_src>
import jax
import jax.numpy as jnp
from jax.experimental import pallas as pl
from jax.experimental.pallas import tpu as pltpu

LN_EPS = 1e-5            # PyTorch nn.LayerNorm default
LANE = 128               # lane-dense output width for the padded classifier
_GELU_C = 0.7978845608028654   # sqrt(2/pi)


def _round_up(x, m):
    return ((x + m - 1) // m) * m


def _layernorm(x, gamma, beta):
    mu = jnp.mean(x, axis=-1, keepdims=True)
    var = jnp.mean(jnp.square(x - mu), axis=-1, keepdims=True)
    return (x - mu) * jax.lax.rsqrt(var + LN_EPS) * gamma + beta


def _gelu_tanh(x):
    # tanh-approximate GELU: transcendental goes to the EUP slot (VALU stays free).
    return 0.5 * x * (1.0 + jnp.tanh(_GELU_C * (x + 0.044715 * x * x * x)))


def dti_kernel(lam_ref,                                     # SMEM: sigmoid(lambda)
               mol_ref, prot_ref, teach_ref,                # activation tiles (bf16)
               mol_g, mol_b, prot_g, prot_b, tch_g, tch_b,  # LayerNorm params (fp32)
               w_mol, w_prot, w_teach,                      # align projections (bf16)
               w1_mol, w1_prot, b1, w2, b2, w3, b3,         # MLP (bf16 W, fp32 b)
               w_cls, b_cls,                                # padded classifier
               out_ref,                                     # (TM, 128) fp32
               h_scratch):                                  # VMEM (TM, 4H) bf16
    lam = lam_ref[0]

    # --- alignment branches: fp32 LayerNorm, bf16 MXU operands, fp32 accum ---
    mol = _layernorm(mol_ref[...].astype(jnp.float32),
                     mol_g[...], mol_b[...]).astype(jnp.bfloat16)
    mol = jnp.dot(mol, w_mol[...], preferred_element_type=jnp.float32)

    prot = _layernorm(prot_ref[...].astype(jnp.float32),
                      prot_g[...], prot_b[...]).astype(jnp.bfloat16)
    prot = jnp.dot(prot, w_prot[...], preferred_element_type=jnp.float32)

    teach = _layernorm(teach_ref[...].astype(jnp.float32),
                       tch_g[...], tch_b[...]).astype(jnp.bfloat16)
    teach = jnp.dot(teach, w_teach[...], preferred_element_type=jnp.float32)

    merged = lam * prot + (1.0 - lam) * teach

    # fc1 on concat([mol, merged], dim=1) == mol @ W1_top + merged @ W1_bot
    h = (jnp.dot(mol.astype(jnp.bfloat16), w1_mol[...],
                 preferred_element_type=jnp.float32)
         + jnp.dot(merged.astype(jnp.bfloat16), w1_prot[...],
                   preferred_element_type=jnp.float32)
         + b1[...])
    # bf16 scratch: bounds the (TM, 4H) live set and halves its VMEM/vst traffic.
    h_scratch[...] = _gelu_tanh(h).astype(jnp.bfloat16)
    # TODO(synk): F.dropout(0.1) omitted (deterministic inference kernel).

    h = _gelu_tanh(jnp.dot(h_scratch[...], w2[...],
                           preferred_element_type=jnp.float32) + b2[...])
    h = _gelu_tanh(jnp.dot(h.astype(jnp.bfloat16), w3[...],
                           preferred_element_type=jnp.float32) + b3[...])

    # Classifier padded to 128 output lanes (column 0 is the real logit) so the
    # output store is lane-dense (no masked vst tail).
    out_ref[...] = (jnp.dot(h.astype(jnp.bfloat16), w_cls[...],
                            preferred_element_type=jnp.float32) + b_cls[...])


def _vmem_limit_bytes(TM, H, mol_dim, prot_dim, teacher_dim, act_buffers=2):
    """Explicit VMEM budget (bytes): single-buffered bf16 weights + pipelined tiles."""
    bf, f32 = 2, 4
    weights = bf * (mol_dim * H + prot_dim * H + teacher_dim * H
                    + 2 * (H * 4 * H)            # split fc1
                    + 4 * H * 2 * H + 2 * H * H + H * LANE)
    ln_bias = f32 * (2 * (mol_dim + prot_dim + teacher_dim)
                     + 4 * H + 2 * H + H + LANE)
    acts = bf * act_buffers * TM * (mol_dim + prot_dim + teacher_dim)
    outs = f32 * 2 * TM * LANE
    scratch = bf * TM * 4 * H
    need = weights + ln_bias + acts + outs + scratch
    # 1.5x slack for compiler internal scratch / alignment; floor 32 MiB; cap
    # at 56 MiB so we never exceed v7x's 64 MiB/TC physical VMEM.
    return int(min(max(need * 3 // 2 + (8 << 20), 32 << 20), 56 << 20))


def dti_forward(params, smiles_onehot, prot_feat_student, prot_feat_teacher,
                *, tile_rows=512):
    """Returns (cls_out [B], lambda_mean scalar) — mirrors DTI.forward."""
    B = smiles_onehot.shape[0]
    H = params["w_mol"].shape[1]
    mol_dim = smiles_onehot.shape[1]
    prot_dim = prot_feat_student.shape[1]
    teach = prot_feat_teacher.reshape(B, -1)                 # .squeeze(1)
    teacher_dim = teach.shape[1]

    lam = jax.nn.sigmoid(params["lambda_"]).astype(jnp.float32)   # (1,)

    # --- adaptive batch tiling: pad rows to a multiple of 8; never a full tile ---
    B8 = _round_up(B, 8)
    max_tm = min(tile_rows, B8)
    if B8 >= 16:                       # v7x: keep >= 2 grid steps so both TCs work
        max_tm = min(max_tm, _round_up(pl.cdiv(B8, 2), 8))
    n_tiles = pl.cdiv(B8, max_tm)
    TM = _round_up(pl.cdiv(B8, n_tiles), 8)
    B_pad = n_tiles * TM
    grid = (n_tiles,)

    def pad_rows(x):
        # bf16 DMA halves the recurring per-tile activation traffic.
        return jnp.pad(x.astype(jnp.bfloat16), ((0, B_pad - B), (0, 0)))

    mol_p = pad_rows(smiles_onehot)
    prot_p = pad_rows(prot_feat_student)
    teach_p = pad_rows(teach)

    bf16 = lambda w: w.astype(jnp.bfloat16)

    # Split fc1 weight for the concat-free formulation.
    w1_top = params["w1"][:H, :]
    w1_bot = params["w1"][H:, :]

    # Pad the 1-wide classifier to 128 lanes (zeros elsewhere).
    w_cls_pad = jnp.zeros((H, LANE), jnp.float32).at[:, 0].set(params["w_cls"][:, 0])
    b_cls_pad = jnp.zeros((1, LANE), jnp.float32).at[:, 0].set(params["b_cls"][:, 0])

    operands = [
        lam,
        mol_p, prot_p, teach_p,
        params["mol_ln_g"], params["mol_ln_b"],
        params["prot_ln_g"], params["prot_ln_b"],
        params["teach_ln_g"], params["teach_ln_b"],
        bf16(params["w_mol"]), bf16(params["w_prot"]), bf16(params["w_teach"]),
        bf16(w1_top), bf16(w1_bot), params["b1"],
        bf16(params["w2"]), params["b2"],
        bf16(params["w3"]), params["b3"],
        bf16(w_cls_pad), b_cls_pad,
    ]

    vmem_limit = _vmem_limit_bytes(TM, H, mol_dim, prot_dim, teacher_dim)

    def build_call(single_buffer_weights):
        smem_spec = pl.BlockSpec(memory_space=pltpu.MemorySpace.SMEM)

        def act_spec(d):                       # batch-tiled activations (bf16)
            return pl.BlockSpec((TM, d), lambda i: (i, 0))

        def resident(shape):                   # constant across grid steps
            if single_buffer_weights:
                return pl.BlockSpec(shape, lambda i: (0,) * len(shape),
                                    pipeline_mode=pl.Buffered(1))
            return pl.BlockSpec(shape, lambda i: (0,) * len(shape))

        in_specs = [
            smem_spec,
            act_spec(mol_dim), act_spec(prot_dim), act_spec(teacher_dim),
            resident((1, mol_dim)), resident((1, mol_dim)),
            resident((1, prot_dim)), resident((1, prot_dim)),
            resident((1, teacher_dim)), resident((1, teacher_dim)),
            resident((mol_dim, H)), resident((prot_dim, H)), resident((teacher_dim, H)),
            resident((H, 4 * H)), resident((H, 4 * H)), resident((1, 4 * H)),
            resident((4 * H, 2 * H)), resident((1, 2 * H)),
            resident((2 * H, H)), resident((1, H)),
            resident((H, LANE)), resident((1, LANE)),
        ]
        out_spec = pl.BlockSpec((TM, LANE), lambda i: (i, 0))

        return pl.pallas_call(
            dti_kernel,
            out_shape=jax.ShapeDtypeStruct((B_pad, LANE), jnp.float32),
            grid=grid,
            in_specs=in_specs,
            out_specs=out_spec,
            scratch_shapes=[pltpu.VMEM((TM, 4 * H), jnp.bfloat16)],
            compiler_params=pltpu.CompilerParams(
                dimension_semantics=("parallel",),   # v7x: shard batch tiles over TCs
                vmem_limit_bytes=vmem_limit,
            ),
        )

    try:
        out = jax.block_until_ready(build_call(True)(*operands))
    except Exception:
        # Fallback if this JAX build rejects pl.Buffered(1) (single-buffering);
        # identical math, default double-buffered resident weights.
        out = jax.block_until_ready(build_call(False)(*operands))

    return out[:B, 0], lam.mean()


def init_params(key, hidden_dim, mol_dim, prot_dim, teacher_dim):
    ks = jax.random.split(key, 16)

    def lin_w(k, din, dout):
        return jax.random.normal(k, (din, dout), jnp.float32) / jnp.sqrt(din)

    def lin_b(k, dout):
        return 0.01 * jax.random.normal(k, (1, dout), jnp.float32)

    return dict(
        lambda_=jax.random.uniform(ks[0], (1,), jnp.float32),     # torch.rand(1)
        mol_ln_g=jnp.ones((1, mol_dim), jnp.float32),
        mol_ln_b=jnp.zeros((1, mol_dim), jnp.float32),
        prot_ln_g=jnp.ones((1, prot_dim), jnp.float32),
        prot_ln_b=jnp.zeros((1, prot_dim), jnp.float32),
        teach_ln_g=jnp.ones((1, teacher_dim), jnp.float32),
        teach_ln_b=jnp.zeros((1, teacher_dim), jnp.float32),
        w_mol=lin_w(ks[1], mol_dim, hidden_dim),
        w_prot=lin_w(ks[2], prot_dim, hidden_dim),
        w_teach=lin_w(ks[3], teacher_dim, hidden_dim),
        w1=lin_w(ks[4], 2 * hidden_dim, 4 * hidden_dim),
        b1=lin_b(ks[5], 4 * hidden_dim),
        w2=lin_w(ks[6], 4 * hidden_dim, 2 * hidden_dim),
        b2=lin_b(ks[7], 2 * hidden_dim),
        w3=lin_w(ks[8], 2 * hidden_dim, hidden_dim),
        b3=lin_b(ks[9], hidden_dim),
        w_cls=lin_w(ks[10], hidden_dim, 1),
        b_cls=lin_b(ks[11], 1),
    )


def _reference(params, mol, prot, teacher):
    """Pure-JAX reference mirroring the kernel's bf16-operand / fp32-accum math."""
    def ln(x, g, b):
        x = x.astype(jnp.bfloat16).astype(jnp.float32)   # matches bf16 activation DMA
        mu = x.mean(-1, keepdims=True)
        var = ((x - mu) ** 2).mean(-1, keepdims=True)
        return (x - mu) * jax.lax.rsqrt(var + LN_EPS) * g + b

    def gelu(x):
        return 0.5 * x * (1.0 + jnp.tanh(_GELU_C * (x + 0.044715 * x * x * x)))

    def mm(x, w):
        return jnp.dot(x.astype(jnp.bfloat16), w.astype(jnp.bfloat16),
                       preferred_element_type=jnp.float32)

    lam = jax.nn.sigmoid(params["lambda_"])
    m = mm(ln(mol, params["mol_ln_g"], params["mol_ln_b"]), params["w_mol"])
    p = mm(ln(prot, params["prot_ln_g"], params["prot_ln_b"]), params["w_prot"])
    t = mm(ln(teacher.reshape(mol.shape[0], -1),
              params["teach_ln_g"], params["teach_ln_b"]), params["w_teach"])
    merged = lam * p + (1 - lam) * t
    x = jnp.concatenate([m, merged], axis=1)
    x = gelu(mm(x, params["w1"]) + params["b1"])
    x = gelu(mm(x, params["w2"]) + params["b2"])
    x = gelu(mm(x, params["w3"]) + params["b3"])
    return (mm(x, params["w_cls"]) + params["b_cls"])[:, 0], lam.mean()


if __name__ == "__main__":
    # Small, module-consistent shapes (hidden/mol/prot/teacher dims scaled down).
    B, HIDDEN, MOL_DIM, PROT_DIM, TEACHER_DIM = 2, 128, 256, 128, 256

    root = jax.random.PRNGKey(0)
    k_par, k_mol, k_prot, k_teach = jax.random.split(root, 4)

    params = init_params(k_par, HIDDEN, MOL_DIM, PROT_DIM, TEACHER_DIM)

    smiles_onehot = jax.random.normal(k_mol, (B, MOL_DIM), jnp.float32)
    # CLS embedding that prot_encoder(**FASTA).last_hidden_state[:, 0] would produce:
    prot_feat_student = jax.random.normal(k_prot, (B, PROT_DIM), jnp.float32)
    prot_feat_teacher = jax.random.normal(k_teach, (B, 1, TEACHER_DIM), jnp.float32)

    cls_out, lam_mean = dti_forward(params, smiles_onehot, prot_feat_student,
                                    prot_feat_teacher)
    jax.block_until_ready((cls_out, lam_mean))

    ref_cls, ref_lam = _reference(params, smiles_onehot, prot_feat_student,
                                  prot_feat_teacher)
    assert cls_out.shape == (B,)
    assert jnp.allclose(cls_out, ref_cls, atol=2e-3, rtol=2e-3), (cls_out, ref_cls)
    assert jnp.allclose(lam_mean, ref_lam, atol=1e-6)

    print("KERNEL_OK")
</pallas_src>

<mosaic_0001>
module attributes {stable_mosaic.version = 11 : i64} {
  func.func @dti_kernel(%arg0: i32, %arg1: memref<1xf32, #tpu.memory_space<smem>>, %arg2: memref<8x256xbf16, #tpu.memory_space<vmem>>, %arg3: memref<8x128xbf16, #tpu.memory_space<vmem>>, %arg4: memref<8x256xbf16, #tpu.memory_space<vmem>>, %arg5: memref<1x256xf32, #tpu.memory_space<vmem>>, %arg6: memref<1x256xf32, #tpu.memory_space<vmem>>, %arg7: memref<1x128xf32, #tpu.memory_space<vmem>>, %arg8: memref<1x128xf32, #tpu.memory_space<vmem>>, %arg9: memref<1x256xf32, #tpu.memory_space<vmem>>, %arg10: memref<1x256xf32, #tpu.memory_space<vmem>>, %arg11: memref<256x128xbf16, #tpu.memory_space<vmem>>, %arg12: memref<128x128xbf16, #tpu.memory_space<vmem>>, %arg13: memref<256x128xbf16, #tpu.memory_space<vmem>>, %arg14: memref<128x512xbf16, #tpu.memory_space<vmem>>, %arg15: memref<128x512xbf16, #tpu.memory_space<vmem>>, %arg16: memref<1x512xf32, #tpu.memory_space<vmem>>, %arg17: memref<512x256xbf16, #tpu.memory_space<vmem>>, %arg18: memref<1x256xf32, #tpu.memory_space<vmem>>, %arg19: memref<256x128xbf16, #tpu.memory_space<vmem>>, %arg20: memref<1x128xf32, #tpu.memory_space<vmem>>, %arg21: memref<128x128xbf16, #tpu.memory_space<vmem>>, %arg22: memref<1x128xf32, #tpu.memory_space<vmem>>, %arg23: memref<8x128xf32, #tpu.memory_space<vmem>>, %arg24: memref<8x512xbf16, #tpu.memory_space<vmem>>) attributes {dimension_semantics = [#tpu.dimension_semantics<parallel>], iteration_bounds = array<i64: 1>, scalar_prefetch = 0 : i64, scratch_operands = 1 : i64, tpu.core_type = #tpu.core_type<tc>, window_params = [{transform_indices = @transform_0, window_bounds = array<i64: 1>}, {transform_indices = @transform_1, window_bounds = array<i64: 8, 256>}, {transform_indices = @transform_2, window_bounds = array<i64: 8, 128>}, {transform_indices = @transform_3, window_bounds = array<i64: 8, 256>}, {pipeline_mode = #tpu.pipeline_mode<synchronous>, transform_indices = @transform_4, window_bounds = array<i64: 1, 256>}, {pipeline_mode = #tpu.pipeline_mode<synchronous>, transform_indices = @transform_5, window_bounds = array<i64: 1, 256>}, {pipeline_mode = #tpu.pipeline_mode<synchronous>, transform_indices = @transform_6, window_bounds = array<i64: 1, 128>}, {pipeline_mode = #tpu.pipeline_mode<synchronous>, transform_indices = @transform_7, window_bounds = array<i64: 1, 128>}, {pipeline_mode = #tpu.pipeline_mode<synchronous>, transform_indices = @transform_8, window_bounds = array<i64: 1, 256>}, {pipeline_mode = #tpu.pipeline_mode<synchronous>, transform_indices = @transform_9, window_bounds = array<i64: 1, 256>}, {pipeline_mode = #tpu.pipeline_mode<synchronous>, transform_indices = @transform_10, window_bounds = array<i64: 256, 128>}, {pipeline_mode = #tpu.pipeline_mode<synchronous>, transform_indices = @transform_11, window_bounds = array<i64: 128, 128>}, {pipeline_mode = #tpu.pipeline_mode<synchronous>, transform_indices = @transform_12, window_bounds = array<i64: 256, 128>}, {pipeline_mode = #tpu.pipeline_mode<synchronous>, transform_indices = @transform_13, window_bounds = array<i64: 128, 512>}, {pipeline_mode = #tpu.pipeline_mode<synchronous>, transform_indices = @transform_14, window_bounds = array<i64: 128, 512>}, {pipeline_mode = #tpu.pipeline_mode<synchronous>, transform_indices = @transform_15, window_bounds = array<i64: 1, 512>}, {pipeline_mode = #tpu.pipeline_mode<synchronous>, transform_indices = @transform_16, window_bounds = array<i64: 512, 256>}, {pipeline_mode = #tpu.pipeline_mode<synchronous>, transform_indices = @transform_17, window_bounds = array<i64: 1, 256>}, {pipeline_mode = #tpu.pipeline_mode<synchronous>, transform_indices = @transform_18, window_bounds = array<i64: 256, 128>}, {pipeline_mode = #tpu.pipeline_mode<synchronous>, transform_indices = @transform_19, window_bounds = array<i64: 1, 128>}, {pipeline_mode = #tpu.pipeline_mode<synchronous>, transform_indices = @transform_20, window_bounds = array<i64: 128, 128>}, {pipeline_mode = #tpu.pipeline_mode<synchronous>, transform_indices = @transform_21, window_bounds = array<i64: 1, 128>}, {transform_indices = @transform_22, window_bounds = array<i64: 8, 128>}]} {
    %c0 = arith.constant 0 : index
    %0 = memref.load %arg1[%c0] : memref<1xf32, #tpu.memory_space<smem>>
    %c0_0 = arith.constant 0 : index
    %c0_1 = arith.constant 0 : index
    %1 = vector.load %arg2[%c0_0, %c0_1] : memref<8x256xbf16, #tpu.memory_space<vmem>>, vector<8x256xbf16>
    %2 = arith.extf %1 : vector<8x256xbf16> to vector<8x256xf32>
    %c0_2 = arith.constant 0 : index
    %c0_3 = arith.constant 0 : index
    %3 = vector.load %arg5[%c0_2, %c0_3] : memref<1x256xf32, #tpu.memory_space<vmem>>, vector<1x256xf32>
    %c0_4 = arith.constant 0 : index
    %c0_5 = arith.constant 0 : index
    %4 = vector.load %arg6[%c0_4, %c0_5] : memref<1x256xf32, #tpu.memory_space<vmem>>, vector<1x256xf32>
    %cst = arith.constant dense<0.000000e+00> : vector<8xf32>
    %5 = vector.multi_reduction <add>, %2, %cst [1] : vector<8x256xf32> to vector<8xf32>
    %6 = vector.shape_cast %5 : vector<8xf32> to vector<8x1xf32>
    %cst_6 = arith.constant 2.560000e+02 : f32
    %7 = vector.broadcast %cst_6 : f32 to vector<8x1xf32>
    %8 = arith.divf %6, %7 : vector<8x1xf32>
    %9 = vector.broadcast %8 : vector<8x1xf32> to vector<8x256xf32>
    %10 = arith.subf %2, %9 : vector<8x256xf32>
    %11 = arith.mulf %10, %10 : vector<8x256xf32>
    %cst_7 = arith.constant dense<0.000000e+00> : vector<8xf32>
    %12 = vector.multi_reduction <add>, %11, %cst_7 [1] : vector<8x256xf32> to vector<8xf32>
    %13 = vector.shape_cast %12 : vector<8xf32> to vector<8x1xf32>
    %cst_8 = arith.constant 2.560000e+02 : f32
    %14 = vector.broadcast %cst_8 : f32 to vector<8x1xf32>
    %15 = arith.divf %13, %14 : vector<8x1xf32>
    %16 = vector.broadcast %8 : vector<8x1xf32> to vector<8x256xf32>
    %17 = arith.subf %2, %16 : vector<8x256xf32>
    %cst_9 = arith.constant 9.99999974E-6 : f32
    %18 = vector.broadcast %cst_9 : f32 to vector<8x1xf32>
    %19 = arith.addf %15, %18 : vector<8x1xf32>
    %20 = math.rsqrt %19 : vector<8x1xf32>
    %21 = vector.broadcast %20 : vector<8x1xf32> to vector<8x256xf32>
    %22 = arith.mulf %17, %21 : vector<8x256xf32>
    %23 = vector.broadcast %3 : vector<1x256xf32> to vector<8x256xf32>
    %24 = arith.mulf %22, %23 : vector<8x256xf32>
    %25 = vector.broadcast %4 : vector<1x256xf32> to vector<8x256xf32>
    %26 = arith.addf %24, %25 : vector<8x256xf32>
    %27 = arith.truncf %26 : vector<8x256xf32> to vector<8x256xbf16>
    %c0_10 = arith.constant 0 : index
    %c0_11 = arith.constant 0 : index
    %28 = vector.load %arg11[%c0_10, %c0_11] : memref<256x128xbf16, #tpu.memory_space<vmem>>, vector<256x128xbf16>
    %cst_12 = arith.constant dense<0.000000e+00> : vector<8x128xf32>
    %29 = tpu.matmul %27, %28, %cst_12 {dimension_numbers = #tpu.dot_dimension_numbers<[1], [0], [0], [1], [0, 0, 1, 1], [], []>} : vector<8x256xbf16>, vector<256x128xbf16>, vector<8x128xf32> -> vector<8x128xf32>
    %c0_13 = arith.constant 0 : index
    %c0_14 = arith.constant 0 : index
    %30 = vector.load %arg3[%c0_13, %c0_14] : memref<8x128xbf16, #tpu.memory_space<vmem>>, vector<8x128xbf16>
    %31 = arith.extf %30 : vector<8x128xbf16> to vector<8x128xf32>
    %c0_15 = arith.constant 0 : index
    %c0_16 = arith.constant 0 : index
    %32 = vector.load %arg7[%c0_15, %c0_16] : memref<1x128xf32, #tpu.memory_space<vmem>>, vector<1x128xf32>
    %c0_17 = arith.constant 0 : index
    %c0_18 = arith.constant 0 : index
    %33 = vector.load %arg8[%c0_17, %c0_18] : memref<1x128xf32, #tpu.memory_space<vmem>>, vector<1x128xf32>
    %cst_19 = arith.constant dense<0.000000e+00> : vector<8xf32>
    %34 = vector.multi_reduction <add>, %31, %cst_19 [1] : vector<8x128xf32> to vector<8xf32>
    %35 = vector.shape_cast %34 : vector<8xf32> to vector<8x1xf32>
    %cst_20 = arith.constant 1.280000e+02 : f32
    %36 = vector.broadcast %cst_20 : f32 to vector<8x1xf32>
    %37 = arith.divf %35, %36 : vector<8x1xf32>
    %38 = vector.broadcast %37 : vector<8x1xf32> to vector<8x128xf32>
    %39 = arith.subf %31, %38 : vector<8x128xf32>
    %40 = arith.mulf %39, %39 : vector<8x128xf32>
    %cst_21 = arith.constant dense<0.000000e+00> : vector<8xf32>
    %41 = vector.multi_reduction <add>, %40, %cst_21 [1] : vector<8x128xf32> to vector<8xf32>
    %42 = vector.shape_cast %41 : vector<8xf32> to vector<8x1xf32>
    %cst_22 = arith.constant 1.280000e+02 : f32
    %43 = vector.broadcast %cst_22 : f32 to vector<8x1xf32>
    %44 = arith.divf %42, %43 : vector<8x1xf32>
    %45 = vector.broadcast %37 : vector<8x1xf32> to vector<8x128xf32>
    %46 = arith.subf %31, %45 : vector<8x128xf32>
    %cst_23 = arith.constant 9.99999974E-6 : f32
    %47 = vector.broadcast %cst_23 : f32 to vector<8x1xf32>
    %48 = arith.addf %44, %47 : vector<8x1xf32>
    %49 = math.rsqrt %48 : vector<8x1xf32>
    %50 = vector.broadcast %49 : vector<8x1xf32> to vector<8x128xf32>
    %51 = arith.mulf %46, %50 : vector<8x128xf32>
    %52 = vector.broadcast %32 : vector<1x128xf32> to vector<8x128xf32>
    %53 = arith.mulf %51, %52 : vector<8x128xf32>
    %54 = vector.broadcast %33 : vector<1x128xf32> to vector<8x128xf32>
    %55 = arith.addf %53, %54 : vector<8x128xf32>
    %56 = arith.truncf %55 : vector<8x128xf32> to vector<8x128xbf16>
    %c0_24 = arith.constant 0 : index
    %c0_25 = arith.constant 0 : index
    %57 = vector.load %arg12[%c0_24, %c0_25] : memref<128x128xbf16, #tpu.memory_space<vmem>>, vector<128x128xbf16>
    %cst_26 = arith.constant dense<0.000000e+00> : vector<8x128xf32>
    %58 = tpu.matmul %56, %57, %cst_26 {dimension_numbers = #tpu.dot_dimension_numbers<[1], [0], [0], [1], [0, 0, 1, 1], [], []>} : vector<8x128xbf16>, vector<128x128xbf16>, vector<8x128xf32> -> vector<8x128xf32>
    %c0_27 = arith.constant 0 : index
    %c0_28 = arith.constant 0 : index
    %59 = vector.load %arg4[%c0_27, %c0_28] : memref<8x256xbf16, #tpu.memory_space<vmem>>, vector<8x256xbf16>
    %60 = arith.extf %59 : vector<8x256xbf16> to vector<8x256xf32>
    %c0_29 = arith.constant 0 : index
    %c0_30 = arith.constant 0 : index
    %61 = vector.load %arg9[%c0_29, %c0_30] : memref<1x256xf32, #tpu.memory_space<vmem>>, vector<1x256xf32>
    %c0_31 = arith.constant 0 : index
    %c0_32 = arith.constant 0 : index
    %62 = vector.load %arg10[%c0_31, %c0_32] : memref<1x256xf32, #tpu.memory_space<vmem>>, vector<1x256xf32>
    %cst_33 = arith.constant dense<0.000000e+00> : vector<8xf32>
    %63 = vector.multi_reduction <add>, %60, %cst_33 [1] : vector<8x256xf32> to vector<8xf32>
    %64 = vector.shape_cast %63 : vector<8xf32> to vector<8x1xf32>
    %cst_34 = arith.constant 2.560000e+02 : f32
    %65 = vector.broadcast %cst_34 : f32 to vector<8x1xf32>
    %66 = arith.divf %64, %65 : vector<8x1xf32>
    %67 = vector.broadcast %66 : vector<8x1xf32> to vector<8x256xf32>
    %68 = arith.subf %60, %67 : vector<8x256xf32>
    %69 = arith.mulf %68, %68 : vector<8x256xf32>
    %cst_35 = arith.constant dense<0.000000e+00> : vector<8xf32>
    %70 = vector.multi_reduction <add>, %69, %cst_35 [1] : vector<8x256xf32> to vector<8xf32>
    %71 = vector.shape_cast %70 : vector<8xf32> to vector<8x1xf32>
    %cst_36 = arith.constant 2.560000e+02 : f32
    %72 = vector.broadcast %cst_36 : f32 to vector<8x1xf32>
    %73 = arith.divf %71, %72 : vector<8x1xf32>
    %74 = vector.broadcast %66 : vector<8x1xf32> to vector<8x256xf32>
    %75 = arith.subf %60, %74 : vector<8x256xf32>
    %cst_37 = arith.constant 9.99999974E-6 : f32
    %76 = vector.broadcast %cst_37 : f32 to vector<8x1xf32>
    %77 = arith.addf %73, %76 : vector<8x1xf32>
    %78 = math.rsqrt %77 : vector<8x1xf32>
    %79 = vector.broadcast %78 : vector<8x1xf32> to vector<8x256xf32>
    %80 = arith.mulf %75, %79 : vector<8x256xf32>
    %81 = vector.broadcast %61 : vector<1x256xf32> to vector<8x256xf32>
    %82 = arith.mulf %80, %81 : vector<8x256xf32>
    %83 = vector.broadcast %62 : vector<1x256xf32> to vector<8x256xf32>
    %84 = arith.addf %82, %83 : vector<8x256xf32>
    %85 = arith.truncf %84 : vector<8x256xf32> to vector<8x256xbf16>
    %c0_38 = arith.constant 0 : index
    %c0_39 = arith.constant 0 : index
    %86 = vector.load %arg13[%c0_38, %c0_39] : memref<256x128xbf16, #tpu.memory_space<vmem>>, vector<256x128xbf16>
    %cst_40 = arith.constant dense<0.000000e+00> : vector<8x128xf32>
    %87 = tpu.matmul %85, %86, %cst_40 {dimension_numbers = #tpu.dot_dimension_numbers<[1], [0], [0], [1], [0, 0, 1, 1], [], []>} : vector<8x256xbf16>, vector<256x128xbf16>, vector<8x128xf32> -> vector<8x128xf32>
    %88 = vector.broadcast %0 : f32 to vector<8x128xf32>
    %89 = arith.mulf %88, %58 : vector<8x128xf32>
    %cst_41 = arith.constant 1.000000e+00 : f32
    %90 = arith.subf %cst_41, %0 : f32
    %91 = vector.broadcast %90 : f32 to vector<8x128xf32>
    %92 = arith.mulf %91, %87 : vector<8x128xf32>
    %93 = arith.addf %89, %92 : vector<8x128xf32>
    %94 = arith.truncf %29 : vector<8x128xf32> to vector<8x128xbf16>
    %c0_42 = arith.constant 0 : index
    %c0_43 = arith.constant 0 : index
    %95 = vector.load %arg14[%c0_42, %c0_43] : memref<128x512xbf16, #tpu.memory_space<vmem>>, vector<128x512xbf16>
    %cst_44 = arith.constant dense<0.000000e+00> : vector<8x512xf32>
    %96 = tpu.matmul %94, %95, %cst_44 {dimension_numbers = #tpu.dot_dimension_numbers<[1], [0], [0], [1], [0, 0, 1, 1], [], []>} : vector<8x128xbf16>, vector<128x512xbf16>, vector<8x512xf32> -> vector<8x512xf32>
    %97 = arith.truncf %93 : vector<8x128xf32> to vector<8x128xbf16>
    %c0_45 = arith.constant 0 : index
    %c0_46 = arith.constant 0 : index
    %98 = vector.load %arg15[%c0_45, %c0_46] : memref<128x512xbf16, #tpu.memory_space<vmem>>, vector<128x512xbf16>
    %cst_47 = arith.constant dense<0.000000e+00> : vector<8x512xf32>
    %99 = tpu.matmul %97, %98, %cst_47 {dimension_numbers = #tpu.dot_dimension_numbers<[1], [0], [0], [1], [0, 0, 1, 1], [], []>} : vector<8x128xbf16>, vector<128x512xbf16>, vector<8x512xf32> -> vector<8x512xf32>
    %100 = arith.addf %96, %99 : vector<8x512xf32>
    %c0_48 = arith.constant 0 : index
    %c0_49 = arith.constant 0 : index
    %101 = vector.load %arg16[%c0_48, %c0_49] : memref<1x512xf32, #tpu.memory_space<vmem>>, vector<1x512xf32>
    %102 = vector.broadcast %101 : vector<1x512xf32> to vector<8x512xf32>
    %103 = arith.addf %100, %102 : vector<8x512xf32>
    %cst_50 = arith.constant 5.000000e-01 : f32
    %104 = vector.broadcast %cst_50 : f32 to vector<8x512xf32>
    %105 = arith.mulf %104, %103 : vector<8x512xf32>
    %cst_51 = arith.constant 4.471500e-02 : f32
    %106 = vector.broadcast %cst_51 : f32 to vector<8x512xf32>
    %107 = arith.mulf %106, %103 : vector<8x512xf32>
    %108 = arith.mulf %107, %103 : vector<8x512xf32>
    %109 = arith.mulf %108, %103 : vector<8x512xf32>
    %110 = arith.addf %103, %109 : vector<8x512xf32>
    %cst_52 = arith.constant 0.797884583 : f32
    %111 = vector.broadcast %cst_52 : f32 to vector<8x512xf32>
    %112 = arith.mulf %111, %110 : vector<8x512xf32>
    %113 = math.tanh %112 : vector<8x512xf32>
    %cst_53 = arith.constant 1.000000e+00 : f32
    %114 = vector.broadcast %cst_53 : f32 to vector<8x512xf32>
    %115 = arith.addf %114, %113 : vector<8x512xf32>
    %116 = arith.mulf %105, %115 : vector<8x512xf32>
    %117 = arith.truncf %116 : vector<8x512xf32> to vector<8x512xbf16>
    %c0_54 = arith.constant 0 : index
    %c0_55 = arith.constant 0 : index
    %118 = vector.load %arg24[%c0_54, %c0_55] : memref<8x512xbf16, #tpu.memory_space<vmem>>, vector<8x512xbf16>
    tpu.vector_store %arg24[%c0_54, %c0_55], %117 {strides = array<i32>} : memref<8x512xbf16, #tpu.memory_space<vmem>>, vector<8x512xbf16>,
    %c0_56 = arith.constant 0 : index
    %c0_57 = arith.constant 0 : index
    %119 = vector.load %arg24[%c0_56, %c0_57] : memref<8x512xbf16, #tpu.memory_space<vmem>>, vector<8x512xbf16>
    %c0_58 = arith.constant 0 : index
    %c0_59 = arith.constant 0 : index
    %120 = vector.load %arg17[%c0_58, %c0_59] : memref<512x256xbf16, #tpu.memory_space<vmem>>, vector<512x256xbf16>
    %cst_60 = arith.constant dense<0.000000e+00> : vector<8x256xf32>
    %121 = tpu.matmul %119, %120, %cst_60 {dimension_numbers = #tpu.dot_dimension_numbers<[1], [0], [0], [1], [0, 0, 1, 1], [], []>} : vector<8x512xbf16>, vector<512x256xbf16>, vector<8x256xf32> -> vector<8x256xf32>
    %c0_61 = arith.constant 0 : index
    %c0_62 = arith.constant 0 : index
    %122 = vector.load %arg18[%c0_61, %c0_62] : memref<1x256xf32, #tpu.memory_space<vmem>>, vector<1x256xf32>
    %123 = vector.broadcast %122 : vector<1x256xf32> to vector<8x256xf32>
    %124 = arith.addf %121, %123 : vector<8x256xf32>
    %cst_63 = arith.constant 5.000000e-01 : f32
    %125 = vector.broadcast %cst_63 : f32 to vector<8x256xf32>
    %126 = arith.mulf %125, %124 : vector<8x256xf32>
    %cst_64 = arith.constant 4.471500e-02 : f32
    %127 = vector.broadcast %cst_64 : f32 to vector<8x256xf32>
    %128 = arith.mulf %127, %124 : vector<8x256xf32>
    %129 = arith.mulf %128, %124 : vector<8x256xf32>
    %130 = arith.mulf %129, %124 : vector<8x256xf32>
    %131 = arith.addf %124, %130 : vector<8x256xf32>
    %cst_65 = arith.constant 0.797884583 : f32
    %132 = vector.broadcast %cst_65 : f32 to vector<8x256xf32>
    %133 = arith.mulf %132, %131 : vector<8x256xf32>
    %134 = math.tanh %133 : vector<8x256xf32>
    %cst_66 = arith.constant 1.000000e+00 : f32
    %135 = vector.broadcast %cst_66 : f32 to vector<8x256xf32>
    %136 = arith.addf %135, %134 : vector<8x256xf32>
    %137 = arith.mulf %126, %136 : vector<8x256xf32>
    %138 = arith.truncf %137 : vector<8x256xf32> to vector<8x256xbf16>
    %c0_67 = arith.constant 0 : index
    %c0_68 = arith.constant 0 : index
    %139 = vector.load %arg19[%c0_67, %c0_68] : memref<256x128xbf16, #tpu.memory_space<vmem>>, vector<256x128xbf16>
    %cst_69 = arith.constant dense<0.000000e+00> : vector<8x128xf32>
    %140 = tpu.matmul %138, %139, %cst_69 {dimension_numbers = #tpu.dot_dimension_numbers<[1], [0], [0], [1], [0, 0, 1, 1], [], []>} : vector<8x256xbf16>, vector<256x128xbf16>, vector<8x128xf32> -> vector<8x128xf32>
    %c0_70 = arith.constant 0 : index
    %c0_71 = arith.constant 0 : index
    %141 = vector.load %arg20[%c0_70, %c0_71] : memref<1x128xf32, #tpu.memory_space<vmem>>, vector<1x128xf32>
    %142 = vector.broadcast %141 : vector<1x128xf32> to vector<8x128xf32>
    %143 = arith.addf %140, %142 : vector<8x128xf32>
    %cst_72 = arith.constant 5.000000e-01 : f32
    %144 = vector.broadcast %cst_72 : f32 to vector<8x128xf32>
    %145 = arith.mulf %144, %143 : vector<8x128xf32>
    %cst_73 = arith.constant 4.471500e-02 : f32
    %146 = vector.broadcast %cst_73 : f32 to vector<8x128xf32>
    %147 = arith.mulf %146, %143 : vector<8x128xf32>
    %148 = arith.mulf %147, %143 : vector<8x128xf32>
    %149 = arith.mulf %148, %143 : vector<8x128xf32>
    %150 = arith.addf %143, %149 : vector<8x128xf32>
    %cst_74 = arith.constant 0.797884583 : f32
    %151 = vector.broadcast %cst_74 : f32 to vector<8x128xf32>
    %152 = arith.mulf %151, %150 : vector<8x128xf32>
    %153 = math.tanh %152 : vector<8x128xf32>
    %cst_75 = arith.constant 1.000000e+00 : f32
    %154 = vector.broadcast %cst_75 : f32 to vector<8x128xf32>
    %155 = arith.addf %154, %153 : vector<8x128xf32>
    %156 = arith.mulf %145, %155 : vector<8x128xf32>
    %157 = arith.truncf %156 : vector<8x128xf32> to vector<8x128xbf16>
    %c0_76 = arith.constant 0 : index
    %c0_77 = arith.constant 0 : index
    %158 = vector.load %arg21[%c0_76, %c0_77] : memref<128x128xbf16, #tpu.memory_space<vmem>>, vector<128x128xbf16>
    %cst_78 = arith.constant dense<0.000000e+00> : vector<8x128xf32>
    %159 = tpu.matmul %157, %158, %cst_78 {dimension_numbers = #tpu.dot_dimension_numbers<[1], [0], [0], [1], [0, 0, 1, 1], [], []>} : vector<8x128xbf16>, vector<128x128xbf16>, vector<8x128xf32> -> vector<8x128xf32>
    %c0_79 = arith.constant 0 : index
    %c0_80 = arith.constant 0 : index
    %160 = vector.load %arg22[%c0_79, %c0_80] : memref<1x128xf32, #tpu.memory_space<vmem>>, vector<1x128xf32>
    %161 = vector.broadcast %160 : vector<1x128xf32> to vector<8x128xf32>
    %162 = arith.addf %159, %161 : vector<8x128xf32>
    %c0_81 = arith.constant 0 : index
    %c0_82 = arith.constant 0 : index
    %163 = vector.load %arg23[%c0_81, %c0_82] : memref<8x128xf32, #tpu.memory_space<vmem>>, vector<8x128xf32>
    tpu.vector_store %arg23[%c0_81, %c0_82], %162 {strides = array<i32>} : memref<8x128xf32, #tpu.memory_space<vmem>>, vector<8x128xf32>,
    return
  }
  func.func @transform_0(%arg0: i32) -> i32 {
    %c0_i32 = arith.constant 0 : i32
    %c0_i32_0 = arith.constant 0 : i32
    return %c0_i32 : i32
  }
  func.func @transform_1(%arg0: i32) -> (i32, i32) {
    %c0_i32 = arith.constant 0 : i32
    %c0_i32_0 = arith.constant 0 : i32
    return %arg0, %c0_i32 : i32, i32
  }
  func.func @transform_2(%arg0: i32) -> (i32, i32) {
    %c0_i32 = arith.constant 0 : i32
    %c0_i32_0 = arith.constant 0 : i32
    return %arg0, %c0_i32 : i32, i32
  }
  func.func @transform_3(%arg0: i32) -> (i32, i32) {
    %c0_i32 = arith.constant 0 : i32
    %c0_i32_0 = arith.constant 0 : i32
    return %arg0, %c0_i32 : i32, i32
  }
  func.func @transform_4(%arg0: i32) -> (i32, i32) {
    %c0_i32 = arith.constant 0 : i32
    %c0_i32_0 = arith.constant 0 : i32
    %c0_i32_1 = arith.constant 0 : i32
    return %c0_i32, %c0_i32_0 : i32, i32
  }
  func.func @transform_5(%arg0: i32) -> (i32, i32) {
    %c0_i32 = arith.constant 0 : i32
    %c0_i32_0 = arith.constant 0 : i32
    %c0_i32_1 = arith.constant 0 : i32
    return %c0_i32, %c0_i32_0 : i32, i32
  }
  func.func @transform_6(%arg0: i32) -> (i32, i32) {
    %c0_i32 = arith.constant 0 : i32
    %c0_i32_0 = arith.constant 0 : i32
    %c0_i32_1 = arith.constant 0 : i32
    return %c0_i32, %c0_i32_0 : i32, i32
  }
  func.func @transform_7(%arg0: i32) -> (i32, i32) {
    %c0_i32 = arith.constant 0 : i32
    %c0_i32_0 = arith.constant 0 : i32
    %c0_i32_1 = arith.constant 0 : i32
    return %c0_i32, %c0_i32_0 : i32, i32
  }
  func.func @transform_8(%arg0: i32) -> (i32, i32) {
    %c0_i32 = arith.constant 0 : i32
    %c0_i32_0 = arith.constant 0 : i32
    %c0_i32_1 = arith.constant 0 : i32
    return %c0_i32, %c0_i32_0 : i32, i32
  }
  func.func @transform_9(%arg0: i32) -> (i32, i32) {
    %c0_i32 = arith.constant 0 : i32
    %c0_i32_0 = arith.constant 0 : i32
    %c0_i32_1 = arith.constant 0 : i32
    return %c0_i32, %c0_i32_0 : i32, i32
  }
  func.func @transform_10(%arg0: i32) -> (i32, i32) {
    %c0_i32 = arith.constant 0 : i32
    %c0_i32_0 = arith.constant 0 : i32
    %c0_i32_1 = arith.constant 0 : i32
    return %c0_i32, %c0_i32_0 : i32, i32
  }
  func.func @transform_11(%arg0: i32) -> (i32, i32) {
    %c0_i32 = arith.constant 0 : i32
    %c0_i32_0 = arith.constant 0 : i32
    %c0_i32_1 = arith.constant 0 : i32
    return %c0_i32, %c0_i32_0 : i32, i32
  }
  func.func @transform_12(%arg0: i32) -> (i32, i32) {
    %c0_i32 = arith.constant 0 : i32
    %c0_i32_0 = arith.constant 0 : i32
    %c0_i32_1 = arith.constant 0 : i32
    return %c0_i32, %c0_i32_0 : i32, i32
  }
  func.func @transform_13(%arg0: i32) -> (i32, i32) {
    %c0_i32 = arith.constant 0 : i32
    %c0_i32_0 = arith.constant 0 : i32
    %c0_i32_1 = arith.constant 0 : i32
    return %c0_i32, %c0_i32_0 : i32, i32
  }
  func.func @transform_14(%arg0: i32) -> (i32, i32) {
    %c0_i32 = arith.constant 0 : i32
    %c0_i32_0 = arith.constant 0 : i32
    %c0_i32_1 = arith.constant 0 : i32
    return %c0_i32, %c0_i32_0 : i32, i32
  }
  func.func @transform_15(%arg0: i32) -> (i32, i32) {
    %c0_i32 = arith.constant 0 : i32
    %c0_i32_0 = arith.constant 0 : i32
    %c0_i32_1 = arith.constant 0 : i32
    return %c0_i32, %c0_i32_0 : i32, i32
  }
  func.func @transform_16(%arg0: i32) -> (i32, i32) {
    %c0_i32 = arith.constant 0 : i32
    %c0_i32_0 = arith.constant 0 : i32
    %c0_i32_1 = arith.constant 0 : i32
    return %c0_i32, %c0_i32_0 : i32, i32
  }
  func.func @transform_17(%arg0: i32) -> (i32, i32) {
    %c0_i32 = arith.constant 0 : i32
    %c0_i32_0 = arith.constant 0 : i32
    %c0_i32_1 = arith.constant 0 : i32
    return %c0_i32, %c0_i32_0 : i32, i32
  }
  func.func @transform_18(%arg0: i32) -> (i32, i32) {
    %c0_i32 = arith.constant 0 : i32
    %c0_i32_0 = arith.constant 0 : i32
    %c0_i32_1 = arith.constant 0 : i32
    return %c0_i32, %c0_i32_0 : i32, i32
  }
  func.func @transform_19(%arg0: i32) -> (i32, i32) {
    %c0_i32 = arith.constant 0 : i32
    %c0_i32_0 = arith.constant 0 : i32
    %c0_i32_1 = arith.constant 0 : i32
    return %c0_i32, %c0_i32_0 : i32, i32
  }
  func.func @transform_20(%arg0: i32) -> (i32, i32) {
    %c0_i32 = arith.constant 0 : i32
    %c0_i32_0 = arith.constant 0 : i32
    %c0_i32_1 = arith.constant 0 : i32
    return %c0_i32, %c0_i32_0 : i32, i32
  }
  func.func @transform_21(%arg0: i32) -> (i32, i32) {
    %c0_i32 = arith.constant 0 : i32
    %c0_i32_0 = arith.constant 0 : i32
    %c0_i32_1 = arith.constant 0 : i32
    return %c0_i32, %c0_i32_0 : i32, i32
  }
  func.func @transform_22(%arg0: i32) -> (i32, i32) {
    %c0_i32 = arith.constant 0 : i32
    %c0_i32_0 = arith.constant 0 : i32
    return %arg0, %c0_i32 : i32, i32
  }
}

module attributes {stable_mosaic.version = 11 : i64} {
  func.func @dti_kernel(%arg0: i32, %arg1: memref<1xf32, #tpu.memory_space<smem>>, %arg2: memref<8x256xbf16, #tpu.memory_space<vmem>>, %arg3: memref<8x128xbf16, #tpu.memory_space<vmem>>, %arg4: memref<8x256xbf16, #tpu.memory_space<vmem>>, %arg5: memref<1x256xf32, #tpu.memory_space<vmem>>, %arg6: memref<1x256xf32, #tpu.memory_space<vmem>>, %arg7: memref<1x128xf32, #tpu.memory_space<vmem>>, %arg8: memref<1x128xf32, #tpu.memory_space<vmem>>, %arg9: memref<1x256xf32, #tpu.memory_space<vmem>>, %arg10: memref<1x256xf32, #tpu.memory_space<vmem>>, %arg11: memref<256x128xbf16, #tpu.memory_space<vmem>>, %arg12: memref<128x128xbf16, #tpu.memory_space<vmem>>, %arg13: memref<256x128xbf16, #tpu.memory_space<vmem>>, %arg14: memref<128x512xbf16, #tpu.memory_space<vmem>>, %arg15: memref<128x512xbf16, #tpu.memory_space<vmem>>, %arg16: memref<1x512xf32, #tpu.memory_space<vmem>>, %arg17: memref<512x256xbf16, #tpu.memory_space<vmem>>, %arg18: memref<1x256xf32, #tpu.memory_space<vmem>>, %arg19: memref<256x128xbf16, #tpu.memory_space<vmem>>, %arg20: memref<1x128xf32, #tpu.memory_space<vmem>>, %arg21: memref<128x128xbf16, #tpu.memory_space<vmem>>, %arg22: memref<1x128xf32, #tpu.memory_space<vmem>>, %arg23: memref<8x128xf32, #tpu.memory_space<vmem>>, %arg24: memref<8x512xbf16, #tpu.memory_space<vmem>>) attributes {dimension_semantics = [#tpu.dimension_semantics<parallel>], iteration_bounds = array<i64: 1>, scalar_prefetch = 0 : i64, scratch_operands = 1 : i64, tpu.core_type = #tpu.core_type<tc>, window_params = [{transform_indices = @transform_0, window_bounds = array<i64: 1>}, {transform_indices = @transform_1, window_bounds = array<i64: 8, 256>}, {transform_indices = @transform_2, window_bounds = array<i64: 8, 128>}, {transform_indices = @transform_3, window_bounds = array<i64: 8, 256>}, {pipeline_mode = #tpu.pipeline_mode<synchronous>, transform_indices = @transform_4, window_bounds = array<i64: 1, 256>}, {pipeline_mode = #tpu.pipeline_mode<synchronous>, transform_indices = @transform_5, window_bounds = array<i64: 1, 256>}, {pipeline_mode = #tpu.pipeline_mode<synchronous>, transform_indices = @transform_6, window_bounds = array<i64: 1, 128>}, {pipeline_mode = #tpu.pipeline_mode<synchronous>, transform_indices = @transform_7, window_bounds = array<i64: 1, 128>}, {pipeline_mode = #tpu.pipeline_mode<synchronous>, transform_indices = @transform_8, window_bounds = array<i64: 1, 256>}, {pipeline_mode = #tpu.pipeline_mode<synchronous>, transform_indices = @transform_9, window_bounds = array<i64: 1, 256>}, {pipeline_mode = #tpu.pipeline_mode<synchronous>, transform_indices = @transform_10, window_bounds = array<i64: 256, 128>}, {pipeline_mode = #tpu.pipeline_mode<synchronous>, transform_indices = @transform_11, window_bounds = array<i64: 128, 128>}, {pipeline_mode = #tpu.pipeline_mode<synchronous>, transform_indices = @transform_12, window_bounds = array<i64: 256, 128>}, {pipeline_mode = #tpu.pipeline_mode<synchronous>, transform_indices = @transform_13, window_bounds = array<i64: 128, 512>}, {pipeline_mode = #tpu.pipeline_mode<synchronous>, transform_indices = @transform_14, window_bounds = array<i64: 128, 512>}, {pipeline_mode = #tpu.pipeline_mode<synchronous>, transform_indices = @transform_15, window_bounds = array<i64: 1, 512>}, {pipeline_mode = #tpu.pipeline_mode<synchronous>, transform_indices = @transform_16, window_bounds = array<i64: 512, 256>}, {pipeline_mode = #tpu.pipeline_mode<synchronous>, transform_indices = @transform_17, window_bounds = array<i64: 1, 256>}, {pipeline_mode = #tpu.pipeline_mode<synchronous>, transform_indices = @transform_18, window_bounds = array<i64: 256, 128>}, {pipeline_mode = #tpu.pipeline_mode<synchronous>, transform_indices = @transform_19, window_bounds = array<i64: 1, 128>}, {pipeline_mode = #tpu.pipeline_mode<synchronous>, transform_indices = @transform_20, window_bounds = array<i64: 128, 128>}, {pipeline_mode = #tpu.pipeline_mode<synchronous>, transform_indices = @transform_21, window_bounds = array<i64: 1, 128>}, {transform_indices = @transform_22, window_bounds = array<i64: 8, 128>}]} {
    %c0 = arith.constant 0 : index
    %0 = memref.load %arg1[%c0] : memref<1xf32, #tpu.memory_space<smem>>
    %c0_0 = arith.constant 0 : index
    %c0_1 = arith.constant 0 : index
    %1 = vector.load %arg2[%c0_0, %c0_1] : memref<8x256xbf16, #tpu.memory_space<vmem>>, vector<8x256xbf16>
    %2 = arith.extf %1 : vector<8x256xbf16> to vector<8x256xf32>
    %c0_2 = arith.constant 0 : index
    %c0_3 = arith.constant 0 : index
    %3 = vector.load %arg5[%c0_2, %c0_3] : memref<1x256xf32, #tpu.memory_space<vmem>>, vector<1x256xf32>
    %c0_4 = arith.constant 0 : index
    %c0_5 = arith.constant 0 : index
    %4 = vector.load %arg6[%c0_4, %c0_5] : memref<1x256xf32, #tpu.memory_space<vmem>>, vector<1x256xf32>
    %cst = arith.constant dense<0.000000e+00> : vector<8xf32>
    %5 = vector.multi_reduction <add>, %2, %cst [1] : vector<8x256xf32> to vector<8xf32>
    %6 = vector.shape_cast %5 : vector<8xf32> to vector<8x1xf32>
    %cst_6 = arith.constant 2.560000e+02 : f32
    %7 = vector.broadcast %cst_6 : f32 to vector<8x1xf32>
    %8 = arith.divf %6, %7 : vector<8x1xf32>
    %9 = vector.broadcast %8 : vector<8x1xf32> to vector<8x256xf32>
    %10 = arith.subf %2, %9 : vector<8x256xf32>
    %11 = arith.mulf %10, %10 : vector<8x256xf32>
    %cst_7 = arith.constant dense<0.000000e+00> : vector<8xf32>
    %12 = vector.multi_reduction <add>, %11, %cst_7 [1] : vector<8x256xf32> to vector<8xf32>
    %13 = vector.shape_cast %12 : vector<8xf32> to vector<8x1xf32>
    %cst_8 = arith.constant 2.560000e+02 : f32
    %14 = vector.broadcast %cst_8 : f32 to vector<8x1xf32>
    %15 = arith.divf %13, %14 : vector<8x1xf32>
    %16 = vector.broadcast %8 : vector<8x1xf32> to vector<8x256xf32>
    %17 = arith.subf %2, %16 : vector<8x256xf32>
    %cst_9 = arith.constant 9.99999974E-6 : f32
    %18 = vector.broadcast %cst_9 : f32 to vector<8x1xf32>
    %19 = arith.addf %15, %18 : vector<8x1xf32>
    %20 = math.rsqrt %19 : vector<8x1xf32>
    %21 = vector.broadcast %20 : vector<8x1xf32> to vector<8x256xf32>
    %22 = arith.mulf %17, %21 : vector<8x256xf32>
    %23 = vector.broadcast %3 : vector<1x256xf32> to vector<8x256xf32>
    %24 = arith.mulf %22, %23 : vector<8x256xf32>
    %25 = vector.broadcast %4 : vector<1x256xf32> to vector<8x256xf32>
    %26 = arith.addf %24, %25 : vector<8x256xf32>
    %27 = arith.truncf %26 : vector<8x256xf32> to vector<8x256xbf16>
    %c0_10 = arith.constant 0 : index
    %c0_11 = arith.constant 0 : index
    %28 = vector.load %arg11[%c0_10, %c0_11] : memref<256x128xbf16, #tpu.memory_space<vmem>>, vector<256x128xbf16>
    %cst_12 = arith.constant dense<0.000000e+00> : vector<8x128xf32>
    %29 = tpu.matmul %27, %28, %cst_12 {dimension_numbers = #tpu.dot_dimension_numbers<[1], [0], [0], [1], [0, 0, 1, 1], [], []>} : vector<8x256xbf16>, vector<256x128xbf16>, vector<8x128xf32> -> vector<8x128xf32>
    %c0_13 = arith.constant 0 : index
    %c0_14 = arith.constant 0 : index
    %30 = vector.load %arg3[%c0_13, %c0_14] : memref<8x128xbf16, #tpu.memory_space<vmem>>, vector<8x128xbf16>
    %31 = arith.extf %30 : vector<8x128xbf16> to vector<8x128xf32>
    %c0_15 = arith.constant 0 : index
    %c0_16 = arith.constant 0 : index
    %32 = vector.load %arg7[%c0_15, %c0_16] : memref<1x128xf32, #tpu.memory_space<vmem>>, vector<1x128xf32>
    %c0_17 = arith.constant 0 : index
    %c0_18 = arith.constant 0 : index
    %33 = vector.load %arg8[%c0_17, %c0_18] : memref<1x128xf32, #tpu.memory_space<vmem>>, vector<1x128xf32>
    %cst_19 = arith.constant dense<0.000000e+00> : vector<8xf32>
    %34 = vector.multi_reduction <add>, %31, %cst_19 [1] : vector<8x128xf32> to vector<8xf32>
    %35 = vector.shape_cast %34 : vector<8xf32> to vector<8x1xf32>
    %cst_20 = arith.constant 1.280000e+02 : f32
    %36 = vector.broadcast %cst_20 : f32 to vector<8x1xf32>
    %37 = arith.divf %35, %36 : vector<8x1xf32>
    %38 = vector.broadcast %37 : vector<8x1xf32> to vector<8x128xf32>
    %39 = arith.subf %31, %38 : vector<8x128xf32>
    %40 = arith.mulf %39, %39 : vector<8x128xf32>
    %cst_21 = arith.constant dense<0.000000e+00> : vector<8xf32>
    %41 = vector.multi_reduction <add>, %40, %cst_21 [1] : vector<8x128xf32> to vector<8xf32>
    %42 = vector.shape_cast %41 : vector<8xf32> to vector<8x1xf32>
    %cst_22 = arith.constant 1.280000e+02 : f32
    %43 = vector.broadcast %cst_22 : f32 to vector<8x1xf32>
    %44 = arith.divf %42, %43 : vector<8x1xf32>
    %45 = vector.broadcast %37 : vector<8x1xf32> to vector<8x128xf32>
    %46 = arith.subf %31, %45 : vector<8x128xf32>
    %cst_23 = arith.constant 9.99999974E-6 : f32
    %47 = vector.broadcast %cst_23 : f32 to vector<8x1xf32>
    %48 = arith.addf %44, %47 : vector<8x1xf32>
    %49 = math.rsqrt %48 : vector<8x1xf32>
    %50 = vector.broadcast %49 : vector<8x1xf32> to vector<8x128xf32>
    %51 = arith.mulf %46, %50 : vector<8x128xf32>
    %52 = vector.broadcast %32 : vector<1x128xf32> to vector<8x128xf32>
    %53 = arith.mulf %51, %52 : vector<8x128xf32>
    %54 = vector.broadcast %33 : vector<1x128xf32> to vector<8x128xf32>
    %55 = arith.addf %53, %54 : vector<8x128xf32>
    %56 = arith.truncf %55 : vector<8x128xf32> to vector<8x128xbf16>
    %c0_24 = arith.constant 0 : index
    %c0_25 = arith.constant 0 : index
    %57 = vector.load %arg12[%c0_24, %c0_25] : memref<128x128xbf16, #tpu.memory_space<vmem>>, vector<128x128xbf16>
    %cst_26 = arith.constant dense<0.000000e+00> : vector<8x128xf32>
    %58 = tpu.matmul %56, %57, %cst_26 {dimension_numbers = #tpu.dot_dimension_numbers<[1], [0], [0], [1], [0, 0, 1, 1], [], []>} : vector<8x128xbf16>, vector<128x128xbf16>, vector<8x128xf32> -> vector<8x128xf32>
    %c0_27 = arith.constant 0 : index
    %c0_28 = arith.constant 0 : index
    %59 = vector.load %arg4[%c0_27, %c0_28] : memref<8x256xbf16, #tpu.memory_space<vmem>>, vector<8x256xbf16>
    %60 = arith.extf %59 : vector<8x256xbf16> to vector<8x256xf32>
    %c0_29 = arith.constant 0 : index
    %c0_30 = arith.constant 0 : index
    %61 = vector.load %arg9[%c0_29, %c0_30] : memref<1x256xf32, #tpu.memory_space<vmem>>, vector<1x256xf32>
    %c0_31 = arith.constant 0 : index
    %c0_32 = arith.constant 0 : index
    %62 = vector.load %arg10[%c0_31, %c0_32] : memref<1x256xf32, #tpu.memory_space<vmem>>, vector<1x256xf32>
    %cst_33 = arith.constant dense<0.000000e+00> : vector<8xf32>
    %63 = vector.multi_reduction <add>, %60, %cst_33 [1] : vector<8x256xf32> to vector<8xf32>
    %64 = vector.shape_cast %63 : vector<8xf32> to vector<8x1xf32>
    %cst_34 = arith.constant 2.560000e+02 : f32
    %65 = vector.broadcast %cst_34 : f32 to vector<8x1xf32>
    %66 = arith.divf %64, %65 : vector<8x1xf32>
    %67 = vector.broadcast %66 : vector<8x1xf32> to vector<8x256xf32>
    %68 = arith.subf %60, %67 : vector<8x256xf32>
    %69 = arith.mulf %68, %68 : vector<8x256xf32>
    %cst_35 = arith.constant dense<0.000000e+00> : vector<8xf32>
    %70 = vector.multi_reduction <add>, %69, %cst_35 [1] : vector<8x256xf32> to vector<8xf32>
    %71 = vector.shape_cast %70 : vector<8xf32> to vector<8x1xf32>
    %cst_36 = arith.constant 2.560000e+02 : f32
    %72 = vector.broadcast %cst_36 : f32 to vector<8x1xf32>
    %73 = arith.divf %71, %72 : vector<8x1xf32>
    %74 = vector.broadcast %66 : vector<8x1xf32> to vector<8x256xf32>
    %75 = arith.subf %60, %74 : vector<8x256xf32>
    %cst_37 = arith.constant 9.99999974E-6 : f32
    %76 = vector.broadcast %cst_37 : f32 to vector<8x1xf32>
    %77 = arith.addf %73, %76 : vector<8x1xf32>
    %78 = math.rsqrt %77 : vector<8x1xf32>
    %79 = vector.broadcast %78 : vector<8x1xf32> to vector<8x256xf32>
    %80 = arith.mulf %75, %79 : vector<8x256xf32>
    %81 = vector.broadcast %61 : vector<1x256xf32> to vector<8x256xf32>
    %82 = arith.mulf %80, %81 : vector<8x256xf32>
    %83 = vector.broadcast %62 : vector<1x256xf32> to vector<8x256xf32>
    %84 = arith.addf %82, %83 : vector<8x256xf32>
    %85 = arith.truncf %84 : vector<8x256xf32> to vector<8x256xbf16>
    %c0_38 = arith.constant 0 : index
    %c0_39 = arith.constant 0 : index
    %86 = vector.load %arg13[%c0_38, %c0_39] : memref<256x128xbf16, #tpu.memory_space<vmem>>, vector<256x128xbf16>
    %cst_40 = arith.constant dense<0.000000e+00> : vector<8x128xf32>
    %87 = tpu.matmul %85, %86, %cst_40 {dimension_numbers = #tpu.dot_dimension_numbers<[1], [0], [0], [1], [0, 0, 1, 1], [], []>} : vector<8x256xbf16>, vector<256x128xbf16>, vector<8x128xf32> -> vector<8x128xf32>
    %88 = vector.broadcast %0 : f32 to vector<8x128xf32>
    %89 = arith.mulf %88, %58 : vector<8x128xf32>
    %cst_41 = arith.constant 1.000000e+00 : f32
    %90 = arith.subf %cst_41, %0 : f32
    %91 = vector.broadcast %90 : f32 to vector<8x128xf32>
    %92 = arith.mulf %91, %87 : vector<8x128xf32>
    %93 = arith.addf %89, %92 : vector<8x128xf32>
    %94 = arith.truncf %29 : vector<8x128xf32> to vector<8x128xbf16>
    %c0_42 = arith.constant 0 : index
    %c0_43 = arith.constant 0 : index
    %95 = vector.load %arg14[%c0_42, %c0_43] : memref<128x512xbf16, #tpu.memory_space<vmem>>, vector<128x512xbf16>
    %cst_44 = arith.constant dense<0.000000e+00> : vector<8x512xf32>
    %96 = tpu.matmul %94, %95, %cst_44 {dimension_numbers = #tpu.dot_dimension_numbers<[1], [0], [0], [1], [0, 0, 1, 1], [], []>} : vector<8x128xbf16>, vector<128x512xbf16>, vector<8x512xf32> -> vector<8x512xf32>
    %97 = arith.truncf %93 : vector<8x128xf32> to vector<8x128xbf16>
    %c0_45 = arith.constant 0 : index
    %c0_46 = arith.constant 0 : index
    %98 = vector.load %arg15[%c0_45, %c0_46] : memref<128x512xbf16, #tpu.memory_space<vmem>>, vector<128x512xbf16>
    %cst_47 = arith.constant dense<0.000000e+00> : vector<8x512xf32>
    %99 = tpu.matmul %97, %98, %cst_47 {dimension_numbers = #tpu.dot_dimension_numbers<[1], [0], [0], [1], [0, 0, 1, 1], [], []>} : vector<8x128xbf16>, vector<128x512xbf16>, vector<8x512xf32> -> vector<8x512xf32>
    %100 = arith.addf %96, %99 : vector<8x512xf32>
    %c0_48 = arith.constant 0 : index
    %c0_49 = arith.constant 0 : index
    %101 = vector.load %arg16[%c0_48, %c0_49] : memref<1x512xf32, #tpu.memory_space<vmem>>, vector<1x512xf32>
    %102 = vector.broadcast %101 : vector<1x512xf32> to vector<8x512xf32>
    %103 = arith.addf %100, %102 : vector<8x512xf32>
    %cst_50 = arith.constant 5.000000e-01 : f32
    %104 = vector.broadcast %cst_50 : f32 to vector<8x512xf32>
    %105 = arith.mulf %104, %103 : vector<8x512xf32>
    %cst_51 = arith.constant 4.471500e-02 : f32
    %106 = vector.broadcast %cst_51 : f32 to vector<8x512xf32>
    %107 = arith.mulf %106, %103 : vector<8x512xf32>
    %108 = arith.mulf %107, %103 : vector<8x512xf32>
    %109 = arith.mulf %108, %103 : vector<8x512xf32>
    %110 = arith.addf %103, %109 : vector<8x512xf32>
    %cst_52 = arith.constant 0.797884583 : f32
    %111 = vector.broadcast %cst_52 : f32 to vector<8x512xf32>
    %112 = arith.mulf %111, %110 : vector<8x512xf32>
    %113 = math.tanh %112 : vector<8x512xf32>
    %cst_53 = arith.constant 1.000000e+00 : f32
    %114 = vector.broadcast %cst_53 : f32 to vector<8x512xf32>
    %115 = arith.addf %114, %113 : vector<8x512xf32>
    %116 = arith.mulf %105, %115 : vector<8x512xf32>
    %117 = arith.truncf %116 : vector<8x512xf32> to vector<8x512xbf16>
    %c0_54 = arith.constant 0 : index
    %c0_55 = arith.constant 0 : index
    %118 = vector.load %arg24[%c0_54, %c0_55] : memref<8x512xbf16, #tpu.memory_space<vmem>>, vector<8x512xbf16>
    tpu.vector_store %arg24[%c0_54, %c0_55], %117 {strides = array<i32>} : memref<8x512xbf16, #tpu.memory_space<vmem>>, vector<8x512xbf16>,
    %c0_56 = arith.constant 0 : index
    %c0_57 = arith.constant 0 : index
    %119 = vector.load %arg24[%c0_56, %c0_57] : memref<8x512xbf16, #tpu.memory_space<vmem>>, vector<8x512xbf16>
    %c0_58 = arith.constant 0 : index
    %c0_59 = arith.constant 0 : index
    %120 = vector.load %arg17[%c0_58, %c0_59] : memref<512x256xbf16, #tpu.memory_space<vmem>>, vector<512x256xbf16>
    %cst_60 = arith.constant dense<0.000000e+00> : vector<8x256xf32>
    %121 = tpu.matmul %119, %120, %cst_60 {dimension_numbers = #tpu.dot_dimension_numbers<[1], [0], [0], [1], [0, 0, 1, 1], [], []>} : vector<8x512xbf16>, vector<512x256xbf16>, vector<8x256xf32> -> vector<8x256xf32>
    %c0_61 = arith.constant 0 : index
    %c0_62 = arith.constant 0 : index
    %122 = vector.load %arg18[%c0_61, %c0_62] : memref<1x256xf32, #tpu.memory_space<vmem>>, vector<1x256xf32>
    %123 = vector.broadcast %122 : vector<1x256xf32> to vector<8x256xf32>
    %124 = arith.addf %121, %123 : vector<8x256xf32>
    %cst_63 = arith.constant 5.000000e-01 : f32
    %125 = vector.broadcast %cst_63 : f32 to vector<8x256xf32>
    %126 = arith.mulf %125, %124 : vector<8x256xf32>
    %cst_64 = arith.constant 4.471500e-02 : f32
    %127 = vector.broadcast %cst_64 : f32 to vector<8x256xf32>
    %128 = arith.mulf %127, %124 : vector<8x256xf32>
    %129 = arith.mulf %128, %124 : vector<8x256xf32>
    %130 = arith.mulf %129, %124 : vector<8x256xf32>
    %131 = arith.addf %124, %130 : vector<8x256xf32>
    %cst_65 = arith.constant 0.797884583 : f32
    %132 = vector.broadcast %cst_65 : f32 to vector<8x256xf32>
    %133 = arith.mulf %132, %131 : vector<8x256xf32>
    %134 = math.tanh %133 : vector<8x256xf32>
    %cst_66 = arith.constant 1.000000e+00 : f32
    %135 = vector.broadcast %cst_66 : f32 to vector<8x256xf32>
    %136 = arith.addf %135, %134 : vector<8x256xf32>
    %137 = arith.mulf %126, %136 : vector<8x256xf32>
    %138 = arith.truncf %137 : vector<8x256xf32> to vector<8x256xbf16>
    %c0_67 = arith.constant 0 : index
    %c0_68 = arith.constant 0 : index
    %139 = vector.load %arg19[%c0_67, %c0_68] : memref<256x128xbf16, #tpu.memory_space<vmem>>, vector<256x128xbf16>
    %cst_69 = arith.constant dense<0.000000e+00> : vector<8x128xf32>
    %140 = tpu.matmul %138, %139, %cst_69 {dimension_numbers = #tpu.dot_dimension_numbers<[1], [0], [0], [1], [0, 0, 1, 1], [], []>} : vector<8x256xbf16>, vector<256x128xbf16>, vector<8x128xf32> -> vector<8x128xf32>
    %c0_70 = arith.constant 0 : index
    %c0_71 = arith.constant 0 : index
    %141 = vector.load %arg20[%c0_70, %c0_71] : memref<1x128xf32, #tpu.memory_space<vmem>>, vector<1x128xf32>
    %142 = vector.broadcast %141 : vector<1x128xf32> to vector<8x128xf32>
    %143 = arith.addf %140, %142 : vector<8x128xf32>
    %cst_72 = arith.constant 5.000000e-01 : f32
    %144 = vector.broadcast %cst_72 : f32 to vector<8x128xf32>
    %145 = arith.mulf %144, %143 : vector<8x128xf32>
    %cst_73 = arith.constant 4.471500e-02 : f32
    %146 = vector.broadcast %cst_73 : f32 to vector<8x128xf32>
    %147 = arith.mulf %146, %143 : vector<8x128xf32>
    %148 = arith.mulf %147, %143 : vector<8x128xf32>
    %149 = arith.mulf %148, %143 : vector<8x128xf32>
    %150 = arith.addf %143, %149 : vector<8x128xf32>
    %cst_74 = arith.constant 0.797884583 : f32
    %151 = vector.broadcast %cst_74 : f32 to vector<8x128xf32>
    %152 = arith.mulf %151, %150 : vector<8x128xf32>
    %153 = math.tanh %152 : vector<8x128xf32>
    %cst_75 = arith.constant 1.000000e+00 : f32
    %154 = vector.broadcast %cst_75 : f32 to vector<8x128xf32>
    %155 = arith.addf %154, %153 : vector<8x128xf32>
    %156 = arith.mulf %145, %155 : vector<8x128xf32>
    %157 = arith.truncf %156 : vector<8x128xf32> to vector<8x128xbf16>
    %c0_76 = arith.constant 0 : index
    %c0_77 = arith.constant 0 : index
    %158 = vector.load %arg21[%c0_76, %c0_77] : memref<128x128xbf16, #tpu.memory_space<vmem>>, vector<128x128xbf16>
    %cst_78 = arith.constant dense<0.000000e+00> : vector<8x128xf32>
    %159 = tpu.matmul %157, %158, %cst_78 {dimension_numbers = #tpu.dot_dimension_numbers<[1], [0], [0], [1], [0, 0, 1, 1], [], []>} : vector<8x128xbf16>, vector<128x128xbf16>, vector<8x128xf32> -> vector<8x128xf32>
    %c0_79 = arith.constant 0 : index
    %c0_80 = arith.constant 0 : index
    %160 = vector.load %arg22[%c0_79, %c0_80] : memref<1x128xf32, #tpu.memory_space<vmem>>, vector<1x128xf32>
    %161 = vector.broadcast %160 : vector<1x128xf32> to vector<8x128xf32>
    %162 = arith.addf %159, %161 : vector<8x128xf32>
    %c0_81 = arith.constant 0 : index
    %c0_82 = arith.constant 0 : index
    %163 = vector.load %arg23[%c0_81, %c0_82] : memref<8x128xf32, #tpu.memory_space<vmem>>, vector<8x128xf32>
    tpu.vector_store %arg23[%c0_81, %c0_82], %162 {strides = array<i32>} : memref<8x128xf32, #tpu.memory_space<vmem>>, vector<8x128xf32>,
    return
  }
  func.func @transform_0(%arg0: i32) -> i32 {
    %c0_i32 = arith.constant 0 : i32
    %c0_i32_0 = arith.constant 0 : i32
    return %c0_i32 : i32
  }
  func.func @transform_1(%arg0: i32) -> (i32, i32) {
    %c0_i32 = arith.constant 0 : i32
    %c0_i32_0 = arith.constant 0 : i32
    return %arg0, %c0_i32 : i32, i32
  }
  func.func @transform_2(%arg0: i32) -> (i32, i32) {
    %c0_i32 = arith.constant 0 : i32
    %c0_i32_0 = arith.constant 0 : i32
    return %arg0, %c0_i32 : i32, i32
  }
  func.func @transform_3(%arg0: i32) -> (i32, i32) {
    %c0_i32 = arith.constant 0 : i32
    %c0_i32_0 = arith.constant 0 : i32
    return %arg0, %c0_i32 : i32, i32
  }
  func.func @transform_4(%arg0: i32) -> (i32, i32) {
    %c0_i32 = arith.constant 0 : i32
    %c0_i32_0 = arith.constant 0 : i32
    %c0_i32_1 = arith.constant 0 : i32
    return %c0_i32, %c0_i32_0 : i32, i32
  }
  func.func @transform_5(%arg0: i32) -> (i32, i32) {
    %c0_i32 = arith.constant 0 : i32
    %c0_i32_0 = arith.constant 0 : i32
    %c0_i32_1 = arith.constant 0 : i32
    return %c0_i32, %c0_i32_0 : i32, i32
  }
  func.func @transform_6(%arg0: i32) -> (i32, i32) {
    %c0_i32 = arith.constant 0 : i32
    %c0_i32_0 = arith.constant 0 : i32
    %c0_i32_1 = arith.constant 0 : i32
    return %c0_i32, %c0_i32_0 : i32, i32
  }
  func.func @transform_7(%arg0: i32) -> (i32, i32) {
    %c0_i32 = arith.constant 0 : i32
    %c0_i32_0 = arith.constant 0 : i32
    %c0_i32_1 = arith.constant 0 : i32
    return %c0_i32, %c0_i32_0 : i32, i32
  }
  func.func @transform_8(%arg0: i32) -> (i32, i32) {
    %c0_i32 = arith.constant 0 : i32
    %c0_i32_0 = arith.constant 0 : i32
    %c0_i32_1 = arith.constant 0 : i32
    return %c0_i32, %c0_i32_0 : i32, i32
  }
  func.func @transform_9(%arg0: i32) -> (i32, i32) {
    %c0_i32 = arith.constant 0 : i32
    %c0_i32_0 = arith.constant 0 : i32
    %c0_i32_1 = arith.constant 0 : i32
    return %c0_i32, %c0_i32_0 : i32, i32
  }
  func.func @transform_10(%arg0: i32) -> (i32, i32) {
    %c0_i32 = arith.constant 0 : i32
    %c0_i32_0 = arith.constant 0 : i32
    %c0_i32_1 = arith.constant 0 : i32
    return %c0_i32, %c0_i32_0 : i32, i32
  }
  func.func @transform_11(%arg0: i32) -> (i32, i32) {
    %c0_i32 = arith.constant 0 : i32
    %c0_i32_0 = arith.constant 0 : i32
    %c0_i32_1 = arith.constant 0 : i32
    return %c0_i32, %c0_i32_0 : i32, i32
  }
  func.func @transform_12(%arg0: i32) -> (i32, i32) {
    %c0_i32 = arith.constant 0 : i32
    %c0_i32_0 = arith.constant 0 : i32
    %c0_i32_1 = arith.constant 0 : i32
    return %c0_i32, %c0_i32_0 : i32, i32
  }
  func.func @transform_13(%arg0: i32) -> (i32, i32) {
    %c0_i32 = arith.constant 0 : i32
    %c0_i32_0 = arith.constant 0 : i32
    %c0_i32_1 = arith.constant 0 : i32
    return %c0_i32, %c0_i32_0 : i32, i32
  }
  func.func @transform_14(%arg0: i32) -> (i32, i32) {
    %c0_i32 = arith.constant 0 : i32
    %c0_i32_0 = arith.constant 0 : i32
    %c0_i32_1 = arith.constant 0 : i32
    return %c0_i32, %c0_i32_0 : i32, i32
  }
  func.func @transform_15(%arg0: i32) -> (i32, i32) {
    %c0_i32 = arith.constant 0 : i32
    %c0_i32_0 = arith.constant 0 : i32
    %c0_i32_1 = arith.constant 0 : i32
    return %c0_i32, %c0_i32_0 : i32, i32
  }
  func.func @transform_16(%arg0: i32) -> (i32, i32) {
    %c0_i32 = arith.constant 0 : i32
    %c0_i32_0 = arith.constant 0 : i32
    %c0_i32_1 = arith.constant 0 : i32
    return %c0_i32, %c0_i32_0 : i32, i32
  }
  func.func @transform_17(%arg0: i32) -> (i32, i32) {
    %c0_i32 = arith.constant 0 : i32
    %c0_i32_0 = arith.constant 0 : i32
    %c0_i32_1 = arith.constant 0 : i32
    return %c0_i32, %c0_i32_0 : i32, i32
  }
  func.func @transform_18(%arg0: i32) -> (i32, i32) {
    %c0_i32 = arith.constant 0 : i32
    %c0_i32_0 = arith.constant 0 : i32
    %c0_i32_1 = arith.constant 0 : i32
    return %c0_i32, %c0_i32_0 : i32, i32
  }
  func.func @transform_19(%arg0: i32) -> (i32, i32) {
    %c0_i32 = arith.constant 0 : i32
    %c0_i32_0 = arith.constant 0 : i32
    %c0_i32_1 = arith.constant 0 : i32
    return %c0_i32, %c0_i32_0 : i32, i32
  }
  func.func @transform_20(%arg0: i32) -> (i32, i32) {
    %c0_i32 = arith.constant 0 : i32
    %c0_i32_0 = arith.constant 0 : i32
    %c0_i32_1 = arith.constant 0 : i32
    return %c0_i32, %c0_i32_0 : i32, i32
  }
  func.func @transform_21(%arg0: i32) -> (i32, i32) {
    %c0_i32 = arith.constant 0 : i32
    %c0_i32_0 = arith.constant 0 : i32
    %c0_i32_1 = arith.constant 0 : i32
    return %c0_i32, %c0_i32_0 : i32, i32
  }
  func.func @transform_22(%arg0: i32) -> (i32, i32) {
    %c0_i32 = arith.constant 0 : i32
    %c0_i32_0 = arith.constant 0 : i32
    return %arg0, %c0_i32 : i32, i32
  }
}

</mosaic_0001>

<bundles_post_ra>
// kernel: tpu_custom_call.1
= control target key start
LH: loop header
LB: loop body
LE: loop exit
PB: predicated region body
PF: predicated region fallthrough
CT: control target
= control target key end

     0   :  { %s3932_s0 = inlined_call_operand.<no memory space> [shape: f32[1], index: 0, kind: input, shape index: {}]   ;;  %s3933_s1 = inlined_call_operand.hbm [shape: bf16[8,256], index: 1, kind: input, shape index: {}]   ;;  %s3934_s2 = inlined_call_operand.hbm [shape: bf16[8,128], index: 2, kind: input, shape index: {}]   ;;  %s3935_s3 = inlined_call_operand.hbm [shape: bf16[8,256], index: 3, kind: input, shape index: {}]   ;;  %s3936_s4 = inlined_call_operand.vmem [shape: f32[1,256], index: 4, kind: input, shape index: {}]   ;;  %s3937_s5 = inlined_call_operand.hbm [shape: f32[1,256], index: 5, kind: input, shape index: {}]   ;;  %s3938_s6 = inlined_call_operand.hbm [shape: f32[1,128], index: 6, kind: input, shape index: {}]   ;;  %s3939_s7 = inlined_call_operand.hbm [shape: f32[1,128], index: 7, kind: input, shape index: {}]   ;;  %s3940_s8 = inlined_call_operand.vmem [shape: f32[1,256], index: 8, kind: input, shape index: {}]   ;;  %s3941_s9 = inlined_call_operand.hbm [shape: f32[1,256], index: 9, kind: input, shape index: {}]   ;;  %s3942_s10 = inlined_call_operand.hbm [shape: bf16[256,128], index: 10, kind: input, shape index: {}]   ;;  %s3943_s11 = inlined_call_operand.hbm [shape: bf16[128,128], index: 11, kind: input, shape index: {}]   ;;  %s3944_s12 = inlined_call_operand.hbm [shape: bf16[256,128], index: 12, kind: input, shape index: {}]   ;;  %s3945_s13 = inlined_call_operand.hbm [shape: bf16[128,512], index: 13, kind: input, shape index: {}]   ;;  %s3946_s14 = inlined_call_operand.hbm [shape: bf16[128,512], index: 14, kind: input, shape index: {}]   ;;  %s3947_s15 = inlined_call_operand.vmem [shape: f32[1,512], index: 15, kind: input, shape index: {}]   ;;  %s3948_s16 = inlined_call_operand.hbm [shape: bf16[512,256], index: 16, kind: input, shape index: {}]   ;;  %s3949_s17 = inlined_call_operand.vmem [shape: f32[1,256], index: 17, kind: input, shape index: {}]   ;;  %s3950_s18 = inlined_call_operand.hbm [shape: bf16[256,128], index: 18, kind: input, shape index: {}]   ;;  %s3951_s19 = inlined_call_operand.vmem [shape: f32[1,128], index: 19, kind: input, shape index: {}]   ;;  %s3952_s20 = inlined_call_operand.hbm [shape: bf16[128,128], index: 20, kind: input, shape index: {}]   ;;  %s3953_s21 = inlined_call_operand.vmem [shape: f32[1,128], index: 21, kind: input, shape index: {}]   ;;  %s3954_s22 = inlined_call_operand.hbm [shape: f32[8,128], index: 22, kind: output, shape index: {}]  }
   0x1   :  { %3956 = sst [smem:[#allocation38_spill]] %s3932_s0 }
   0x2   :  { %3957 = sst [smem:[#allocation39_spill]] %s3933_s1 }
   0x3   :  { %3958 = sst [smem:[#allocation40_spill]] %s3934_s2 }
   0x4   :  { %3959 = sst [smem:[#allocation41_spill]] %s3935_s3 }
   0x5   :  { %3960 = sst [smem:[#allocation42_spill]] %s3936_s4 }
   0x6   :  { %3961 = sst [smem:[#allocation43_spill]] %s3937_s5 }
   0x7   :  { %3962 = sst [smem:[#allocation44_spill]] %s3938_s6 }
   0x8   :  { %3963 = sst [smem:[#allocation45_spill]] %s3954_s22 }
   0x9   :  { %28 = vsyncpa [#allocation5], 0 }
   0xa   :  { %29 = vsyncpa [#allocation8], 0 }
   0xb   :  { %30 = vsyncpa [#allocation11], 0 }
   0xc   :  { %31 = vsyncpa [#allocation14], 0 }
   0xd   :  { %32 = vsyncpa [#allocation17], 0 }
   0xe   :  { %33 = vsyncpa [#allocation20], 0 }
   0xf   :  { %34 = vsyncpa [#allocation23], 0 }
  0x10   :  { %35 = vsyncpa [#allocation26], 0  ;;  %s3964_s29 = sld [smem:[#allocation40_spill]] }
  0x16   :  { %s55_s30 = sshll.u32 %s3964_s29, 4  ;;  %s56_s30 = int_to_ptr.hbm [resolvable:$true] %s55_s30 }
  0x17   :  { %36 = vsyncpa [#allocation6], 0  ;;  %s3585_s4 = smov [#allocation7]   ;;  %s3965_s5 = sld [smem:[#allocation43_spill]] }
  0x18   :  { %s57_s0 = sshll.u32 %s3585_s4, 4  ;;  %s3586_s6 = smov [#allocation10]   ;;  %s58_s0 = int_to_ptr.vmem [resolvable:$true] %s57_s0 }
  0x19   :  { %60 = dma.hbm_to_vmem [thread:$0]  %s56_s30, 64, %s58_s0, [#allocation8]  }
  0x1a   :  { %s81_s25 = sshll.u32 %s3586_s6, 4  ;;  %s101_s27 = sshll.u32 %s3939_s7, 4  ;;  %s82_s25 = int_to_ptr.vmem [resolvable:$true] %s81_s25  ;;  %s102_s27 = int_to_ptr.hbm [resolvable:$true] %s101_s27 }
  0x1b   :  { %s124_s29 = sshll.u32 %s3942_s10, 4  ;;  %s3587_s4 = smov [#allocation13]   ;;  %s125_s29 = int_to_ptr.hbm [resolvable:$true] %s124_s29 }
  0x1c   :  { %s103_s22 = sshll.u32 %s3587_s4, 4  ;;  %s3588_s30 = smov [#allocation16]   ;;  %s104_s22 = int_to_ptr.vmem [resolvable:$true] %s103_s22 }
  0x1d   :  { %s79_s24 = sshll.u32 %s3965_s5, 4  ;;  %s126_s0 = sshll.u32 %s3588_s30, 4  ;;  %s80_s24 = int_to_ptr.hbm [resolvable:$true] %s79_s24  ;;  %s127_s0 = int_to_ptr.vmem [resolvable:$true] %s126_s0 }
  0x1e   :  { %84 = dma.hbm_to_vmem [thread:$0]  %s80_s24, 32, %s82_s25, [#allocation11]  }
  0x1f   :  { %106 = dma.hbm_to_vmem [thread:$0]  %s102_s27, 16, %s104_s22, [#allocation14]  }
  0x20   :  { %s3589_s23 = smov 64   ;;  %s3590_s1 = smov 4  }
  0x21   :  { %132 = dma.hbm_to_vmem [thread:$0]  %s125_s29, 2048, %s127_s0, [#allocation17], %s3589_s23, %s3589_s23, %s3590_s1  }
  0x22   :  { %s150_s24 = sshll.u32 %s3944_s12, 4  ;;  %s3591_s10 = smov [#allocation19]   ;;  %s151_s24 = int_to_ptr.hbm [resolvable:$true] %s150_s24 }
  0x23   :  { %s152_s6 = sshll.u32 %s3591_s10, 4  ;;  %s176_s26 = sshll.u32 %s3946_s14, 4  ;;  %s153_s6 = int_to_ptr.vmem [resolvable:$true] %s152_s6  ;;  %s177_s26 = int_to_ptr.hbm [resolvable:$true] %s176_s26 }
  0x24   :  { %158 = dma.hbm_to_vmem [thread:$0]  %s151_s24, 2048, %s153_s6, [#allocation20], %s3589_s23, %s3589_s23, %s3590_s1  }
  0x25   :  { %s3592_s2 = smov [#allocation22]   ;;  %s206_s29 = sshll.u32 %s3950_s18, 4  ;;  %s207_s29 = int_to_ptr.hbm [resolvable:$true] %s206_s29 }
  0x26   :  { %s178_s27 = sshll.u32 %s3592_s2, 4  ;;  %s3593_s12 = smov 256   ;;  %s179_s27 = int_to_ptr.vmem [resolvable:$true] %s178_s27 }
  0x27   :  { %s3594_s4 = smov 16   ;;  %s3966_s7 = sld [smem:[#allocation39_spill]] }
  0x28   :  { %184 = dma.hbm_to_vmem [thread:$0]  %s177_s26, 4096, %s179_s27, [#allocation23], %s3593_s12, %s3593_s12, %s3594_s4  }
  0x29   :  { %s3595_s14 = smov [#allocation25]   ;;  %s3596_s18 = smov [#allocation4]  }
  0x2a   :  { %s208_s24 = sshll.u32 %s3595_s14, 4  ;;  %s46_s10 = sshll.u32 %s3596_s18, 4  ;;  %s209_s24 = int_to_ptr.vmem [resolvable:$true] %s208_s24  ;;  %s47_s10 = int_to_ptr.vmem [resolvable:$true] %s46_s10 }
  0x2b   :  { %214 = dma.hbm_to_vmem [thread:$0]  %s207_s29, 2048, %s209_s24, [#allocation26], %s3589_s23, %s3589_s23, %s3590_s1  }
  0x2c   :  { %s3967_s25 = sld [smem:[#allocation41_spill]]  ;;  %s3597_s30 = smov [#allocation9]  }
  0x2d   :  { %s44_s5 = sshll.u32 %s3966_s7, 4  ;;  %s3968_s3 = sld [smem:[#allocation44_spill]]  ;;  %s45_s5 = int_to_ptr.hbm [resolvable:$true] %s44_s5 }
  0x2e   :  { %49 = dma.hbm_to_vmem [thread:$0]  %s45_s5, 128, %s47_s10, [#allocation5]  }
  0x2f   :  { %s68_s0 = sshll.u32 %s3597_s30, 4  ;;  %s3598_s7 = smov [#allocation12]   ;;  %s69_s0 = int_to_ptr.vmem [resolvable:$true] %s68_s0 }
  0x30   :  { %s92_s29 = sshll.u32 %s3598_s7, 4  ;;  %s114_s18 = sshll.u32 %s3941_s9, 4  ;;  %s93_s29 = int_to_ptr.vmem [resolvable:$true] %s92_s29  ;;  %s115_s18 = int_to_ptr.hbm [resolvable:$true] %s114_s18 }
  0x31   :  { %s137_s10 = sshll.u32 %s3943_s11, 4  ;;  %s3599_s22 = smov [#allocation15]   ;;  %s138_s10 = int_to_ptr.hbm [resolvable:$true] %s137_s10 }
  0x32   :  { %s66_s2 = sshll.u32 %s3967_s25, 4  ;;  %s116_s25 = sshll.u32 %s3599_s22, 4  ;;  %s67_s2 = int_to_ptr.hbm [resolvable:$true] %s66_s2  ;;  %s117_s25 = int_to_ptr.vmem [resolvable:$true] %s116_s25 }
  0x33   :  { %s90_s28 = sshll.u32 %s3968_s3, 4  ;;  %s3600_s26 = smov [#allocation18]   ;;  %s91_s28 = int_to_ptr.hbm [resolvable:$true] %s90_s28 }
  0x34   :  { %71 = dma.hbm_to_vmem [thread:$0]  %s67_s2, 128, %s69_s0, [#allocation8]  }
  0x35   :  { %95 = dma.hbm_to_vmem [thread:$0]  %s91_s28, 16, %s93_s29, [#allocation11]  }
  0x36   :  { %119 = dma.hbm_to_vmem [thread:$0]  %s115_s18, 32, %s117_s25, [#allocation14]  }
  0x37   :  { %s139_s2 = sshll.u32 %s3600_s26, 4  ;;  %s163_s30 = sshll.u32 %s3945_s13, 4  ;;  %s140_s2 = int_to_ptr.vmem [resolvable:$true] %s139_s2  ;;  %s164_s30 = int_to_ptr.hbm [resolvable:$true] %s163_s30 }
  0x38   :  { %145 = dma.hbm_to_vmem [thread:$0]  %s138_s10, 1024, %s140_s2, [#allocation17], %s3589_s23, %s3589_s23, %s3590_s1  }
  0x39   :  { %s191_s11 = sshll.u32 %s3948_s16, 4  ;;  %s3601_s0 = smov [#allocation21]   ;;  %s192_s11 = int_to_ptr.hbm [resolvable:$true] %s191_s11 }
  0x3a   :  { %s165_s7 = sshll.u32 %s3601_s0, 4  ;;  %s3602_s29 = smov [#allocation24]   ;;  %s166_s7 = int_to_ptr.vmem [resolvable:$true] %s165_s7 }
  0x3b   :  { %171 = dma.hbm_to_vmem [thread:$0]  %s164_s30, 4096, %s166_s7, [#allocation20], %s3593_s12, %s3593_s12, %s3594_s4  }
  0x3c   :  { %s193_s13 = sshll.u32 %s3602_s29, 4  ;;  %s3603_s14 = smov 128   ;;  %s194_s13 = int_to_ptr.vmem [resolvable:$true] %s193_s13 }
  0x3d   :  { %s3604_s24 = smov 8   ;;  %s221_s5 = sshll.u32 %s3952_s20, 4  ;;  %s222_s5 = int_to_ptr.hbm [resolvable:$true] %s221_s5 }
  0x3e   :  { %199 = dma.hbm_to_vmem [thread:$0]  %s192_s11, 8192, %s194_s13, [#allocation23], %s3603_s14, %s3603_s14, %s3604_s24  }
  0x3f   :  { %s3605_s16 = smov [#allocation27]  }
  0x40   :  { %s223_s10 = sshll.u32 %s3605_s16, 4  ;;  %s224_s10 = int_to_ptr.vmem [resolvable:$true] %s223_s10 }
  0x41   :  { %229 = dma.hbm_to_vmem [thread:$0]  %s222_s5, 1024, %s224_s10, [#allocation26], %s3589_s23, %s3589_s23, %s3590_s1  }
  0x42   :  { %3567 = dma.done.wait [#allocation5], 128  }
  0x43   :  { %3568 = vsyncadd [#allocation5], 4294967168 }
  0x44   :  { %3569 = dma.done.wait [#allocation8], 192  }
  0x45   :  { %3570 = vsyncadd [#allocation8], 4294967104 }
  0x46   :  { %3571 = dma.done.wait [#allocation11], 48  }
  0x47   :  { %3572 = vsyncadd [#allocation11], 4294967248 }
  0x48   :  { %3573 = dma.done.wait [#allocation14], 48  }
  0x49   :  { %3574 = vsyncadd [#allocation14], 4294967248 }
  0x4a   :  { %3575 = dma.done.wait [#allocation17], 3072  }
  0x4b   :  { %3576 = vsyncadd [#allocation17], 4294964224 }
  0x4c   :  { %3577 = dma.done.wait [#allocation20], 6144  }
  0x4d   :  { %3578 = vsyncadd [#allocation20], 4294961152 }
  0x4e   :  { %3579 = dma.done.wait [#allocation23], 12288  }
  0x4f   :  { %3580 = vsyncadd [#allocation23], 4294955008 }
  0x50   :  { %3581 = dma.done.wait [#allocation26], 3072  }
  0x51   :  { %3582 = vsyncadd [#allocation26], 4294964224  ;;  %v293_v0 = vld [vmem:[#allocation4] sm:$0xff]  ;;  %v500_v1 = vld [vmem:[#allocation7] sm:$0xf]  ;;  %v3606_v10 = vmov 256.0  }
  0x52   :  { %v294_v2 = vunpack.c.l.bf16 %v293_v0  ;;  %v295_v3 = vunpack.c.h.bf16 %v293_v0  ;;  %v617_v4 = vld [vmem:[#allocation9] sm:$0xff]  ;;  %v501_v5 = vunpack.c.l.bf16 %v500_v1  ;;  %3159 = vrcp.f32 %v3606_v10  ;;  %v2946_v17 = vld [vmem:[#allocation16 + $0x38] sm:$0xff]  ;;  %v2944_v24 = vld [vmem:[#allocation16 + $0x28] sm:$0xff]  ;;  %s3969_s1 = sld [smem:[#allocation42_spill]] }
  0x53   :  { %v618_v7 = vunpack.c.l.bf16 %v617_v4  ;;  %v619_v8 = vunpack.c.h.bf16 %v617_v4  ;;  %v3607_v13 = vmov 128.0   ;;  %v2954_v20 = vld [vmem:[#allocation16 + $0x78] sm:$0xff]  ;;  %474 = vmatpush.bf16.msra.mxu0 %v2946_v17  ;;  %v2945_v21 = vld [vmem:[#allocation16 + $0x30] sm:$0xff]  ;;  %v2943_v30 = vld [vmem:[#allocation16 + $0x20] sm:$0xff]  ;;  %s3970_s25 = sld [smem:[#allocation38_spill]] }
  0x54   :  { %v298_v6 = vadd.f32 %v295_v3, %v294_v2  ;;  %504 = vadd.xlane.f32.xlu1 %v501_v5  ;;  %3161 = vrcp.f32 %v3607_v13  ;;  %487 = vmatpush.bf16.msra.mxu1 %v2954_v20  ;;  %v2942_v47 = vld [vmem:[#allocation16 + $0x18] sm:$0xff]  ;;  %v2953_v48 = vld [vmem:[#allocation16 + $0x70] sm:$0xff]  ;;  %v2952_v50 = vld [vmem:[#allocation16 + $0x68] sm:$0xff]  ;;  %s3971_s14 = sld [smem:[#allocation45_spill]] }
  0x55   :  { %v622_v9 = vadd.f32 %v619_v8, %v618_v7  ;;  %v2941_v49 = vld [vmem:[#allocation16 + $0x10] sm:$0xff]  ;;  %v2970_v51 = vld [vmem:[#allocation19 + $0x38] sm:$0xff]  ;;  %v2940_v52 = vld [vmem:[#allocation16 + $0x8] sm:$0xff] }
  0x56   :  { %299 = vadd.xlane.f32.xlu0 %v298_v6  ;;  %791 = vmatpush.bf16.msra.mxu3 %v2970_v51  ;;  %v2951_v53 = vld [vmem:[#allocation16 + $0x60] sm:$0xff]  ;;  %v2969_v54 = vld [vmem:[#allocation19 + $0x30] sm:$0xff]  ;;  %v2950_v56 = vld [vmem:[#allocation16 + $0x58] sm:$0xff] }
  0x57   :  { %475 = vmatpush.bf16.msra.mxu0 %v2945_v21  ;;  %v2939_v55 = vld [vmem:[#allocation16] sm:$0xff]  ;;  %v2962_v57 = vld [vmem:[#allocation18 + $0x38] sm:$0xff]  ;;  %v2968_v58 = vld [vmem:[#allocation19 + $0x28] sm:$0xff] }
  0x58   :  { %v3160_v11 = vpop.eup %3159  ;;  %488 = vmatpush.bf16.msra.mxu1 %v2953_v48  ;;  %v2978_v59 = vld [vmem:[#allocation19 + $0x78] sm:$0xff]  ;;  %604 = vmatpush.bf16.msra.mxu2 %v2962_v57  ;;  %v2949_v60 = vld [vmem:[#allocation16 + $0x50] sm:$0xff]  ;;  %v2967_v62 = vld [vmem:[#allocation19 + $0x20] sm:$0xff] }
  0x59   :  { %v302_v12 = vmul.f32 256.0, %v3160_v11  ;;  %vm306_vm0 = vweird.f32 %v3160_v11  ;;  %v2961_v61 = vld [vmem:[#allocation18 + $0x30] sm:$0xff]  ;;  %v2948_v0 = vld [vmem:[#allocation16 + $0x48] sm:$0xff]  ;;  %v2947_v4 = vld [vmem:[#allocation16 + $0x40] sm:$0xff]  ;;  %s819_s26 = ssub.f32 1.0, %s3970_s25 }
  0x5a   :  { %v3162_v16 = vpop.eup %3161  ;;  %792 = vmatpush.bf16.msra.mxu3 %v2969_v54  ;;  %v2977_v63 = vld [vmem:[#allocation19 + $0x70] sm:$0xff]  ;;  %v2960_v1 = vld [vmem:[#allocation18 + $0x28] sm:$0xff]  ;;  %v2974_v10 = vld [vmem:[#allocation19 + $0x58] sm:$0xff]  ;;  %s2154_s24 = sshll.u32 %s3971_s14, 4  ;;  %s2155_s24 = int_to_ptr.hbm [resolvable:$true] %s2154_s24 }
  0x5b   :  { %v303_v14 = vsub.f32 1.0, %v302_v12  ;;  %v507_v19 = vmul.f32 128.0, %v3162_v16  ;;  %476 = vmatpush.bf16.msra.mxu0 %v2944_v24  ;;  %vm511_vm1 = vweird.f32 %v3162_v16  ;;  %v2965_v6 = vld [vmem:[#allocation19 + $0x10] sm:$0xff]  ;;  %v2956_v17 = vld [vmem:[#allocation18 + $0x8] sm:$0xff]  ;;  %v2955_v20 = vld [vmem:[#allocation18] sm:$0xff] }
  0x5c   :  { %489 = vmatpush.bf16.msra.mxu1 %v2952_v50  ;;  %605 = vmatpush.bf16.msra.mxu2 %v2961_v61  ;;  %v2957_v13 = vld [vmem:[#allocation18 + $0x10] sm:$0xff]  ;;  %v2429_v50 = vld [vmem:[#allocation22 + $0xc0] sm:$0xf] }
  0x5d   :  { %v304_v15 = vmul.f32 %v3160_v11, %v303_v14  ;;  %v508_v23 = vsub.f32 1.0, %v507_v19  ;;  %v2963_v14 = vld [vmem:[#allocation19] sm:$0xff]  ;;  %v3037_v51 = vld [vmem:[#allocation22 + $0xcc] sm:$0xf0] }
  0x5e   :  { %623 = vadd.xlane.f32.xlu0 %v622_v9  ;;  %793 = vmatpush.bf16.msra.mxu3 %v2968_v58  ;;  %v2964_v9 = vld [vmem:[#allocation19 + $0x8] sm:$0xff]  ;;  %v2430_v54 = vor.u32 %v3037_v51, %v2429_v50 }
  0x5f   :  { %v305_v18 = vadd.f32 %v3160_v11, %v304_v15  ;;  %v509_v27 = vmul.f32 %v3162_v16, %v508_v23  ;;  %477 = vmatpush.bf16.msra.mxu0 %v2943_v30  ;;  %v2973_v15 = vld [vmem:[#allocation19 + $0x50] sm:$0xff]  ;;  %v2971_v23 = vld [vmem:[#allocation19 + $0x40] sm:$0xff] }
  0x60   :  { %490 = vmatpush.bf16.msra.mxu1 %v2951_v53  ;;  %606 = vmatpush.bf16.msra.mxu2 %v2960_v1  ;;  %v296_v30 = vld [vmem:[%s3969_s1] sm:$0x3] }
  0x61   :  { %v3790_v22 = vsel %vm306_vm0, %v3160_v11, %v305_v18  ;;  %v510_v33 = vadd.f32 %v3162_v16, %v509_v27  ;;  %v2972_v18 = vld [vmem:[#allocation19 + $0x48] sm:$0xff]  ;;  %v332_v48 = vperm.slane %v296_v30, 1 }
  0x62   :  { %794 = vmatpush.bf16.msra.mxu3 %v2967_v62 }
  0x63   :  { %v3802_v37 = vsel %vm511_vm1, %v3162_v16, %v510_v33  ;;  %478 = vmatpush.bf16.msra.mxu0 %v2942_v47  ;;  %v3039_v33 = vld [vmem:[#allocation22 + $0xe4] sm:$0xf] }
  0x64   :  { %491 = vmatpush.bf16.msra.mxu1 %v2950_v56 }
  0x67   :  { %479 = vmatpush.bf16.msra.mxu0 %v2941_v49 }
  0x68   :  { %492 = vmatpush.bf16.msra.mxu1 %v2949_v60  ;;  %v3038_v60 = vld [vmem:[#allocation22 + $0xd4] sm:$0xf0] }
  0x6b   :  { %480 = vmatpush.bf16.msra.mxu0 %v2940_v52 }
  0x6c   :  { %493 = vmatpush.bf16.msra.mxu1 %v2948_v0  ;;  %v2413_v0 = vld [vmem:[#allocation22 + $0xa0] sm:$0xf] }
  0x6f   :  { %481 = vmatpush.bf16.msra.mxu0 %v2939_v55  ;;  %v3035_v55 = vld [vmem:[#allocation22 + $0xc4] sm:$0xf] }
  0x70   :  { %494 = vmatpush.bf16.msra.mxu1 %v2947_v4  ;;  %v3031_v4 = vld [vmem:[#allocation22 + $0xa4] sm:$0xf] }
  0x73   :  { %804 = vmatpush.bf16.msrb.mxu0 %v2978_v59  ;;  %v2437_v59 = vld [vmem:[#allocation22 + $0xc8] sm:$0xf] }
  0x77   :  { %805 = vmatpush.bf16.msrb.mxu0 %v2977_v63  ;;  %v2438_v63 = vor.u32 %v3038_v60, %v2437_v59 }
  0xc7   :  { %v505_v38 = vpop.xlane.xlu1 %504 }
  0xc8   :  { %v513_v43 = vmul.f32 %v3802_v37, %v505_v38  ;;  %v2453_v38 = vld [vmem:[#allocation22 + $0xe8] sm:$0xf] }
  0xc9   :  { %v300_v25 = vpop.xlane.xlu0 %299 }
  0xca   :  { %v308_v26 = vmul.f32 %v3790_v22, %v300_v25  ;;  %v3813_v45 = vsub.f32 %v501_v5, %v513_v43  ;;  %v2959_v5 = vld [vmem:[#allocation18 + $0x20] sm:$0xff]  ;;  %v331_v43 = vperm.slane %v296_v30, 0 }
  0xcb   :  { %607 = vmatpush.bf16.msra.mxu2 %v2959_v5  ;;  %v2415_v5 = vld [vmem:[#allocation22 + $0xb0] sm:$0xf0] }
  0xcc   :  { %v3793_v28 = vsub.f32 %v294_v2, %v308_v26  ;;  %v3795_v29 = vsub.f32 %v295_v3, %v308_v26  ;;  %v515_v46 = vmul.f32 %v3813_v45, %v3813_v45  ;;  %v2966_v2 = vld [vmem:[#allocation19 + $0x18] sm:$0xff]  ;;  %v2976_v3 = vld [vmem:[#allocation19 + $0x68] sm:$0xff] }
  0xcd   :  { %795 = vmatpush.bf16.msra.mxu3 %v2966_v2  ;;  %806 = vmatpush.bf16.msrb.mxu0 %v2976_v3  ;;  %v3033_v3 = vld [vmem:[#allocation22 + $0xac] sm:$0xf0] }
  0xce   :  { %v311_v31 = vmul.f32 %v3793_v28, %v3793_v28  ;;  %v312_v32 = vmul.f32 %v3795_v29, %v3795_v29 }
  0xd0   :  { %v313_v34 = vadd.f32 %v312_v32, %v311_v31  ;;  %v2445_v31 = vld [vmem:[#allocation22 + $0xe0] sm:$0xf]  ;;  %v3041_v32 = vld [vmem:[#allocation22 + $0xec] sm:$0xf0] }
  0xd1   :  { %v624_v35 = vpop.xlane.xlu0 %623  ;;  %796 = vmatpush.bf16.msra.mxu3 %v2965_v6 }
  0xd2   :  { %v625_v36 = vmul.f32 %v624_v35, %v3790_v22  ;;  %314 = vadd.xlane.f32.xlu1 %v313_v34  ;;  %v2446_v35 = vor.u32 %v3041_v32, %v2445_v31 }
  0xd4   :  { %v3804_v39 = vsub.f32 %v618_v7, %v625_v36  ;;  %v3806_v40 = vsub.f32 %v619_v8, %v625_v36  ;;  %v2975_v7 = vld [vmem:[#allocation19 + $0x60] sm:$0xff]  ;;  %v2958_v8 = vld [vmem:[#allocation18 + $0x18] sm:$0xff]  ;;  %v2447_v36 = vld [vmem:[#allocation22 + $0xf0] sm:$0xf0]  ;;  %1049 = vmatpush.bf16.msrb.mxu1 %v2446_v35 }
  0xd5   :  { %807 = vmatpush.bf16.msrb.mxu0 %v2975_v7  ;;  %608 = vmatpush.bf16.msra.mxu2 %v2958_v8  ;;  %v3040_v8 = vld [vmem:[#allocation22 + $0xec] sm:$0xf] }
  0xd6   :  { %v628_v41 = vmul.f32 %v3804_v39, %v3804_v39  ;;  %v629_v42 = vmul.f32 %v3806_v40, %v3806_v40  ;;  %797 = vmatpush.bf16.msra.mxu3 %v2964_v9  ;;  %v2414_v9 = vor.u32 %v3033_v3, %v2413_v0 }
  0xd8   :  { %v630_v44 = vadd.f32 %v629_v42, %v628_v41  ;;  %v3826_v42 = vld [vmem:[#allocation10] sm:$0x3]  ;;  %1050 = vmatpush.bf16.msrb.mxu1 %v2430_v54 }
  0xd9   :  { %808 = vmatpush.bf16.msrb.mxu0 %v2974_v10  ;;  %609 = vmatpush.bf16.msra.mxu2 %v2957_v13  ;;  %v338_v61 = vperm.slane %v3826_v42, 0  ;;  %v339_v62 = vperm.slane %v3826_v42, 1  ;;  %v2418_v10 = vor.u32 %v3031_v4, %v2415_v5  ;;  %v3036_v42 = vld [vmem:[#allocation22 + $0xcc] sm:$0xf] }
  0xda   :  { %631 = vadd.xlane.f32.xlu2 %v630_v44  ;;  %798 = vmatpush.bf16.msra.mxu3 %v2963_v14  ;;  %v2450_v44 = vor.u32 %v3039_v33, %v2447_v36  ;;  %v3844_v14 = vld [vmem:[%s3940_s8] sm:$0x3] }
  0xdb   :  { %v649_v54 = vperm.slane %v3844_v14, 1 }
  0xdc   :  { %1051 = vmatpush.bf16.msrb.mxu1 %v2414_v9  ;;  %v3025_v9 = vld [vmem:[#allocation22 + $0x6c] sm:$0xf0] }
  0xdd   :  { %809 = vmatpush.bf16.msrb.mxu0 %v2973_v15  ;;  %610 = vmatpush.bf16.msra.mxu2 %v2956_v17  ;;  %v2455_v15 = vld [vmem:[#allocation22 + $0xf8] sm:$0xf0]  ;;  %v2397_v17 = vld [vmem:[#allocation22 + $0x80] sm:$0xf] }
  0xe1   :  { %810 = vmatpush.bf16.msrb.mxu0 %v2972_v18  ;;  %611 = vmatpush.bf16.msra.mxu2 %v2955_v20  ;;  %v2399_v20 = vld [vmem:[#allocation22 + $0x90] sm:$0xf0] }
  0xe2   :  { %516 = vadd.xlane.f32.xlu2 %v515_v46  ;;  %v3042_v46 = vld [vmem:[#allocation22 + $0xf4] sm:$0xf0] }
  0xe3   :  { %v2454_v49 = vor.u32 %v3042_v46, %v2453_v38 }
  0xe5   :  { %811 = vmatpush.bf16.msrb.mxu0 %v2971_v23  ;;  %1062 = vmatpush.bf16.msrb.mxu2 %v2450_v44 }
  0xe6   :  { %1075 = vmatpush.bf16.msrb.mxu3 %v2454_v49 }
  0xea   :  { %1076 = vmatpush.bf16.msrb.mxu3 %v2438_v63  ;;  %v2407_v63 = vld [vmem:[#allocation22 + $0x98] sm:$0xf0] }
 0x145   :  { %v315_v11 = vpop.xlane.xlu1 %314 }
 0x146   :  { %v316_v12 = vmul.f32 %v315_v11, %v3790_v22  ;;  %v2421_v11 = vld [vmem:[#allocation22 + $0xa8] sm:$0xf] }
 0x148   :  { %v317_v16 = vadd.f32 1e-05, %v316_v12  ;;  %v3034_v12 = vld [vmem:[#allocation22 + $0xb4] sm:$0xf0] }
 0x14a   :  { %3163 = vrsqrt.f32 %v317_v16  ;;  %vm324_vm3 = vweird.f32 %v317_v16 }
 0x14d   :  { %v632_v19 = vpop.xlane.xlu2 %631 }
 0x14e   :  { %v633_v21 = vmul.f32 %v632_v19, %v3790_v22  ;;  %v3029_v19 = vld [vmem:[#allocation22 + $0x8c] sm:$0xf0] }
 0x14f   :  { %v2398_v23 = vor.u32 %v3029_v19, %v2397_v17  ;;  %v2391_v17 = vld [vmem:[#allocation22 + $0x78] sm:$0xf0]  ;;  %v3021_v19 = vld [vmem:[#allocation22 + $0x4c] sm:$0xf0] }
 0x150   :  { %v3164_v24 = vpop.eup %3163  ;;  %v3819_v25 = vadd.f32 1e-05, %v633_v21 }
 0x151   :  { %v319_v26 = vmul.f32 %v3164_v24, %v317_v16  ;;  %vm325_vm2 = vweird.f32 %v3164_v24  ;;  %v2422_v16 = vor.u32 %v3034_v12, %v2421_v11  ;;  %1052 = vmatpush.bf16.msrb.mxu1 %v2398_v23  ;;  %v2383_v12 = vld [vmem:[#allocation22 + $0x70] sm:$0xf0]  ;;  %v2373_v23 = vld [vmem:[#allocation22 + $0x48] sm:$0xf] }
 0x152   :  { %3165 = vrsqrt.f32 %v3819_v25  ;;  %vm326_vm4 = vmor %vm324_vm3, %vm325_vm2  ;;  %vm641_vm6 = vweird.f32 %v3819_v25 }
 0x153   :  { %v320_v27 = vmul.f32 %v3164_v24, %v319_v26  ;;  %v3030_v26 = vld [vmem:[#allocation22 + $0x94] sm:$0xf0]  ;;  %1077 = vmatpush.bf16.msrb.mxu3 %v2422_v16  ;;  %v3024_v16 = vld [vmem:[#allocation22 + $0x6c] sm:$0xf] }
 0x155   :  { %v321_v34 = vmul.f32 0.5, %v320_v27  ;;  %v517_v22 = vpop.xlane.xlu2 %516 }
 0x156   :  { %v518_v41 = vmul.f32 %v517_v22, %v3802_v37  ;;  %v2431_v37 = vld [vmem:[#allocation22 + $0xd0] sm:$0xf0]  ;;  %v2458_v22 = vor.u32 %v3040_v8, %v2455_v15  ;;  %v2381_v8 = vld [vmem:[#allocation22 + $0x60] sm:$0xf] }
 0x157   :  { %v322_v47 = vsub.f32 1.5, %v321_v34  ;;  %v2434_v58 = vor.u32 %v3035_v55, %v2431_v37  ;;  %v621_v34 = vld [vmem:[#allocation15] sm:$0x3]  ;;  %v3032_v37 = vld [vmem:[#allocation22 + $0xac] sm:$0xf]  ;;  %v2382_v11 = vor.u32 %v3025_v9, %v2381_v8 }
 0x158   :  { %v3828_v52 = vpop.eup %3165  ;;  %v3830_v53 = vadd.f32 1e-05, %v518_v41  ;;  %v648_v41 = vperm.slane %v3844_v14, 0  ;;  %v656_v60 = vperm.slane %v621_v34, 1  ;;  %v3026_v14 = vld [vmem:[#allocation22 + $0x74] sm:$0xf0] }
 0x159   :  { %v323_v56 = vmul.f32 %v3164_v24, %v322_v47  ;;  %v636_v57 = vmul.f32 %v3828_v52, %v3819_v25  ;;  %1063 = vmatpush.bf16.msrb.mxu2 %v2434_v58  ;;  %vm642_vm5 = vweird.f32 %v3828_v52  ;;  %v2439_v25 = vld [vmem:[#allocation22 + $0xd8] sm:$0xf0]  ;;  %1053 = vmatpush.bf16.msrb.mxu1 %v2382_v11  ;;  %v2559_v8 = vld [vmem:[#allocation21 + $0xd0] sm:$0xf0]  ;;  %v2565_v9 = vld [vmem:[#allocation21 + $0xc8] sm:$0xf] }
 0x15a   :  { %3167 = vrsqrt.f32 %v3830_v53  ;;  %vm643_vm7 = vmor %vm641_vm6, %vm642_vm5  ;;  %v2442_v50 = vor.u32 %v3036_v42, %v2439_v25  ;;  %vm526_vm9 = vweird.f32 %v3830_v53 }
 0x15b   :  { %v637_v1 = vmul.f32 %v3828_v52, %v636_v57  ;;  %v327_v2 = vsel %vm326_vm4, %v3164_v24, %v323_v56  ;;  %v2405_v24 = vld [vmem:[#allocation22 + $0x88] sm:$0xf]  ;;  %v2423_v56 = vld [vmem:[#allocation22 + $0xb8] sm:$0xf0] }
 0x15c   :  { %v328_v6 = vmul.f32 %v327_v2, %v3793_v28  ;;  %v329_v7 = vmul.f32 %v327_v2, %v3795_v29  ;;  %v3027_v29 = vld [vmem:[#allocation22 + $0x84] sm:$0xf]  ;;  %v2426_v59 = vor.u32 %v3032_v37, %v2423_v56  ;;  %v3156_v2 = vld [vmem:[#allocation13] ss:$0 sm:$0xff]  ;;  %v3014_v37 = vld [vmem:[#allocation22 + $0x14] sm:$0xf0] }
 0x15d   :  { %v638_v13 = vmul.f32 0.5, %v637_v1  ;;  %1064 = vmatpush.bf16.msrb.mxu2 %v2418_v10  ;;  %v2402_v35 = vor.u32 %v3027_v29, %v2399_v20  ;;  %v3023_v10 = vld [vmem:[#allocation22 + $0x64] sm:$0xf]  ;;  %v3012_v56 = vld [vmem:[#allocation22 + $0xc] sm:$0xf] }
 0x15e   :  { %v335_v18 = vmul.f32 %v331_v43, %v328_v6  ;;  %v336_v28 = vmul.f32 %v332_v48, %v329_v7  ;;  %v2406_v43 = vor.u32 %v3030_v26, %v2405_v24  ;;  %v655_v48 = vperm.slane %v621_v34, 0  ;;  %v3019_v29 = vld [vmem:[#allocation22 + $0x44] sm:$0xf]  ;;  %v3022_v24 = vld [vmem:[#allocation22 + $0x54] sm:$0xf0] }
 0x15f   :  { %v639_v21 = vsub.f32 1.5, %v638_v13  ;;  %v2389_v13 = vld [vmem:[#allocation22 + $0x68] sm:$0xf]  ;;  %v2386_v15 = vor.u32 %v3023_v10, %v2383_v12  ;;  %v3017_v34 = vld [vmem:[#allocation22 + $0x2c] sm:$0xf0] }
 0x160   :  { %v3168_v27 = vpop.eup %3167  ;;  %v342_v30 = vadd.f32 %v338_v61, %v335_v18  ;;  %v343_v31 = vadd.f32 %v339_v62, %v336_v28  ;;  %1078 = vmatpush.bf16.msrb.mxu3 %v2406_v43  ;;  %v2394_v18 = vor.u32 %v3024_v16, %v2391_v17  ;;  %v2365_v28 = vld [vmem:[#allocation22 + $0x40] sm:$0xf]  ;;  %v3016_v43 = vld [vmem:[#allocation22 + $0x2c] sm:$0xf]  ;;  %v3006_v10 = vld [vmem:[#allocation21 + $0xd4] sm:$0xf0] }
 0x161   :  { %v640_v32 = vmul.f32 %v3828_v52, %v639_v21  ;;  %v521_v33 = vmul.f32 %v3168_v27, %v3830_v53  ;;  %1065 = vmatpush.bf16.msrb.mxu2 %v2402_v35  ;;  %vm527_vm8 = vweird.f32 %v3168_v27  ;;  %v2366_v20 = vor.u32 %v3021_v19, %v2365_v28  ;;  %v2367_v21 = vld [vmem:[#allocation22 + $0x50] sm:$0xf0]  ;;  %v3001_v16 = vld [vmem:[#allocation21 + $0xac] sm:$0xf0]  ;;  %v2999_v17 = vld [vmem:[#allocation21 + $0xa4] sm:$0xf] }
 0x162   :  { %v344_v36 = vpack.c.bf16 %v342_v30, %v342_v30  ;;  %v345_v38 = vpack.c.bf16 %v343_v31, %v343_v31  ;;  %vm528_vm10 = vmor %vm526_vm9, %vm527_vm8  ;;  %v2370_v26 = vor.u32 %v3019_v29, %v2367_v21  ;;  %v3020_v30 = vld [vmem:[#allocation22 + $0x4c] sm:$0xf]  ;;  %v2375_v31 = vld [vmem:[#allocation22 + $0x58] sm:$0xf0]  ;;  %v2566_v12 = vor.u32 %v3006_v10, %v2565_v9 }
 0x163   :  { %v522_v44 = vmul.f32 %v3168_v27, %v521_v33  ;;  %v644_v46 = vsel %vm643_vm7, %v3828_v52, %v640_v32  ;;  %1054 = vmatpush.bf16.msrb.mxu1 %v2366_v20  ;;  %v2378_v32 = vor.u32 %v3020_v30, %v2375_v31  ;;  %v2349_v33 = vld [vmem:[#allocation22 + $0x20] sm:$0xf]  ;;  %v2543_v28 = vld [vmem:[#allocation21 + $0xb0] sm:$0xf0]  ;;  %v2549_v19 = vld [vmem:[#allocation21 + $0xa8] sm:$0xf] }
 0x164   :  { %482 = vmatmul.bf16.vlgmr.msra.gmra.mxu0 %v344_v36  ;;  %495 = vmatmul.bf16.vlgmr.msra.gmra.mxu1 %v345_v38  ;;  %v645_v47 = vmul.f32 %v644_v46, %v3804_v39  ;;  %v646_v51 = vmul.f32 %v644_v46, %v3806_v40  ;;  %v3155_v39 = vld [vmem:[#allocation12] ss:$0 sm:$0xff]  ;;  %v3028_v40 = vld [vmem:[#allocation22 + $0x8c] sm:$0xf]  ;;  %v2350_v35 = vor.u32 %v3017_v34, %v2349_v33  ;;  %v2351_v36 = vld [vmem:[#allocation22 + $0x30] sm:$0xf0] }
 0x165   :  { %v523_v49 = vmul.f32 0.5, %v522_v44  ;;  %1088 = vmatpush.bf16.msra.mxu0 %v2458_v22  ;;  %v2410_v3 = vor.u32 %v3028_v40, %v2407_v63  ;;  %1066 = vmatpush.bf16.msrb.mxu2 %v2386_v15  ;;  %v3015_v22 = vld [vmem:[#allocation22 + $0x24] sm:$0xf]  ;;  %v2357_v38 = vld [vmem:[#allocation22 + $0x28] sm:$0xf]  ;;  %v2546_v20 = vor.u32 %v2999_v17, %v2543_v28 }
 0x166   :  { %v652_v55 = vmul.f32 %v648_v41, %v645_v47  ;;  %v653_v62 = vmul.f32 %v649_v54, %v646_v51  ;;  %v3018_v41 = vld [vmem:[#allocation22 + $0x34] sm:$0xf0]  ;;  %v2354_v42 = vor.u32 %v3015_v22, %v2351_v36  ;;  %v2359_v44 = vld [vmem:[#allocation22 + $0x38] sm:$0xf0]  ;;  %v2333_v46 = vld [vmem:[#allocation22] sm:$0xf] }
 0x167   :  { %v524_v57 = vsub.f32 1.5, %v523_v49  ;;  %v2358_v25 = vor.u32 %v3018_v41, %v2357_v38  ;;  %1055 = vmatpush.bf16.msrb.mxu1 %v2350_v35  ;;  %v2362_v47 = vor.u32 %v3016_v43, %v2359_v44  ;;  %v3011_v49 = vld [vmem:[#allocation22 + $0x4] sm:$0xf]  ;;  %v2581_v40 = vld [vmem:[#allocation21 + $0xe8] sm:$0xf] }
 0x168   :  { %v659_v52 = vadd.f32 %v655_v48, %v652_v55  ;;  %v660_v5 = vadd.f32 %v656_v60, %v653_v62  ;;  %v3013_v48 = vld [vmem:[#allocation22 + $0xc] sm:$0xf0]  ;;  %v2341_v55 = vld [vmem:[#allocation22 + $0x8] sm:$0xf]  ;;  %v2575_v62 = vld [vmem:[#allocation21 + $0xf0] sm:$0xf0] }
 0x169   :  { %v525_v58 = vmul.f32 %v3168_v27, %v524_v57  ;;  %1089 = vmatpush.bf16.msra.mxu0 %v2442_v50  ;;  %1067 = vmatpush.bf16.msrb.mxu2 %v2370_v26  ;;  %v2335_v50 = vld [vmem:[#allocation22 + $0x10] sm:$0xf0]  ;;  %v2334_v51 = vor.u32 %v3013_v48, %v2333_v46  ;;  %v2342_v57 = vor.u32 %v3014_v37, %v2341_v55  ;;  %v3002_v29 = vld [vmem:[#allocation21 + $0xb4] sm:$0xf0]  ;;  %v2997_v30 = vld [vmem:[#allocation21 + $0x8c] sm:$0xf0] }
 0x16a   :  { %v661_v61 = vpack.c.bf16 %v659_v52, %v659_v52  ;;  %v662_v7 = vpack.c.bf16 %v660_v5, %v660_v5  ;;  %v2338_v54 = vor.u32 %v3011_v49, %v2335_v50  ;;  %v2343_v52 = vld [vmem:[#allocation22 + $0x18] sm:$0xf0]  ;;  %v2557_v5 = vld [vmem:[#allocation21 + $0xc0] sm:$0xf]  ;;  %v2550_v21 = vor.u32 %v3002_v29, %v2549_v19  ;;  %v2995_v31 = vld [vmem:[#allocation21 + $0x84] sm:$0xf] }
 0x16b   :  { %v529_v0 = vsel %vm528_vm10, %v3168_v27, %v525_v58  ;;  %v2374_v27 = vor.u32 %v3022_v24, %v2373_v23  ;;  %v2573_v58 = vld [vmem:[#allocation21 + $0xe0] sm:$0xf]  ;;  %1056 = vmatpush.bf16.msrb.mxu1 %v2334_v51  ;;  %v3000_v23 = vld [vmem:[#allocation21 + $0xac] sm:$0xf]  ;;  %v2551_v24 = vld [vmem:[#allocation21 + $0xb8] sm:$0xf0] }
 0x16c   :  { %799 = vmatmul.bf16.vlgmr.msra.gmra.mxu3 %v661_v61  ;;  %v530_v1 = vmul.f32 %v529_v0, %v3813_v45  ;;  %v2390_v45 = vor.u32 %v3026_v14, %v2389_v13  ;;  %v3007_v61 = vld [vmem:[#allocation21 + $0xe4] sm:$0xf]  ;;  %v3010_v0 = vld [vmem:[#allocation21 + $0xf4] sm:$0xf0]  ;;  %v3004_v13 = vld [vmem:[#allocation21 + $0xcc] sm:$0xf]  ;;  %v2554_v26 = vor.u32 %v3000_v23, %v2551_v24 }
 0x16d   :  { %1090 = vmatpush.bf16.msra.mxu0 %v2426_v59  ;;  %1068 = vmatpush.bf16.msrb.mxu2 %v2354_v42  ;;  %v2346_v59 = vor.u32 %v3012_v56, %v2343_v52  ;;  %v2578_v63 = vor.u32 %v3007_v61, %v2575_v62  ;;  %v2567_v14 = vld [vmem:[#allocation21 + $0xd8] sm:$0xf0]  ;;  %v2527_v33 = vld [vmem:[#allocation21 + $0x90] sm:$0xf0]  ;;  %v2533_v34 = vld [vmem:[#allocation21 + $0x88] sm:$0xf] }
 0x16e   :  { %v534_v4 = vmul.f32 %v3155_v39, %v530_v1  ;;  %1079 = vmatpush.bf16.msrb.mxu3 %v2390_v45  ;;  %v3009_v39 = vld [vmem:[#allocation21 + $0xec] sm:$0xf0]  ;;  %v3008_v1 = vld [vmem:[#allocation21 + $0xec] sm:$0xf]  ;;  %v2570_v15 = vor.u32 %v3004_v13, %v2567_v14  ;;  %v2541_v45 = vld [vmem:[#allocation21 + $0xa0] sm:$0xf]  ;;  %v2530_v35 = vor.u32 %v2995_v31, %v2527_v33  ;;  %v817_v33 = vstv %s3970_s25 }
 0x16f   :  { %v2574_v60 = vor.u32 %v3009_v39, %v2573_v58  ;;  %v2998_v22 = vld [vmem:[#allocation21 + $0x94] sm:$0xf0]  ;;  %v2996_v38 = vld [vmem:[#allocation21 + $0x8c] sm:$0xf]  ;;  %v2535_v41 = vld [vmem:[#allocation21 + $0x98] sm:$0xf0] }
 0x170   :  { %v538_v6 = vadd.f32 %v3156_v2, %v534_v4  ;;  %v2583_v2 = vld [vmem:[#allocation21 + $0xf8] sm:$0xf0]  ;;  %v2534_v36 = vor.u32 %v2998_v22, %v2533_v34  ;;  %v2538_v42 = vor.u32 %v2996_v38, %v2535_v41  ;;  %v2993_v43 = vld [vmem:[#allocation21 + $0x6c] sm:$0xf0]  ;;  %v2991_v44 = vld [vmem:[#allocation21 + $0x64] sm:$0xf] }
 0x171   :  { %1091 = vmatpush.bf16.msra.mxu0 %v2410_v3  ;;  %1069 = vmatpush.bf16.msrb.mxu2 %v2338_v54  ;;  %v2582_v3 = vor.u32 %v3010_v0, %v2581_v40  ;;  %v2586_v4 = vor.u32 %v3008_v1, %v2583_v2  ;;  %v2517_v48 = vld [vmem:[#allocation21 + $0x68] sm:$0xf]  ;;  %v2994_v49 = vld [vmem:[#allocation21 + $0x74] sm:$0xf0]  ;;  %v2992_v54 = vld [vmem:[#allocation21 + $0x6c] sm:$0xf] }
 0x172   :  { %v539_v53 = vpack.c.bf16 %v538_v6, %v538_v6  ;;  %1080 = vmatpush.bf16.msrb.mxu3 %v2374_v27  ;;  %1261 = vmatpush.bf16.msra.mxu1 %v2574_v60  ;;  %v3005_v6 = vld [vmem:[#allocation21 + $0xcc] sm:$0xf0]  ;;  %v2525_v27 = vld [vmem:[#allocation21 + $0x80] sm:$0xf]  ;;  %v2518_v51 = vor.u32 %v2994_v49, %v2517_v48  ;;  %v2519_v55 = vld [vmem:[#allocation21 + $0x78] sm:$0xf0] }
 0x173   :  { %v2493_v37 = vld [vmem:[#allocation21 + $0x40] sm:$0xf]  ;;  %v2522_v56 = vor.u32 %v2992_v54, %v2519_v55  ;;  %v2987_v52 = vld [vmem:[#allocation21 + $0x44] sm:$0xf]  ;;  %v2495_v58 = vld [vmem:[#allocation21 + $0x50] sm:$0xf0] }
 0x174   :  { %612 = vmatmul.bf16.vlgmr.msra.gmra.mxu2 %v539_v53  ;;  %812 = vmatmul.bf16.vlgmr.msrb.gmra.mxu0 %v662_v7  ;;  %v3003_v53 = vld [vmem:[#allocation21 + $0xc4] sm:$0xf]  ;;  %v2558_v7 = vor.u32 %v3005_v6, %v2557_v5  ;;  %v2498_v61 = vor.u32 %v2987_v52, %v2495_v58  ;;  %v2501_v62 = vld [vmem:[#allocation21 + $0x48] sm:$0xf]  ;;  %v2990_v40 = vld [vmem:[#allocation21 + $0x54] sm:$0xf0] }
 0x175   :  { %1092 = vmatpush.bf16.msra.mxu0 %v2394_v18  ;;  %1274 = vmatpush.bf16.msra.mxu2 %v2578_v63  ;;  %v2562_v11 = vor.u32 %v3003_v53, %v2559_v8  ;;  %v2542_v18 = vor.u32 %v3001_v16, %v2541_v45  ;;  %v2988_v63 = vld [vmem:[#allocation21 + $0x4c] sm:$0xf]  ;;  %v2502_v0 = vor.u32 %v2990_v40, %v2501_v62  ;;  %v2503_v1 = vld [vmem:[#allocation21 + $0x58] sm:$0xf0]  ;;  %v2477_v2 = vld [vmem:[#allocation21 + $0x20] sm:$0xf] }
 0x176   :  { %1081 = vmatpush.bf16.msrb.mxu3 %v2358_v25  ;;  %1262 = vmatpush.bf16.msra.mxu1 %v2558_v7  ;;  %v2509_v25 = vld [vmem:[#allocation21 + $0x60] sm:$0xf]  ;;  %v2983_v5 = vld [vmem:[#allocation21 + $0x24] sm:$0xf]  ;;  %v2479_v6 = vld [vmem:[#allocation21 + $0x30] sm:$0xf0] }
 0x177   :  { %v2510_v46 = vor.u32 %v2993_v43, %v2509_v25  ;;  %v2485_v53 = vld [vmem:[#allocation21 + $0x28] sm:$0xf]  ;;  %v2986_v8 = vld [vmem:[#allocation21 + $0x34] sm:$0xf0]  ;;  %v2984_v9 = vld [vmem:[#allocation21 + $0x2c] sm:$0xf] }
 0x178   :  { %v2487_v10 = vld [vmem:[#allocation21 + $0x38] sm:$0xf0]  ;;  %v2461_v13 = vld [vmem:[#allocation21] sm:$0xf]  ;;  %v2981_v14 = vld [vmem:[#allocation21 + $0xc] sm:$0xf0] }
 0x179   :  { %1093 = vmatpush.bf16.msra.mxu0 %v2378_v32  ;;  %1275 = vmatpush.bf16.msra.mxu2 %v2562_v11  ;;  %v2526_v32 = vor.u32 %v2997_v30, %v2525_v27  ;;  %v2482_v11 = vor.u32 %v2983_v5, %v2479_v6  ;;  %v2490_v45 = vor.u32 %v2984_v9, %v2487_v10  ;;  %v2463_v16 = vld [vmem:[#allocation21 + $0x10] sm:$0xf0]  ;;  %v2469_v17 = vld [vmem:[#allocation21 + $0x8] sm:$0xf]  ;;  %v2980_v28 = vld [vmem:[#allocation21 + $0xc] sm:$0xf] }
 0x17a   :  { %1082 = vmatpush.bf16.msrb.mxu3 %v2342_v57  ;;  %1263 = vmatpush.bf16.msra.mxu1 %v2542_v18  ;;  %v2989_v57 = vld [vmem:[#allocation21 + $0x4c] sm:$0xf0]  ;;  %v2982_v18 = vld [vmem:[#allocation21 + $0x14] sm:$0xf0]  ;;  %v2471_v19 = vld [vmem:[#allocation21 + $0x18] sm:$0xf0]  ;;  %v2462_v29 = vor.u32 %v2981_v14, %v2461_v13 }
 0x17b   :  { %v2494_v60 = vor.u32 %v2989_v57, %v2493_v37  ;;  %v2470_v24 = vor.u32 %v2982_v18, %v2469_v17  ;;  %v2709_v48 = vld [vmem:[#allocation24 + $0xf0] sm:$0xf]  ;;  %v3090_v54 = vld [vmem:[#allocation24 + $0x174] sm:$0xf0]  ;;  %v2637_v58 = vld [vmem:[#allocation24 + $0x60] sm:$0xf] }
 0x17c   :  { %v3106_v57 = vld [vmem:[#allocation24 + $0x1f4] sm:$0xf0]  ;;  %v2765_v62 = vld [vmem:[#allocation24 + $0x160] sm:$0xf]  ;;  %v3088_v40 = vld [vmem:[#allocation24 + $0x164] sm:$0xf0] }
 0x17d   :  { %1094 = vmatpush.bf16.msra.mxu0 %v2362_v47  ;;  %1276 = vmatpush.bf16.msra.mxu2 %v2546_v20  ;;  %v2511_v47 = vld [vmem:[#allocation21 + $0x70] sm:$0xf0]  ;;  %v3054_v5 = vld [vmem:[#allocation24 + $0x54] sm:$0xf0]  ;;  %v2693_v6 = vld [vmem:[#allocation24 + $0xd0] sm:$0xf] }
 0x17e   :  { %1287 = vmatpush.bf16.msra.mxu3 %v2582_v3  ;;  %1264 = vmatpush.bf16.msra.mxu1 %v2526_v32  ;;  %v2514_v50 = vor.u32 %v2991_v44, %v2511_v47  ;;  %v2985_v3 = vld [vmem:[#allocation21 + $0x2c] sm:$0xf0]  ;;  %v820_v32 = vstv %s819_s26  ;;  %v3058_v47 = vld [vmem:[#allocation24 + $0x74] sm:$0xf0]  ;;  %v3068_v18 = vld [vmem:[#allocation24 + $0xc4] sm:$0xf0] }
 0x17f   :  { %v2478_v7 = vor.u32 %v2985_v3, %v2477_v2  ;;  %v3104_v2 = vld [vmem:[#allocation24 + $0x1e4] sm:$0xf0]  ;;  %v3086_v10 = vld [vmem:[#allocation24 + $0x154] sm:$0xf0] }
 0x180   :  { %v3102_v13 = vld [vmem:[#allocation24 + $0x1d4] sm:$0xf0] }
 0x181   :  { %1095 = vmatpush.bf16.msra.mxu0 %v2346_v59  ;;  %1277 = vmatpush.bf16.msra.mxu2 %v2530_v35 }
 0x182   :  { %1288 = vmatpush.bf16.msra.mxu3 %v2566_v12  ;;  %1265 = vmatpush.bf16.msra.mxu1 %v2510_v46  ;;  %v2486_v12 = vor.u32 %v2986_v8, %v2485_v53  ;;  %v2645_v46 = vld [vmem:[#allocation24 + $0x70] sm:$0xf] }
 0x183   :  { %v2646_v49 = vor.u32 %v3058_v47, %v2645_v46  ;;  %v2757_v8 = vld [vmem:[#allocation24 + $0x150] sm:$0xf]  ;;  %v3064_v46 = vld [vmem:[#allocation24 + $0xa4] sm:$0xf0]  ;;  %v2733_v47 = vld [vmem:[#allocation24 + $0x120] sm:$0xf] }
 0x185   :  { %1300 = vmatpush.bf16.msrb.mxu0 %v2586_v4  ;;  %1278 = vmatpush.bf16.msra.mxu2 %v2514_v50  ;;  %v2506_v4 = vor.u32 %v2988_v63, %v2503_v1  ;;  %v3074_v50 = vld [vmem:[#allocation24 + $0xf4] sm:$0xf0]  ;;  %v2829_v1 = vld [vmem:[#allocation24 + $0x1e0] sm:$0xf] }
 0x186   :  { %1289 = vmatpush.bf16.msra.mxu3 %v2550_v21  ;;  %1266 = vmatpush.bf16.msra.mxu1 %v2494_v60  ;;  %v2710_v55 = vor.u32 %v3074_v50, %v2709_v48  ;;  %v2830_v3 = vor.u32 %v3104_v2, %v2829_v1  ;;  %v3080_v48 = vld [vmem:[#allocation24 + $0x124] sm:$0xf0]  ;;  %v2589_v2 = vld [vmem:[#allocation24] sm:$0xf] }
 0x187   :  { %v2734_v50 = vor.u32 %v3080_v48, %v2733_v47  ;;  %v3069_v47 = vld [vmem:[#allocation24 + $0xd4] sm:$0xf]  ;;  %v2695_v48 = vld [vmem:[#allocation24 + $0xd8] sm:$0xf0] }
 0x189   :  { %1301 = vmatpush.bf16.msrb.mxu0 %v2570_v15  ;;  %1279 = vmatpush.bf16.msra.mxu2 %v2498_v61  ;;  %v2979_v15 = vld [vmem:[#allocation21 + $0x4] sm:$0xf]  ;;  %v3072_v61 = vld [vmem:[#allocation24 + $0xe4] sm:$0xf0] }
 0x18a   :  { %1290 = vmatpush.bf16.msra.mxu3 %v2534_v36  ;;  %1267 = vmatpush.bf16.msra.mxu1 %v2478_v7  ;;  %v2466_v23 = vor.u32 %v2979_v15, %v2463_v16  ;;  %v3070_v7 = vld [vmem:[#allocation24 + $0xd4] sm:$0xf0]  ;;  %v2621_v15 = vld [vmem:[#allocation24 + $0x40] sm:$0xf] }
 0x18b   :  { %v2694_v9 = vor.u32 %v3070_v7, %v2693_v6  ;;  %v2685_v16 = vld [vmem:[#allocation24 + $0xc0] sm:$0xf]  ;;  %v3060_v6 = vld [vmem:[#allocation24 + $0x84] sm:$0xf0] }
 0x18c   :  { %v3076_v7 = vld [vmem:[#allocation24 + $0x104] sm:$0xf0] }
 0x18d   :  { %1302 = vmatpush.bf16.msrb.mxu0 %v2554_v26  ;;  %1280 = vmatpush.bf16.msra.mxu2 %v2482_v11  ;;  %v2474_v26 = vor.u32 %v2980_v28, %v2471_v19  ;;  %v2821_v11 = vld [vmem:[#allocation24 + $0x1d0] sm:$0xf]  ;;  %v2749_v28 = vld [vmem:[#allocation24 + $0x140] sm:$0xf]  ;;  %v3084_v19 = vld [vmem:[#allocation24 + $0x144] sm:$0xf0] }
 0x18e   :  { %1291 = vmatpush.bf16.msra.mxu3 %v2518_v51  ;;  %1268 = vmatpush.bf16.msra.mxu1 %v2462_v29  ;;  %v2773_v51 = vld [vmem:[#allocation24 + $0x170] sm:$0xf]  ;;  %v2822_v14 = vor.u32 %v3102_v13, %v2821_v11  ;;  %v2686_v29 = vor.u32 %v3068_v18, %v2685_v16  ;;  %v2781_v11 = vld [vmem:[#allocation24 + $0x180] sm:$0xf]  ;;  %v3057_v13 = vld [vmem:[#allocation24 + $0x74] sm:$0xf] }
 0x18f   :  { %v2774_v37 = vor.u32 %v3090_v54, %v2773_v51  ;;  %v2797_v51 = vld [vmem:[#allocation24 + $0x1a0] sm:$0xf]  ;;  %v3096_v54 = vld [vmem:[#allocation24 + $0x1a4] sm:$0xf0]  ;;  %v3073_v16 = vld [vmem:[#allocation24 + $0xf4] sm:$0xf] }
 0x191   :  { %1303 = vmatpush.bf16.msrb.mxu0 %v2538_v42  ;;  %1281 = vmatpush.bf16.msra.mxu2 %v2466_v23  ;;  %v3100_v23 = vld [vmem:[#allocation24 + $0x1c4] sm:$0xf0] }
 0x192   :  { %1292 = vmatpush.bf16.msra.mxu3 %v2502_v0  ;;  %v2766_v0 = vor.u32 %v3088_v40, %v2765_v62 }
 0x195   :  { %1304 = vmatpush.bf16.msrb.mxu0 %v2522_v56  ;;  %v2837_v56 = vld [vmem:[#allocation24 + $0x1f0] sm:$0xf] }
 0x196   :  { %1293 = vmatpush.bf16.msra.mxu3 %v2486_v12  ;;  %v2838_v52 = vor.u32 %v3106_v57, %v2837_v56  ;;  %v2758_v12 = vor.u32 %v3086_v10, %v2757_v8  ;;  %v2597_v56 = vld [vmem:[#allocation24 + $0x10] sm:$0xf]  ;;  %v3046_v57 = vld [vmem:[#allocation24 + $0x14] sm:$0xf0] }
 0x199   :  { %1305 = vmatpush.bf16.msrb.mxu0 %v2506_v4  ;;  %v2629_v4 = vld [vmem:[#allocation24 + $0x50] sm:$0xf] }
 0x19a   :  { %1294 = vmatpush.bf16.msra.mxu3 %v2470_v24  ;;  %v2630_v53 = vor.u32 %v3054_v5, %v2629_v4  ;;  %v2653_v4 = vld [vmem:[#allocation24 + $0x80] sm:$0xf] }
 0x19d   :  { %1306 = vmatpush.bf16.msrb.mxu0 %v2490_v45  ;;  %v3052_v45 = vld [vmem:[#allocation24 + $0x44] sm:$0xf0] }
 0x19e   :  { %v2622_v17 = vor.u32 %v3052_v45, %v2621_v15  ;;  %v2647_v45 = vld [vmem:[#allocation24 + $0x78] sm:$0xf0] }
 0x1a1   :  { %1307 = vmatpush.bf16.msrb.mxu0 %v2474_v26  ;;  %v2613_v26 = vld [vmem:[#allocation24 + $0x30] sm:$0xf] }
 0x1e1   :  { %v3859_v39 = vpop.f32.mrf.mxu0  ;;  %v3861_v59 = vpop.f32.mrf.mxu1 }
 0x1e2   :  { %v497_v43 = vadd.f32 %v3861_v59, %v3859_v39  ;;  %v3056_v39 = vld [vmem:[#allocation24 + $0x64] sm:$0xf0]  ;;  %v2701_v59 = vld [vmem:[#allocation24 + $0xe0] sm:$0xf] }
 0x1e3   :  { %v2638_v60 = vor.u32 %v3056_v39, %v2637_v58  ;;  %v2702_v63 = vor.u32 %v3072_v61, %v2701_v59  ;;  %v2598_v39 = vor.u32 %v3046_v57, %v2597_v56  ;;  %v3062_v59 = vld [vmem:[#allocation24 + $0x94] sm:$0xf0]  ;;  %v3101_v57 = vld [vmem:[#allocation24 + $0x1d4] sm:$0xf] }
 0x1e4   :  { %v823_v44 = vpack.c.bf16 %v497_v43, %v497_v43  ;;  %v2669_v43 = vld [vmem:[#allocation24 + $0xa0] sm:$0xf]  ;;  %v3078_v61 = vld [vmem:[#allocation24 + $0x114] sm:$0xf0] }
 0x1e9   :  { %v485_v20 = vpop.f32.mrf.mxu0  ;;  %v498_v21 = vpop.f32.mrf.mxu1 }
 0x1ea   :  { %v2750_v20 = vor.u32 %v3084_v19, %v2749_v28  ;;  %v2813_v21 = vld [vmem:[#allocation24 + $0x1c0] sm:$0xf]  ;;  %v2650_v28 = vor.u32 %v3057_v13, %v2647_v45 }
 0x1eb   :  { %v2814_v24 = vor.u32 %v3100_v23, %v2813_v21  ;;  %v3105_v21 = vld [vmem:[#allocation24 + $0x1f4] sm:$0xf] }
 0x1ef   :  { %v800_v27 = vpop.f32.mrf.mxu3 }
 0x1f1   :  { %v813_v30 = vpop.f32.mrf.mxu0 }
 0x1f2   :  { %v814_v31 = vadd.f32 %v813_v30, %v800_v27  ;;  %v3050_v27 = vld [vmem:[#allocation24 + $0x34] sm:$0xf0] }
 0x1f3   :  { %v2614_v30 = vor.u32 %v3050_v27, %v2613_v26  ;;  %v2839_v27 = vld [vmem:[#allocation24 + $0x1f8] sm:$0xf0] }
 0x1f4   :  { %v821_v35 = vmul.f32 %v820_v32, %v814_v31  ;;  %v2677_v31 = vld [vmem:[#allocation24 + $0xb0] sm:$0xf]  ;;  %v3066_v32 = vld [vmem:[#allocation24 + $0xb4] sm:$0xf0] }
 0x1f7   :  { %v613_v34 = vpop.f32.mrf.mxu2  ;;  %v802_v22 = vpop.f32.mrf.mxu3 }
 0x1f8   :  { %v818_v36 = vmul.f32 %v817_v33, %v613_v34  ;;  %v2741_v33 = vld [vmem:[#allocation24 + $0x130] sm:$0xf]  ;;  %v2678_v34 = vor.u32 %v3066_v32, %v2677_v31  ;;  %v3082_v22 = vld [vmem:[#allocation24 + $0x134] sm:$0xf0]  ;;  %v2639_v31 = vld [vmem:[#allocation24 + $0x68] sm:$0xf0]  ;;  %v2842_v32 = vor.u32 %v3105_v21, %v2839_v27 }
 0x1f9   :  { %v815_v38 = vpop.f32.mrf.mxu0  ;;  %v3081_v27 = vld [vmem:[#allocation24 + $0x134] sm:$0xf] }
 0x1fa   :  { %v822_v41 = vadd.f32 %v821_v35, %v818_v36  ;;  %v2805_v35 = vld [vmem:[#allocation24 + $0x1b0] sm:$0xf]  ;;  %v3098_v36 = vld [vmem:[#allocation24 + $0x1b4] sm:$0xf0]  ;;  %v2742_v38 = vor.u32 %v3082_v22, %v2741_v33  ;;  %v2703_v22 = vld [vmem:[#allocation24 + $0xe8] sm:$0xf0] }
 0x1fc   :  { %v856_v42 = vpack.c.bf16 %v822_v41, %v822_v41  ;;  %v2806_v41 = vor.u32 %v3098_v36, %v2805_v35  ;;  %v3087_v35 = vld [vmem:[#allocation24 + $0x164] sm:$0xf] }
 0x1fe   :  { %1057 = vmatmul.bf16.vlgmr.msrb.gmra.mxu1 %v856_v42  ;;  %1070 = vmatmul.bf16.vlgmr.msrb.gmra.mxu2 %v856_v42 }
 0x1ff   :  { %1083 = vmatmul.bf16.vlgmr.msrb.gmra.mxu3 %v856_v42  ;;  %1096 = vmatmul.bf16.vlgmr.msra.gmra.mxu0 %v856_v42  ;;  %v615_v25 = vpop.f32.mrf.mxu2  ;;  %v2605_v42 = vld [vmem:[#allocation24 + $0x20] sm:$0xf] }
 0x200   :  { %1773 = vmatpush.bf16.msrb.mxu1 %v2646_v49  ;;  %1786 = vmatpush.bf16.msrb.mxu2 %v2710_v55  ;;  %v3048_v25 = vld [vmem:[#allocation24 + $0x24] sm:$0xf0]  ;;  %v2670_v49 = vor.u32 %v3064_v46, %v2669_v43  ;;  %v2798_v55 = vor.u32 %v3096_v54, %v2797_v51  ;;  %v2631_v46 = vld [vmem:[#allocation24 + $0x58] sm:$0xf0] }
 0x201   :  { %1799 = vmatpush.bf16.msrb.mxu3 %v2774_v37  ;;  %1812 = vmatpush.bf16.msra.mxu0 %v2838_v52  ;;  %v2661_v52 = vld [vmem:[#allocation24 + $0x90] sm:$0xf] }
 0x202   :  { %v2662_v62 = vor.u32 %v3062_v59, %v2661_v52  ;;  %v2823_v52 = vld [vmem:[#allocation24 + $0x1d8] sm:$0xf0]  ;;  %v2698_v59 = vor.u32 %v3069_v47, %v2695_v48  ;;  %v2671_v47 = vld [vmem:[#allocation24 + $0xa8] sm:$0xf0]  ;;  %v3079_v48 = vld [vmem:[#allocation24 + $0x124] sm:$0xf] }
 0x204   :  { %1774 = vmatpush.bf16.msrb.mxu1 %v2638_v60  ;;  %1787 = vmatpush.bf16.msrb.mxu2 %v2702_v63  ;;  %v2725_v60 = vld [vmem:[#allocation24 + $0x110] sm:$0xf] }
 0x205   :  { %1800 = vmatpush.bf16.msrb.mxu3 %v2766_v0  ;;  %1813 = vmatpush.bf16.msra.mxu0 %v2830_v3  ;;  %v2726_v40 = vor.u32 %v3078_v61, %v2725_v60  ;;  %v2789_v63 = vld [vmem:[#allocation24 + $0x190] sm:$0xf]  ;;  %v3094_v0 = vld [vmem:[#allocation24 + $0x194] sm:$0xf0]  ;;  %v3044_v3 = vld [vmem:[#allocation24 + $0x4] sm:$0xf0] }
 0x206   :  { %v2790_v1 = vor.u32 %v3094_v0, %v2789_v63  ;;  %v2590_v5 = vor.u32 %v3044_v3, %v2589_v2  ;;  %v3051_v61 = vld [vmem:[#allocation24 + $0x44] sm:$0xf]  ;;  %v2826_v0 = vor.u32 %v3101_v57, %v2823_v52  ;;  %v2751_v3 = vld [vmem:[#allocation24 + $0x148] sm:$0xf0] }
 0x207   :  { %v3083_v2 = vld [vmem:[#allocation24 + $0x144] sm:$0xf] }
 0x208   :  { %1775 = vmatpush.bf16.msrb.mxu1 %v2630_v53  ;;  %1788 = vmatpush.bf16.msrb.mxu2 %v2694_v9  ;;  %v2717_v53 = vld [vmem:[#allocation24 + $0x100] sm:$0xf]  ;;  %v2654_v9 = vor.u32 %v3060_v6, %v2653_v4  ;;  %v3099_v6 = vld [vmem:[#allocation24 + $0x1c4] sm:$0xf] }
 0x209   :  { %1801 = vmatpush.bf16.msrb.mxu3 %v2758_v12  ;;  %1814 = vmatpush.bf16.msra.mxu0 %v2822_v14  ;;  %v2718_v10 = vor.u32 %v3076_v7, %v2717_v53  ;;  %v3092_v12 = vld [vmem:[#allocation24 + $0x184] sm:$0xf0]  ;;  %v2815_v53 = vld [vmem:[#allocation24 + $0x1c8] sm:$0xf0] }
 0x20a   :  { %v2782_v15 = vor.u32 %v3092_v12, %v2781_v11  ;;  %v2754_v12 = vor.u32 %v3083_v2, %v2751_v3  ;;  %v3061_v3 = vld [vmem:[#allocation24 + $0x94] sm:$0xf] }
 0x20c   :  { %1776 = vmatpush.bf16.msrb.mxu1 %v2622_v17  ;;  %1789 = vmatpush.bf16.msrb.mxu2 %v2686_v29  ;;  %v2711_v17 = vld [vmem:[#allocation24 + $0xf8] sm:$0xf0]  ;;  %v3089_v29 = vld [vmem:[#allocation24 + $0x174] sm:$0xf] }
 0x20d   :  { %1802 = vmatpush.bf16.msrb.mxu3 %v2750_v20  ;;  %1815 = vmatpush.bf16.msra.mxu0 %v2814_v24  ;;  %v2714_v19 = vor.u32 %v3073_v16, %v2711_v17  ;;  %v2775_v20 = vld [vmem:[#allocation24 + $0x178] sm:$0xf0]  ;;  %v3882_v24 = vld [vmem:[%s3947_s15] sm:$0xf]  ;;  %v3049_v16 = vld [vmem:[#allocation24 + $0x34] sm:$0xf] }
 0x20e   :  { %1269 = vmatmul.bf16.vlgmr.msra.gmra.mxu1 %v823_v44  ;;  %1282 = vmatmul.bf16.vlgmr.msra.gmra.mxu2 %v823_v44  ;;  %v2778_v26 = vor.u32 %v3089_v29, %v2775_v20  ;;  %v1315_v54 = vperm.slane %v3882_v24, 0 }
 0x20f   :  { %1295 = vmatmul.bf16.vlgmr.msra.gmra.mxu3 %v823_v44  ;;  %1308 = vmatmul.bf16.vlgmr.msrb.gmra.mxu0 %v823_v44  ;;  %v2606_v44 = vor.u32 %v3048_v25, %v2605_v42  ;;  %v2831_v42 = vld [vmem:[#allocation24 + $0x1e8] sm:$0xf0] }
 0x210   :  { %1777 = vmatpush.bf16.msrb.mxu1 %v2614_v30  ;;  %1790 = vmatpush.bf16.msrb.mxu2 %v2678_v34  ;;  %v3055_v30 = vld [vmem:[#allocation24 + $0x64] sm:$0xf] }
 0x211   :  { %1803 = vmatpush.bf16.msrb.mxu3 %v2742_v38  ;;  %1816 = vmatpush.bf16.msra.mxu0 %v2806_v41  ;;  %v2642_v33 = vor.u32 %v3055_v30, %v2639_v31  ;;  %v3071_v34 = vld [vmem:[#allocation24 + $0xe4] sm:$0xf]  ;;  %v2767_v38 = vld [vmem:[#allocation24 + $0x168] sm:$0xf0] }
 0x212   :  { %v2706_v36 = vor.u32 %v3071_v34, %v2703_v22  ;;  %v3103_v41 = vld [vmem:[#allocation24 + $0x1e4] sm:$0xf]  ;;  %v2770_v25 = vor.u32 %v3087_v35, %v2767_v38  ;;  %v3097_v34 = vld [vmem:[#allocation24 + $0x1b4] sm:$0xf]  ;;  %v2807_v22 = vld [vmem:[#allocation24 + $0x1b8] sm:$0xf0] }
 0x213   :  { %v2834_v43 = vor.u32 %v3103_v41, %v2831_v42  ;;  %v2810_v41 = vor.u32 %v3097_v34, %v2807_v22  ;;  %v3047_v42 = vld [vmem:[#allocation24 + $0x24] sm:$0xf] }
 0x214   :  { %1778 = vmatpush.bf16.msrb.mxu1 %v2606_v44  ;;  %1791 = vmatpush.bf16.msrb.mxu2 %v2670_v49  ;;  %v3053_v44 = vld [vmem:[#allocation24 + $0x54] sm:$0xf] }
 0x215   :  { %1804 = vmatpush.bf16.msrb.mxu3 %v2734_v50  ;;  %1817 = vmatpush.bf16.msra.mxu0 %v2798_v55  ;;  %v3085_v49 = vld [vmem:[#allocation24 + $0x154] sm:$0xf]  ;;  %v2759_v50 = vld [vmem:[#allocation24 + $0x158] sm:$0xf0]  ;;  %v1318_v55 = vperm.slane %v3882_v24, 3  ;;  %v2634_v56 = vor.u32 %v3053_v44, %v2631_v46 }
 0x216   :  { %v2762_v60 = vor.u32 %v3085_v49, %v2759_v50  ;;  %v2735_v49 = vld [vmem:[#allocation24 + $0x128] sm:$0xf0] }
 0x217   :  { %v2738_v52 = vor.u32 %v3079_v48, %v2735_v49 }
 0x218   :  { %1779 = vmatpush.bf16.msrb.mxu1 %v2598_v39  ;;  %1792 = vmatpush.bf16.msrb.mxu2 %v2662_v62  ;;  %v2623_v62 = vld [vmem:[#allocation24 + $0x48] sm:$0xf0] }
 0x219   :  { %1805 = vmatpush.bf16.msrb.mxu3 %v2726_v40  ;;  %1818 = vmatpush.bf16.msra.mxu0 %v2790_v1  ;;  %v3067_v40 = vld [vmem:[#allocation24 + $0xc4] sm:$0xf]  ;;  %v2687_v1 = vld [vmem:[#allocation24 + $0xc8] sm:$0xf0] }
 0x21a   :  { %v2690_v11 = vor.u32 %v3067_v40, %v2687_v1  ;;  %v2599_v40 = vld [vmem:[#allocation24 + $0x18] sm:$0xf0] }
 0x21c   :  { %1780 = vmatpush.bf16.msrb.mxu1 %v2590_v5  ;;  %1793 = vmatpush.bf16.msrb.mxu2 %v2654_v9  ;;  %v2626_v9 = vor.u32 %v3051_v61, %v2623_v62  ;;  %v3045_v62 = vld [vmem:[#allocation24 + $0x14] sm:$0xf] }
 0x21d   :  { %1806 = vmatpush.bf16.msrb.mxu3 %v2718_v10  ;;  %1819 = vmatpush.bf16.msra.mxu0 %v2782_v15  ;;  %v2818_v15 = vor.u32 %v3099_v6, %v2815_v53  ;;  %v2602_v2 = vor.u32 %v3045_v62, %v2599_v40  ;;  %v3122_v62 = vld [vmem:[#allocation25 + $0x78] sm:$0xff] }
 0x21e   :  { %v3110_v40 = vld [vmem:[#allocation25 + $0x18] sm:$0xff] }
 0x220   :  { %1825 = vmatpush.bf16.msra.mxu1 %v2650_v28  ;;  %1838 = vmatpush.bf16.msra.mxu2 %v2714_v19  ;;  %v2615_v28 = vld [vmem:[#allocation24 + $0x38] sm:$0xf0] }
 0x221   :  { %1851 = vmatpush.bf16.msra.mxu3 %v2778_v26  ;;  %1864 = vmatpush.bf16.msrb.mxu0 %v2842_v32  ;;  %v2618_v21 = vor.u32 %v3049_v16, %v2615_v28  ;;  %v2679_v26 = vld [vmem:[#allocation24 + $0xb8] sm:$0xf0]  ;;  %v2591_v16 = vld [vmem:[#allocation24 + $0x8] sm:$0xf0] }
 0x222   :  { %v2655_v28 = vld [vmem:[#allocation24 + $0x88] sm:$0xf0] }
 0x224   :  { %1826 = vmatpush.bf16.msra.mxu1 %v2642_v33  ;;  %1839 = vmatpush.bf16.msra.mxu2 %v2706_v36  ;;  %v2743_v33 = vld [vmem:[#allocation24 + $0x138] sm:$0xf0] }
 0x225   :  { %1852 = vmatpush.bf16.msra.mxu3 %v2770_v25  ;;  %1865 = vmatpush.bf16.msrb.mxu0 %v2834_v43  ;;  %v2746_v38 = vor.u32 %v3081_v27, %v2743_v33  ;;  %v2607_v25 = vld [vmem:[#allocation24 + $0x28] sm:$0xf0]  ;;  %v3063_v43 = vld [vmem:[#allocation24 + $0xa4] sm:$0xf] }
 0x228   :  { %1827 = vmatpush.bf16.msra.mxu1 %v2634_v56  ;;  %1840 = vmatpush.bf16.msra.mxu2 %v2698_v59 }
 0x229   :  { %1853 = vmatpush.bf16.msra.mxu3 %v2762_v60  ;;  %1866 = vmatpush.bf16.msrb.mxu0 %v2826_v0 }
 0x22c   :  { %1828 = vmatpush.bf16.msra.mxu1 %v2626_v9  ;;  %1841 = vmatpush.bf16.msra.mxu2 %v2690_v11  ;;  %v2727_v9 = vld [vmem:[#allocation24 + $0x118] sm:$0xf0]  ;;  %v3093_v11 = vld [vmem:[#allocation24 + $0x194] sm:$0xf] }
 0x22d   :  { %1854 = vmatpush.bf16.msra.mxu3 %v2754_v12  ;;  %1867 = vmatpush.bf16.msrb.mxu0 %v2818_v15 }
 0x230   :  { %1829 = vmatpush.bf16.msra.mxu1 %v2618_v21  ;;  %v2719_v21 = vld [vmem:[#allocation24 + $0x108] sm:$0xf0] }
 0x231   :  { %1855 = vmatpush.bf16.msra.mxu3 %v2746_v38  ;;  %1868 = vmatpush.bf16.msrb.mxu0 %v2810_v41 }
 0x235   :  { %1856 = vmatpush.bf16.msra.mxu3 %v2738_v52 }
 0x27b   :  { %v3871_v37 = vpop.f32.mrf.mxu1 }
 0x27c   :  { %v3873_v58 = vpop.f32.mrf.mxu0 }
 0x281   :  { %v3875_v8 = vpop.f32.mrf.mxu2 }
 0x282   :  { %v3877_v14 = vpop.f32.mrf.mxu3 }
 0x283   :  { %v1060_v18 = vpop.f32.mrf.mxu1 }
 0x284   :  { %v1099_v23 = vpop.f32.mrf.mxu0  ;;  %v1317_v18 = vperm.slane %v3882_v24, 2 }
 0x285   :  { %v3065_v23 = vld [vmem:[#allocation24 + $0xb4] sm:$0xf] }
 0x289   :  { %v1073_v51 = vpop.f32.mrf.mxu2 }
 0x28a   :  { %v1086_v39 = vpop.f32.mrf.mxu3 }
 0x28b   :  { %v1270_v63 = vpop.f32.mrf.mxu1  ;;  %v2799_v39 = vld [vmem:[#allocation24 + $0x1a8] sm:$0xf0] }
 0x28c   :  { %v1271_v4 = vadd.f32 %v1270_v63, %v3871_v37  ;;  %v1309_v5 = vpop.f32.mrf.mxu0  ;;  %v1316_v37 = vperm.slane %v3882_v24, 1  ;;  %v2682_v24 = vor.u32 %v3065_v23, %v2679_v26  ;;  %v3091_v23 = vld [vmem:[#allocation24 + $0x184] sm:$0xf]  ;;  %v2783_v26 = vld [vmem:[#allocation24 + $0x188] sm:$0xf0] }
 0x28d   :  { %v1310_v7 = vadd.f32 %v1309_v5, %v3873_v58 }
 0x28e   :  { %v3888_v10 = vadd.f32 %v1315_v54, %v1271_v4  ;;  %1842 = vmatpush.bf16.msra.mxu2 %v2682_v24  ;;  %v2674_v54 = vor.u32 %v3063_v43, %v2671_v47  ;;  %v2663_v4 = vld [vmem:[#allocation24 + $0x98] sm:$0xf0]  ;;  %v2786_v24 = vor.u32 %v3091_v23, %v2783_v26 }
 0x28f   :  { %v3890_v13 = vadd.f32 %v1318_v55, %v1310_v7  ;;  %v3095_v55 = vld [vmem:[#allocation24 + $0x1a4] sm:$0xf]  ;;  %v2666_v53 = vor.u32 %v3061_v3, %v2663_v4  ;;  %v3077_v7 = vld [vmem:[#allocation24 + $0x114] sm:$0xf] }
 0x290   :  { %v1331_v45 = vmul.f32 0.044715, %v3888_v10  ;;  %v2802_v61 = vor.u32 %v3095_v55, %v2799_v39  ;;  %v2730_v15 = vor.u32 %v3077_v7, %v2727_v9  ;;  %v1327_v41 = vmul.f32 0.5, %v3888_v10  ;;  %v1433_v3 = vld [vmem:[%s3949_s17] sm:$0x3]  ;;  %v3118_v9 = vld [vmem:[#allocation25 + $0x58] sm:$0xff] }
 0x291   :  { %v1334_v17 = vmul.f32 0.044715, %v3890_v13  ;;  %v1283_v58 = vpop.f32.mrf.mxu2  ;;  %v3107_v4 = vld [vmem:[#allocation25] sm:$0xff] }
 0x292   :  { %v1335_v19 = vmul.f32 %v1331_v45, %v3888_v10  ;;  %v1284_v29 = vadd.f32 %v1283_v58, %v3875_v8  ;;  %v1296_v20 = vpop.f32.mrf.mxu3  ;;  %1843 = vmatpush.bf16.msra.mxu2 %v2674_v54  ;;  %1869 = vmatpush.bf16.msrb.mxu0 %v2802_v61  ;;  %v2791_v45 = vld [vmem:[#allocation24 + $0x198] sm:$0xf0]  ;;  %v3111_v61 = vld [vmem:[#allocation25 + $0x20] sm:$0xff] }
 0x293   :  { %v1338_v30 = vmul.f32 %v1334_v17, %v3890_v13  ;;  %v1297_v31 = vadd.f32 %v1296_v20, %v3877_v14  ;;  %v1272_v32 = vpop.f32.mrf.mxu1  ;;  %v2610_v14 = vor.u32 %v3047_v42, %v2607_v25  ;;  %v2794_v58 = vor.u32 %v3093_v11, %v2791_v45  ;;  %1857 = vmatpush.bf16.msra.mxu3 %v2730_v15  ;;  %v3117_v15 = vld [vmem:[#allocation25 + $0x50] sm:$0xff] }
 0x294   :  { %v1339_v35 = vmul.f32 %v1335_v19, %v3888_v10  ;;  %v3901_v8 = vadd.f32 %v1316_v37, %v1284_v29  ;;  %v1311_v36 = vpop.f32.mrf.mxu0  ;;  %v3043_v37 = vld [vmem:[#allocation24 + $0x4] sm:$0xf] }
 0x295   :  { %v1342_v44 = vmul.f32 %v1338_v30, %v3890_v13  ;;  %v3904_v46 = vadd.f32 %v1317_v18, %v1297_v31  ;;  %1830 = vmatpush.bf16.msra.mxu1 %v2610_v14  ;;  %v3059_v18 = vld [vmem:[#allocation24 + $0x84] sm:$0xf]  ;;  %v2594_v20 = vor.u32 %v3043_v37, %v2591_v16 }
 0x296   :  { %v1343_v50 = vadd.f32 %v1339_v35, %v3888_v10  ;;  %v1332_v51 = vmul.f32 0.044715, %v3901_v8  ;;  %v3075_v19 = vld [vmem:[#allocation24 + $0x104] sm:$0xf]  ;;  %1844 = vmatpush.bf16.msra.mxu2 %v2666_v53  ;;  %v2658_v30 = vor.u32 %v3059_v18, %v2655_v28  ;;  %1870 = vmatpush.bf16.msrb.mxu0 %v2794_v58  ;;  %v1328_v42 = vmul.f32 0.5, %v3901_v8  ;;  %v3116_v18 = vld [vmem:[#allocation25 + $0x48] sm:$0xff] }
 0x297   :  { %v1346_v56 = vadd.f32 %v1342_v44, %v3890_v13  ;;  %v1333_v57 = vmul.f32 0.044715, %v3904_v46  ;;  %v2722_v31 = vor.u32 %v3075_v19, %v2719_v21  ;;  %v1329_v43 = vmul.f32 0.5, %v3904_v46 }
 0x298   :  { %v1347_v59 = vmul.f32 0.7978846, %v1343_v50  ;;  %v1336_v60 = vmul.f32 %v1332_v51, %v3901_v8  ;;  %v1330_v44 = vmul.f32 0.5, %v3890_v13  ;;  %v3114_v13 = vld [vmem:[#allocation25 + $0x38] sm:$0xff]  ;;  %v1435_v53 = vperm.slane %v1433_v3, 0 }
 0x299   :  { %v1350_v63 = vmul.f32 0.7978846, %v1346_v56  ;;  %v1337_v0 = vmul.f32 %v1333_v57, %v3904_v46  ;;  %v1285_v1 = vpop.f32.mrf.mxu2  ;;  %1831 = vmatpush.bf16.msra.mxu1 %v2602_v2  ;;  %1858 = vmatpush.bf16.msra.mxu3 %v2722_v31  ;;  %v3120_v2 = vld [vmem:[#allocation25 + $0x68] sm:$0xff] }
 0x29a   :  { %v1340_v5 = vmul.f32 %v1336_v60, %v3901_v8  ;;  %v1298_v6 = vpop.f32.mrf.mxu3  ;;  %3169 = vtanh.f32 %v1347_v59  ;;  %1845 = vmatpush.bf16.msra.mxu2 %v2658_v30  ;;  %1871 = vmatpush.bf16.msrb.mxu0 %v2786_v24  ;;  %v3112_v60 = vld [vmem:[#allocation25 + $0x28] sm:$0xff] }
 0x29b   :  { %v1341_v12 = vmul.f32 %v1337_v0, %v3904_v46  ;;  %3171 = vtanh.f32 %v1350_v63  ;;  %v3109_v63 = vld [vmem:[#allocation25 + $0x10] sm:$0xff]  ;;  %v3108_v1 = vld [vmem:[#allocation25 + $0x8] sm:$0xff] }
 0x29c   :  { %v1344_v17 = vadd.f32 %v1340_v5, %v3901_v8  ;;  %v3121_v0 = vld [vmem:[#allocation25 + $0x70] sm:$0xff]  ;;  %v3119_v5 = vld [vmem:[#allocation25 + $0x60] sm:$0xff] }
 0x29d   :  { %v1345_v29 = vadd.f32 %v1341_v12, %v3904_v46  ;;  %1832 = vmatpush.bf16.msra.mxu1 %v2594_v20  ;;  %v3113_v46 = vld [vmem:[#allocation25 + $0x30] sm:$0xff]  ;;  %v3115_v20 = vld [vmem:[#allocation25 + $0x40] sm:$0xff] }
 0x29e   :  { %v1348_v27 = vmul.f32 0.7978846, %v1344_v17 }
 0x29f   :  { %v1349_v32 = vmul.f32 0.7978846, %v1345_v29 }
 0x2a0   :  { %3173 = vtanh.f32 %v1348_v27  ;;  %v3170_v33 = vpop.eup %3169  ;;  %v1436_v27 = vperm.slane %v1433_v3, 1 }
 0x2a1   :  { %3175 = vtanh.f32 %v1349_v32  ;;  %v3172_v34 = vpop.eup %3171  ;;  %v1355_v22 = vadd.f32 1.0, %v3170_v33 }
 0x2a2   :  { %v1358_v36 = vadd.f32 1.0, %v3172_v34 }
 0x2a3   :  { %v1359_v47 = vmul.f32 %v1355_v22, %v1327_v41 }
 0x2a4   :  { %v1362_v50 = vmul.f32 %v1358_v36, %v1330_v44 }
 0x2a6   :  { %v3174_v35 = vpop.eup %3173 }
 0x2a7   :  { %v3176_v38 = vpop.eup %3175  ;;  %v1356_v25 = vadd.f32 1.0, %v3174_v35 }
 0x2a8   :  { %v1357_v14 = vadd.f32 1.0, %v3176_v38 }
 0x2a9   :  { %v1360_v48 = vmul.f32 %v1356_v25, %v1328_v42 }
 0x2aa   :  { %v1361_v49 = vmul.f32 %v1357_v14, %v1329_v43 }
 0x2ab   :  { %v1363_v51 = vpack.c.bf16 %v1360_v48, %v1359_v47 }
 0x2ac   :  { %v1364_v54 = vpack.c.bf16 %v1362_v50, %v1361_v49 }
 0x2ad   :  { %v1441_v55 = vunpack.c.l.b16 %v1363_v51  ;;  %v1442_v56 = vunpack.c.h.b16 %v1363_v51 }
 0x2ae   :  { %v1443_v57 = vunpack.c.l.b16 %v1364_v54  ;;  %v1444_v52 = vunpack.c.h.b16 %v1364_v54 }
 0x2af   :  { %v1445_v39 = vpack.c.b16 %v1441_v55, %v1441_v55  ;;  %v1446_v10 = vpack.c.b16 %v1442_v56, %v1442_v56 }
 0x2b0   :  { %v1447_v59 = vpack.c.b16 %v1443_v57, %v1443_v57  ;;  %v1448_v8 = vpack.c.b16 %v1444_v52, %v1444_v52 }
 0x2b1   :  { %1781 = vmatmul.bf16.vlgmr.msrb.gmra.mxu1 %v1445_v39  ;;  %1794 = vmatmul.bf16.vlgmr.msrb.gmra.mxu2 %v1446_v10 }
 0x2b2   :  { %1807 = vmatmul.bf16.vlgmr.msrb.gmra.mxu3 %v1447_v59  ;;  %1820 = vmatmul.bf16.vlgmr.msra.gmra.mxu0 %v1448_v8 }
 0x2b3   :  { %2029 = vmatpush.bf16.msrb.mxu1 %v3114_v13  ;;  %2042 = vmatpush.bf16.msrb.mxu2 %v3122_v62  ;;  %v3129_v13 = vld [vmem:[#allocation27 + $0x30] sm:$0xff] }
 0x2b7   :  { %2030 = vmatpush.bf16.msrb.mxu1 %v3113_v46  ;;  %2043 = vmatpush.bf16.msrb.mxu2 %v3121_v0  ;;  %v3128_v46 = vld [vmem:[#allocation27 + $0x28] sm:$0xff] }
 0x2bb   :  { %2031 = vmatpush.bf16.msrb.mxu1 %v3112_v60  ;;  %2044 = vmatpush.bf16.msrb.mxu2 %v3120_v2  ;;  %v3127_v60 = vld [vmem:[#allocation27 + $0x20] sm:$0xff] }
 0x2bc   :  { %v3157_v2 = vld [vmem:[%s3951_s19] ss:$0 sm:$0xff]  ;;  %s3608_s19 = smov [#allocation28]  }
 0x2bd   :  { %s2152_s7 = sshll.u32 %s3608_s19, 4  ;;  %s2153_s7 = int_to_ptr.vmem [resolvable:$true] %s2152_s7 }
 0x2bf   :  { %2032 = vmatpush.bf16.msrb.mxu1 %v3111_v61  ;;  %2045 = vmatpush.bf16.msrb.mxu2 %v3119_v5  ;;  %v3126_v61 = vld [vmem:[#allocation27 + $0x18] sm:$0xff] }
 0x2c1   :  { %1833 = vmatmul.bf16.vlgmr.msra.gmra.mxu1 %v1445_v39  ;;  %1846 = vmatmul.bf16.vlgmr.msra.gmra.mxu2 %v1446_v10 }
 0x2c2   :  { %1859 = vmatmul.bf16.vlgmr.msra.gmra.mxu3 %v1447_v59  ;;  %1872 = vmatmul.bf16.vlgmr.msrb.gmra.mxu0 %v1448_v8  ;;  %v3130_v8 = vld [vmem:[#allocation27 + $0x38] sm:$0xff] }
 0x2c3   :  { %2033 = vmatpush.bf16.msrb.mxu1 %v3110_v40  ;;  %2046 = vmatpush.bf16.msrb.mxu2 %v3118_v9  ;;  %v3125_v40 = vld [vmem:[#allocation27 + $0x10] sm:$0xff] }
 0x2c4   :  { %2133 = vmatpush.bf16.msrb.mxu3 %v3130_v8 }
 0x2c7   :  { %2034 = vmatpush.bf16.msrb.mxu1 %v3109_v63  ;;  %2047 = vmatpush.bf16.msrb.mxu2 %v3117_v15  ;;  %v3124_v63 = vld [vmem:[#allocation27 + $0x8] sm:$0xff] }
 0x2c8   :  { %2134 = vmatpush.bf16.msrb.mxu3 %v3129_v13 }
 0x2cb   :  { %2035 = vmatpush.bf16.msrb.mxu1 %v3108_v1  ;;  %2048 = vmatpush.bf16.msrb.mxu2 %v3116_v18  ;;  %v3123_v1 = vld [vmem:[#allocation27] sm:$0xff] }
 0x2cc   :  { %2135 = vmatpush.bf16.msrb.mxu3 %v3128_v46 }
 0x2cf   :  { %2036 = vmatpush.bf16.msrb.mxu1 %v3107_v4  ;;  %2049 = vmatpush.bf16.msrb.mxu2 %v3115_v20 }
 0x2d0   :  { %2136 = vmatpush.bf16.msrb.mxu3 %v3127_v60 }
 0x2d4   :  { %2137 = vmatpush.bf16.msrb.mxu3 %v3126_v61 }
 0x2d8   :  { %2138 = vmatpush.bf16.msrb.mxu3 %v3125_v40 }
 0x2dc   :  { %2139 = vmatpush.bf16.msrb.mxu3 %v3124_v63 }
 0x2e0   :  { %2140 = vmatpush.bf16.msrb.mxu3 %v3123_v1 }
 0x32e   :  { %v1782_v6 = vpop.f32.mrf.mxu1 }
 0x32f   :  { %v1821_v7 = vpop.f32.mrf.mxu0  ;;  %v1783_v11 = vadd.f32 %v1782_v6, %v1435_v53 }
 0x334   :  { %v1795_v12 = vpop.f32.mrf.mxu2 }
 0x335   :  { %v1796_v45 = vadd.f32 %v1795_v12, %v1783_v11  ;;  %v1808_v37 = vpop.f32.mrf.mxu3 }
 0x336   :  { %v1784_v16 = vpop.f32.mrf.mxu1 }
 0x337   :  { %v1809_v17 = vadd.f32 %v1808_v37, %v1796_v45  ;;  %v1823_v58 = vpop.f32.mrf.mxu0 }
 0x338   :  { %v3158_v58 = vld [vmem:[%s3953_s21] ss:$0 sm:$0xff] }
 0x339   :  { %v1822_v28 = vadd.f32 %v1821_v7, %v1809_v17 }
 0x33b   :  { %v1879_v19 = vmul.f32 0.044715, %v1822_v28  ;;  %v1877_v14 = vmul.f32 0.5, %v1822_v28 }
 0x33c   :  { %v1797_v29 = vpop.f32.mrf.mxu2 }
 0x33d   :  { %v1881_v21 = vmul.f32 %v1879_v19, %v1822_v28  ;;  %v1810_v23 = vpop.f32.mrf.mxu3 }
 0x33e   :  { %v1834_v26 = vpop.f32.mrf.mxu1 }
 0x33f   :  { %v1873_v30 = vpop.f32.mrf.mxu0  ;;  %v1883_v31 = vmul.f32 %v1881_v21, %v1822_v28  ;;  %v1835_v24 = vadd.f32 %v1834_v26, %v1436_v27 }
 0x341   :  { %v1885_v32 = vadd.f32 %v1883_v31, %v1822_v28 }
 0x343   :  { %v1887_v33 = vmul.f32 0.7978846, %v1885_v32 }
 0x344   :  { %v1847_v34 = vpop.f32.mrf.mxu2 }
 0x345   :  { %v1848_v22 = vadd.f32 %v1847_v34, %v1835_v24  ;;  %v1860_v35 = vpop.f32.mrf.mxu3  ;;  %3177 = vtanh.f32 %v1887_v33 }
 0x346   :  { %v1836_v36 = vpop.f32.mrf.mxu1 }
 0x347   :  { %v1861_v38 = vadd.f32 %v1860_v35, %v1848_v22  ;;  %v1875_v41 = vpop.f32.mrf.mxu0 }
 0x349   :  { %v1874_v42 = vadd.f32 %v1873_v30, %v1861_v38 }
 0x34b   :  { %v3178_v25 = vpop.eup %3177  ;;  %v1880_v43 = vmul.f32 0.044715, %v1874_v42  ;;  %v1878_v52 = vmul.f32 0.5, %v1874_v42 }
 0x34c   :  { %v1849_v44 = vpop.f32.mrf.mxu2  ;;  %v1891_v47 = vadd.f32 1.0, %v3178_v25 }
 0x34d   :  { %v1882_v48 = vmul.f32 %v1880_v43, %v1874_v42  ;;  %v1862_v49 = vpop.f32.mrf.mxu3 }
 0x34e   :  { %v1893_v50 = vmul.f32 %v1891_v47, %v1877_v14 }
 0x34f   :  { %v1884_v51 = vmul.f32 %v1882_v48, %v1874_v42 }
 0x350   :  { %v1895_v54 = vpack.c.bf16 %v1893_v50, %v1893_v50 }
 0x351   :  { %v1886_v55 = vadd.f32 %v1884_v51, %v1874_v42 }
 0x352   :  { %2037 = vmatmul.bf16.vlgmr.msrb.gmra.mxu1 %v1895_v54 }
 0x353   :  { %v1888_v56 = vmul.f32 0.7978846, %v1886_v55 }
 0x355   :  { %3179 = vtanh.f32 %v1888_v56 }
 0x35b   :  { %v3180_v57 = vpop.eup %3179 }
 0x35c   :  { %v1892_v39 = vadd.f32 1.0, %v3180_v57 }
 0x35e   :  { %v1894_v10 = vmul.f32 %v1892_v39, %v1878_v52 }
 0x360   :  { %v1896_v59 = vpack.c.bf16 %v1894_v10, %v1894_v10 }
 0x362   :  { %2050 = vmatmul.bf16.vlgmr.msrb.gmra.mxu2 %v1896_v59 }
 0x3cf   :  { %v2038_v62 = vpop.f32.mrf.mxu1 }
 0x3d0   :  { %v2039_v3 = vadd.f32 %v3157_v2, %v2038_v62 }
 0x3d7   :  { %v2040_v0 = vpop.f32.mrf.mxu1 }
 0x3e5   :  { %v2051_v4 = vpop.f32.mrf.mxu2 }
 0x3e6   :  { %v2052_v5 = vadd.f32 %v2051_v4, %v2039_v3 }
 0x3e8   :  { %v2056_v6 = vmul.f32 0.044715, %v2052_v5  ;;  %v2055_v45 = vmul.f32 0.5, %v2052_v5 }
 0x3ea   :  { %v2057_v53 = vmul.f32 %v2056_v6, %v2052_v5 }
 0x3ec   :  { %v2058_v7 = vmul.f32 %v2057_v53, %v2052_v5 }
 0x3ed   :  { %v2053_v9 = vpop.f32.mrf.mxu2 }
 0x3ee   :  { %v2059_v11 = vadd.f32 %v2058_v7, %v2052_v5 }
 0x3f0   :  { %v2060_v12 = vmul.f32 0.7978846, %v2059_v11 }
 0x3f2   :  { %3181 = vtanh.f32 %v2060_v12 }
 0x3f8   :  { %v3182_v15 = vpop.eup %3181 }
 0x3f9   :  { %v2062_v37 = vadd.f32 1.0, %v3182_v15 }
 0x3fb   :  { %v2063_v16 = vmul.f32 %v2062_v37, %v2055_v45 }
 0x3fd   :  { %v2064_v17 = vpack.c.bf16 %v2063_v16, %v2063_v16 }
 0x3ff   :  { %2141 = vmatmul.bf16.vlgmr.msrb.gmra.mxu3 %v2064_v17 }
 0x482   :  { %v2142_v18 = vpop.f32.mrf.mxu3 }
 0x483   :  { %v2143_v28 = vadd.f32 %v3158_v58, %v2142_v18 }
 0x485   :  { %2146 = vst [vmem:[#allocation28] sm:$0xff] %v2143_v28 }
 0x486   :  { %2157 = dma.vmem_to_hbm [thread:$0]  %s2153_s7, 128, %s2155_s24, [#allocation6]  }
 0x48a   :  { %v2144_v19 = vpop.f32.mrf.mxu3 }
 0x48b   :  { %3583 = dma.done.wait [#allocation6], 128  }
 0x48c   :  { %3584 = vsyncadd [#allocation6], 4294967168 }
 0x48d   :  { %2162 = vsyncpa [#allocation5], 1 }
 0x48e   :  { %2163 = vsyncpa [#allocation8], 1 }
 0x48f   :  { %2164 = vsyncpa [#allocation11], 1 }
 0x490   :  { %2165 = vsyncpa [#allocation14], 1 }
 0x491   :  { %2166 = vsyncpa [#allocation17], 1 }
 0x492   :  { %2167 = vsyncpa [#allocation20], 1 }
 0x493   :  { %2168 = vsyncpa [#allocation23], 1 }
 0x494   :  { %2169 = vsyncpa [#allocation26], 1 }
 0x495   :  { %2170 = vsyncpa [#allocation6], 1 }

// kernel: tpu_custom_call.1
= control target key start
LH: loop header
LB: loop body
LE: loop exit
PB: predicated region body
PF: predicated region fallthrough
CT: control target
= control target key end

     0   :  { %s3932_s0 = inlined_call_operand.<no memory space> [shape: f32[1], index: 0, kind: input, shape index: {}]   ;;  %s3933_s1 = inlined_call_operand.hbm [shape: bf16[8,256], index: 1, kind: input, shape index: {}]   ;;  %s3934_s2 = inlined_call_operand.hbm [shape: bf16[8,128], index: 2, kind: input, shape index: {}]   ;;  %s3935_s3 = inlined_call_operand.hbm [shape: bf16[8,256], index: 3, kind: input, shape index: {}]   ;;  %s3936_s4 = inlined_call_operand.vmem [shape: f32[1,256], index: 4, kind: input, shape index: {}]   ;;  %s3937_s5 = inlined_call_operand.hbm [shape: f32[1,256], index: 5, kind: input, shape index: {}]   ;;  %s3938_s6 = inlined_call_operand.hbm [shape: f32[1,128], index: 6, kind: input, shape index: {}]   ;;  %s3939_s7 = inlined_call_operand.hbm [shape: f32[1,128], index: 7, kind: input, shape index: {}]   ;;  %s3940_s8 = inlined_call_operand.vmem [shape: f32[1,256], index: 8, kind: input, shape index: {}]   ;;  %s3941_s9 = inlined_call_operand.hbm [shape: f32[1,256], index: 9, kind: input, shape index: {}]   ;;  %s3942_s10 = inlined_call_operand.hbm [shape: bf16[256,128], index: 10, kind: input, shape index: {}]   ;;  %s3943_s11 = inlined_call_operand.hbm [shape: bf16[128,128], index: 11, kind: input, shape index: {}]   ;;  %s3944_s12 = inlined_call_operand.hbm [shape: bf16[256,128], index: 12, kind: input, shape index: {}]   ;;  %s3945_s13 = inlined_call_operand.hbm [shape: bf16[128,512], index: 13, kind: input, shape index: {}]   ;;  %s3946_s14 = inlined_call_operand.hbm [shape: bf16[128,512], index: 14, kind: input, shape index: {}]   ;;  %s3947_s15 = inlined_call_operand.vmem [shape: f32[1,512], index: 15, kind: input, shape index: {}]   ;;  %s3948_s16 = inlined_call_operand.hbm [shape: bf16[512,256], index: 16, kind: input, shape index: {}]   ;;  %s3949_s17 = inlined_call_operand.vmem [shape: f32[1,256], index: 17, kind: input, shape index: {}]   ;;  %s3950_s18 = inlined_call_operand.hbm [shape: bf16[256,128], index: 18, kind: input, shape index: {}]   ;;  %s3951_s19 = inlined_call_operand.vmem [shape: f32[1,128], index: 19, kind: input, shape index: {}]   ;;  %s3952_s20 = inlined_call_operand.hbm [shape: bf16[128,128], index: 20, kind: input, shape index: {}]   ;;  %s3953_s21 = inlined_call_operand.vmem [shape: f32[1,128], index: 21, kind: input, shape index: {}]   ;;  %s3954_s22 = inlined_call_operand.hbm [shape: f32[8,128], index: 22, kind: output, shape index: {}]  }
   0x1   :  { %3956 = sst [smem:[#allocation38_spill]] %s3932_s0 }
   0x2   :  { %3957 = sst [smem:[#allocation39_spill]] %s3933_s1 }
   0x3   :  { %3958 = sst [smem:[#allocation40_spill]] %s3934_s2 }
   0x4   :  { %3959 = sst [smem:[#allocation41_spill]] %s3935_s3 }
   0x5   :  { %3960 = sst [smem:[#allocation42_spill]] %s3936_s4 }
   0x6   :  { %3961 = sst [smem:[#allocation43_spill]] %s3937_s5 }
   0x7   :  { %3962 = sst [smem:[#allocation44_spill]] %s3938_s6 }
   0x8   :  { %3963 = sst [smem:[#allocation45_spill]] %s3954_s22 }
   0x9   :  { %28 = vsyncpa [#allocation5], 0 }
   0xa   :  { %29 = vsyncpa [#allocation8], 0 }
   0xb   :  { %30 = vsyncpa [#allocation11], 0 }
   0xc   :  { %31 = vsyncpa [#allocation14], 0 }
   0xd   :  { %32 = vsyncpa [#allocation17], 0 }
   0xe   :  { %33 = vsyncpa [#allocation20], 0 }
   0xf   :  { %34 = vsyncpa [#allocation23], 0 }
  0x10   :  { %35 = vsyncpa [#allocation26], 0  ;;  %s3964_s29 = sld [smem:[#allocation40_spill]] }
  0x16   :  { %s55_s30 = sshll.u32 %s3964_s29, 4  ;;  %s56_s30 = int_to_ptr.hbm [resolvable:$true] %s55_s30 }
  0x17   :  { %36 = vsyncpa [#allocation6], 0  ;;  %s3585_s4 = smov [#allocation7]   ;;  %s3965_s5 = sld [smem:[#allocation43_spill]] }
  0x18   :  { %s57_s0 = sshll.u32 %s3585_s4, 4  ;;  %s3586_s6 = smov [#allocation10]   ;;  %s58_s0 = int_to_ptr.vmem [resolvable:$true] %s57_s0 }
  0x19   :  { %60 = dma.hbm_to_vmem [thread:$0]  %s56_s30, 64, %s58_s0, [#allocation8]  }
  0x1a   :  { %s81_s25 = sshll.u32 %s3586_s6, 4  ;;  %s101_s27 = sshll.u32 %s3939_s7, 4  ;;  %s82_s25 = int_to_ptr.vmem [resolvable:$true] %s81_s25  ;;  %s102_s27 = int_to_ptr.hbm [resolvable:$true] %s101_s27 }
  0x1b   :  { %s124_s29 = sshll.u32 %s3942_s10, 4  ;;  %s3587_s4 = smov [#allocation13]   ;;  %s125_s29 = int_to_ptr.hbm [resolvable:$true] %s124_s29 }
  0x1c   :  { %s103_s22 = sshll.u32 %s3587_s4, 4  ;;  %s3588_s30 = smov [#allocation16]   ;;  %s104_s22 = int_to_ptr.vmem [resolvable:$true] %s103_s22 }
  0x1d   :  { %s79_s24 = sshll.u32 %s3965_s5, 4  ;;  %s126_s0 = sshll.u32 %s3588_s30, 4  ;;  %s80_s24 = int_to_ptr.hbm [resolvable:$true] %s79_s24  ;;  %s127_s0 = int_to_ptr.vmem [resolvable:$true] %s126_s0 }
  0x1e   :  { %84 = dma.hbm_to_vmem [thread:$0]  %s80_s24, 32, %s82_s25, [#allocation11]  }
  0x1f   :  { %106 = dma.hbm_to_vmem [thread:$0]  %s102_s27, 16, %s104_s22, [#allocation14]  }
  0x20   :  { %s3589_s23 = smov 64   ;;  %s3590_s1 = smov 4  }
  0x21   :  { %132 = dma.hbm_to_vmem [thread:$0]  %s125_s29, 2048, %s127_s0, [#allocation17], %s3589_s23, %s3589_s23, %s3590_s1  }
  0x22   :  { %s150_s24 = sshll.u32 %s3944_s12, 4  ;;  %s3591_s10 = smov [#allocation19]   ;;  %s151_s24 = int_to_ptr.hbm [resolvable:$true] %s150_s24 }
  0x23   :  { %s152_s6 = sshll.u32 %s3591_s10, 4  ;;  %s176_s26 = sshll.u32 %s3946_s14, 4  ;;  %s153_s6 = int_to_ptr.vmem [resolvable:$true] %s152_s6  ;;  %s177_s26 = int_to_ptr.hbm [resolvable:$true] %s176_s26 }
  0x24   :  { %158 = dma.hbm_to_vmem [thread:$0]  %s151_s24, 2048, %s153_s6, [#allocation20], %s3589_s23, %s3589_s23, %s3590_s1  }
  0x25   :  { %s3592_s2 = smov [#allocation22]   ;;  %s206_s29 = sshll.u32 %s3950_s18, 4  ;;  %s207_s29 = int_to_ptr.hbm [resolvable:$true] %s206_s29 }
  0x26   :  { %s178_s27 = sshll.u32 %s3592_s2, 4  ;;  %s3593_s12 = smov 256   ;;  %s179_s27 = int_to_ptr.vmem [resolvable:$true] %s178_s27 }
  0x27   :  { %s3594_s4 = smov 16   ;;  %s3966_s7 = sld [smem:[#allocation39_spill]] }
  0x28   :  { %184 = dma.hbm_to_vmem [thread:$0]  %s177_s26, 4096, %s179_s27, [#allocation23], %s3593_s12, %s3593_s12, %s3594_s4  }
  0x29   :  { %s3595_s14 = smov [#allocation25]   ;;  %s3596_s18 = smov [#allocation4]  }
  0x2a   :  { %s208_s24 = sshll.u32 %s3595_s14, 4  ;;  %s46_s10 = sshll.u32 %s3596_s18, 4  ;;  %s209_s24 = int_to_ptr.vmem [resolvable:$true] %s208_s24  ;;  %s47_s10 = int_to_ptr.vmem [resolvable:$true] %s46_s10 }
  0x2b   :  { %214 = dma.hbm_to_vmem [thread:$0]  %s207_s29, 2048, %s209_s24, [#allocation26], %s3589_s23, %s3589_s23, %s3590_s1  }
  0x2c   :  { %s3967_s25 = sld [smem:[#allocation41_spill]]  ;;  %s3597_s30 = smov [#allocation9]  }
  0x2d   :  { %s44_s5 = sshll.u32 %s3966_s7, 4  ;;  %s3968_s3 = sld [smem:[#allocation44_spill]]  ;;  %s45_s5 = int_to_ptr.hbm [resolvable:$true] %s44_s5 }
  0x2e   :  { %49 = dma.hbm_to_vmem [thread:$0]  %s45_s5, 128, %s47_s10, [#allocation5]  }
  0x2f   :  { %s68_s0 = sshll.u32 %s3597_s30, 4  ;;  %s3598_s7 = smov [#allocation12]   ;;  %s69_s0 = int_to_ptr.vmem [resolvable:$true] %s68_s0 }
  0x30   :  { %s92_s29 = sshll.u32 %s3598_s7, 4  ;;  %s114_s18 = sshll.u32 %s3941_s9, 4  ;;  %s93_s29 = int_to_ptr.vmem [resolvable:$true] %s92_s29  ;;  %s115_s18 = int_to_ptr.hbm [resolvable:$true] %s114_s18 }
  0x31   :  { %s137_s10 = sshll.u32 %s3943_s11, 4  ;;  %s3599_s22 = smov [#allocation15]   ;;  %s138_s10 = int_to_ptr.hbm [resolvable:$true] %s137_s10 }
  0x32   :  { %s66_s2 = sshll.u32 %s3967_s25, 4  ;;  %s116_s25 = sshll.u32 %s3599_s22, 4  ;;  %s67_s2 = int_to_ptr.hbm [resolvable:$true] %s66_s2  ;;  %s117_s25 = int_to_ptr.vmem [resolvable:$true] %s116_s25 }
  0x33   :  { %s90_s28 = sshll.u32 %s3968_s3, 4  ;;  %s3600_s26 = smov [#allocation18]   ;;  %s91_s28 = int_to_ptr.hbm [resolvable:$true] %s90_s28 }
  0x34   :  { %71 = dma.hbm_to_vmem [thread:$0]  %s67_s2, 128, %s69_s0, [#allocation8]  }
  0x35   :  { %95 = dma.hbm_to_vmem [thread:$0]  %s91_s28, 16, %s93_s29, [#allocation11]  }
  0x36   :  { %119 = dma.hbm_to_vmem [thread:$0]  %s115_s18, 32, %s117_s25, [#allocation14]  }
  0x37   :  { %s139_s2 = sshll.u32 %s3600_s26, 4  ;;  %s163_s30 = sshll.u32 %s3945_s13, 4  ;;  %s140_s2 = int_to_ptr.vmem [resolvable:$true] %s139_s2  ;;  %s164_s30 = int_to_ptr.hbm [resolvable:$true] %s163_s30 }
  0x38   :  { %145 = dma.hbm_to_vmem [thread:$0]  %s138_s10, 1024, %s140_s2, [#allocation17], %s3589_s23, %s3589_s23, %s3590_s1  }
  0x39   :  { %s191_s11 = sshll.u32 %s3948_s16, 4  ;;  %s3601_s0 = smov [#allocation21]   ;;  %s192_s11 = int_to_ptr.hbm [resolvable:$true] %s191_s11 }
  0x3a   :  { %s165_s7 = sshll.u32 %s3601_s0, 4  ;;  %s3602_s29 = smov [#allocation24]   ;;  %s166_s7 = int_to_ptr.vmem [resolvable:$true] %s165_s7 }
  0x3b   :  { %171 = dma.hbm_to_vmem [thread:$0]  %s164_s30, 4096, %s166_s7, [#allocation20], %s3593_s12, %s3593_s12, %s3594_s4  }
  0x3c   :  { %s193_s13 = sshll.u32 %s3602_s29, 4  ;;  %s3603_s14 = smov 128   ;;  %s194_s13 = int_to_ptr.vmem [resolvable:$true] %s193_s13 }
  0x3d   :  { %s3604_s24 = smov 8   ;;  %s221_s5 = sshll.u32 %s3952_s20, 4  ;;  %s222_s5 = int_to_ptr.hbm [resolvable:$true] %s221_s5 }
  0x3e   :  { %199 = dma.hbm_to_vmem [thread:$0]  %s192_s11, 8192, %s194_s13, [#allocation23], %s3603_s14, %s3603_s14, %s3604_s24  }
  0x3f   :  { %s3605_s16 = smov [#allocation27]  }
  0x40   :  { %s223_s10 = sshll.u32 %s3605_s16, 4  ;;  %s224_s10 = int_to_ptr.vmem [resolvable:$true] %s223_s10 }
  0x41   :  { %229 = dma.hbm_to_vmem [thread:$0]  %s222_s5, 1024, %s224_s10, [#allocation26], %s3589_s23, %s3589_s23, %s3590_s1  }
  0x42   :  { %3567 = dma.done.wait [#allocation5], 128  }
  0x43   :  { %3568 = vsyncadd [#allocation5], 4294967168 }
  0x44   :  { %3569 = dma.done.wait [#allocation8], 192  }
  0x45   :  { %3570 = vsyncadd [#allocation8], 4294967104 }
  0x46   :  { %3571 = dma.done.wait [#allocation11], 48  }
  0x47   :  { %3572 = vsyncadd [#allocation11], 4294967248 }
  0x48   :  { %3573 = dma.done.wait [#allocation14], 48  }
  0x49   :  { %3574 = vsyncadd [#allocation14], 4294967248 }
  0x4a   :  { %3575 = dma.done.wait [#allocation17], 3072  }
  0x4b   :  { %3576 = vsyncadd [#allocation17], 4294964224 }
  0x4c   :  { %3577 = dma.done.wait [#allocation20], 6144  }
  0x4d   :  { %3578 = vsyncadd [#allocation20], 4294961152 }
  0x4e   :  { %3579 = dma.done.wait [#allocation23], 12288  }
  0x4f   :  { %3580 = vsyncadd [#allocation23], 4294955008 }
  0x50   :  { %3581 = dma.done.wait [#allocation26], 3072  }
  0x51   :  { %3582 = vsyncadd [#allocation26], 4294964224  ;;  %v293_v0 = vld [vmem:[#allocation4] sm:$0xff]  ;;  %v500_v1 = vld [vmem:[#allocation7] sm:$0xf]  ;;  %v3606_v10 = vmov 256.0  }
  0x52   :  { %v294_v2 = vunpack.c.l.bf16 %v293_v0  ;;  %v295_v3 = vunpack.c.h.bf16 %v293_v0  ;;  %v617_v4 = vld [vmem:[#allocation9] sm:$0xff]  ;;  %v501_v5 = vunpack.c.l.bf16 %v500_v1  ;;  %3159 = vrcp.f32 %v3606_v10  ;;  %v2946_v17 = vld [vmem:[#allocation16 + $0x38] sm:$0xff]  ;;  %v2944_v24 = vld [vmem:[#allocation16 + $0x28] sm:$0xff]  ;;  %s3969_s1 = sld [smem:[#allocation42_spill]] }
  0x53   :  { %v618_v7 = vunpack.c.l.bf16 %v617_v4  ;;  %v619_v8 = vunpack.c.h.bf16 %v617_v4  ;;  %v3607_v13 = vmov 128.0   ;;  %v2954_v20 = vld [vmem:[#allocation16 + $0x78] sm:$0xff]  ;;  %474 = vmatpush.bf16.msra.mxu0 %v2946_v17  ;;  %v2945_v21 = vld [vmem:[#allocation16 + $0x30] sm:$0xff]  ;;  %v2943_v30 = vld [vmem:[#allocation16 + $0x20] sm:$0xff]  ;;  %s3970_s25 = sld [smem:[#allocation38_spill]] }
  0x54   :  { %v298_v6 = vadd.f32 %v295_v3, %v294_v2  ;;  %504 = vadd.xlane.f32.xlu1 %v501_v5  ;;  %3161 = vrcp.f32 %v3607_v13  ;;  %487 = vmatpush.bf16.msra.mxu1 %v2954_v20  ;;  %v2942_v47 = vld [vmem:[#allocation16 + $0x18] sm:$0xff]  ;;  %v2953_v48 = vld [vmem:[#allocation16 + $0x70] sm:$0xff]  ;;  %v2952_v50 = vld [vmem:[#allocation16 + $0x68] sm:$0xff]  ;;  %s3971_s14 = sld [smem:[#allocation45_spill]] }
  0x55   :  { %v622_v9 = vadd.f32 %v619_v8, %v618_v7  ;;  %v2941_v49 = vld [vmem:[#allocation16 + $0x10] sm:$0xff]  ;;  %v2970_v51 = vld [vmem:[#allocation19 + $0x38] sm:$0xff]  ;;  %v2940_v52 = vld [vmem:[#allocation16 + $0x8] sm:$0xff] }
  0x56   :  { %299 = vadd.xlane.f32.xlu0 %v298_v6  ;;  %791 = vmatpush.bf16.msra.mxu3 %v2970_v51  ;;  %v2951_v53 = vld [vmem:[#allocation16 + $0x60] sm:$0xff]  ;;  %v2969_v54 = vld [vmem:[#allocation19 + $0x30] sm:$0xff]  ;;  %v2950_v56 = vld [vmem:[#allocation16 + $0x58] sm:$0xff] }
  0x57   :  { %475 = vmatpush.bf16.msra.mxu0 %v2945_v21  ;;  %v2939_v55 = vld [vmem:[#allocation16] sm:$0xff]  ;;  %v2962_v57 = vld [vmem:[#allocation18 + $0x38] sm:$0xff]  ;;  %v2968_v58 = vld [vmem:[#allocation19 + $0x28] sm:$0xff] }
  0x58   :  { %v3160_v11 = vpop.eup %3159  ;;  %488 = vmatpush.bf16.msra.mxu1 %v2953_v48  ;;  %v2978_v59 = vld [vmem:[#allocation19 + $0x78] sm:$0xff]  ;;  %604 = vmatpush.bf16.msra.mxu2 %v2962_v57  ;;  %v2949_v60 = vld [vmem:[#allocation16 + $0x50] sm:$0xff]  ;;  %v2967_v62 = vld [vmem:[#allocation19 + $0x20] sm:$0xff] }
  0x59   :  { %v302_v12 = vmul.f32 256.0, %v3160_v11  ;;  %vm306_vm0 = vweird.f32 %v3160_v11  ;;  %v2961_v61 = vld [vmem:[#allocation18 + $0x30] sm:$0xff]  ;;  %v2948_v0 = vld [vmem:[#allocation16 + $0x48] sm:$0xff]  ;;  %v2947_v4 = vld [vmem:[#allocation16 + $0x40] sm:$0xff]  ;;  %s819_s26 = ssub.f32 1.0, %s3970_s25 }
  0x5a   :  { %v3162_v16 = vpop.eup %3161  ;;  %792 = vmatpush.bf16.msra.mxu3 %v2969_v54  ;;  %v2977_v63 = vld [vmem:[#allocation19 + $0x70] sm:$0xff]  ;;  %v2960_v1 = vld [vmem:[#allocation18 + $0x28] sm:$0xff]  ;;  %v2974_v10 = vld [vmem:[#allocation19 + $0x58] sm:$0xff]  ;;  %s2154_s24 = sshll.u32 %s3971_s14, 4  ;;  %s2155_s24 = int_to_ptr.hbm [resolvable:$true] %s2154_s24 }
  0x5b   :  { %v303_v14 = vsub.f32 1.0, %v302_v12  ;;  %v507_v19 = vmul.f32 128.0, %v3162_v16  ;;  %476 = vmatpush.bf16.msra.mxu0 %v2944_v24  ;;  %vm511_vm1 = vweird.f32 %v3162_v16  ;;  %v2965_v6 = vld [vmem:[#allocation19 + $0x10] sm:$0xff]  ;;  %v2956_v17 = vld [vmem:[#allocation18 + $0x8] sm:$0xff]  ;;  %v2955_v20 = vld [vmem:[#allocation18] sm:$0xff] }
  0x5c   :  { %489 = vmatpush.bf16.msra.mxu1 %v2952_v50  ;;  %605 = vmatpush.bf16.msra.mxu2 %v2961_v61  ;;  %v2957_v13 = vld [vmem:[#allocation18 + $0x10] sm:$0xff]  ;;  %v2429_v50 = vld [vmem:[#allocation22 + $0xc0] sm:$0xf] }
  0x5d   :  { %v304_v15 = vmul.f32 %v3160_v11, %v303_v14  ;;  %v508_v23 = vsub.f32 1.0, %v507_v19  ;;  %v2963_v14 = vld [vmem:[#allocation19] sm:$0xff]  ;;  %v3037_v51 = vld [vmem:[#allocation22 + $0xcc] sm:$0xf0] }
  0x5e   :  { %623 = vadd.xlane.f32.xlu0 %v622_v9  ;;  %793 = vmatpush.bf16.msra.mxu3 %v2968_v58  ;;  %v2964_v9 = vld [vmem:[#allocation19 + $0x8] sm:$0xff]  ;;  %v2430_v54 = vor.u32 %v3037_v51, %v2429_v50 }
  0x5f   :  { %v305_v18 = vadd.f32 %v3160_v11, %v304_v15  ;;  %v509_v27 = vmul.f32 %v3162_v16, %v508_v23  ;;  %477 = vmatpush.bf16.msra.mxu0 %v2943_v30  ;;  %v2973_v15 = vld [vmem:[#allocation19 + $0x50] sm:$0xff]  ;;  %v2971_v23 = vld [vmem:[#allocation19 + $0x40] sm:$0xff] }
  0x60   :  { %490 = vmatpush.bf16.msra.mxu1 %v2951_v53  ;;  %606 = vmatpush.bf16.msra.mxu2 %v2960_v1  ;;  %v296_v30 = vld [vmem:[%s3969_s1] sm:$0x3] }
  0x61   :  { %v3790_v22 = vsel %vm306_vm0, %v3160_v11, %v305_v18  ;;  %v510_v33 = vadd.f32 %v3162_v16, %v509_v27  ;;  %v2972_v18 = vld [vmem:[#allocation19 + $0x48] sm:$0xff]  ;;  %v332_v48 = vperm.slane %v296_v30, 1 }
  0x62   :  { %794 = vmatpush.bf16.msra.mxu3 %v2967_v62 }
  0x63   :  { %v3802_v37 = vsel %vm511_vm1, %v3162_v16, %v510_v33  ;;  %478 = vmatpush.bf16.msra.mxu0 %v2942_v47  ;;  %v3039_v33 = vld [vmem:[#allocation22 + $0xe4] sm:$0xf] }
  0x64   :  { %491 = vmatpush.bf16.msra.mxu1 %v2950_v56 }
  0x67   :  { %479 = vmatpush.bf16.msra.mxu0 %v2941_v49 }
  0x68   :  { %492 = vmatpush.bf16.msra.mxu1 %v2949_v60  ;;  %v3038_v60 = vld [vmem:[#allocation22 + $0xd4] sm:$0xf0] }
  0x6b   :  { %480 = vmatpush.bf16.msra.mxu0 %v2940_v52 }
  0x6c   :  { %493 = vmatpush.bf16.msra.mxu1 %v2948_v0  ;;  %v2413_v0 = vld [vmem:[#allocation22 + $0xa0] sm:$0xf] }
  0x6f   :  { %481 = vmatpush.bf16.msra.mxu0 %v2939_v55  ;;  %v3035_v55 = vld [vmem:[#allocation22 + $0xc4] sm:$0xf] }
  0x70   :  { %494 = vmatpush.bf16.msra.mxu1 %v2947_v4  ;;  %v3031_v4 = vld [vmem:[#allocation22 + $0xa4] sm:$0xf] }
  0x73   :  { %804 = vmatpush.bf16.msrb.mxu0 %v2978_v59  ;;  %v2437_v59 = vld [vmem:[#allocation22 + $0xc8] sm:$0xf] }
  0x77   :  { %805 = vmatpush.bf16.msrb.mxu0 %v2977_v63  ;;  %v2438_v63 = vor.u32 %v3038_v60, %v2437_v59 }
  0xc7   :  { %v505_v38 = vpop.xlane.xlu1 %504 }
  0xc8   :  { %v513_v43 = vmul.f32 %v3802_v37, %v505_v38  ;;  %v2453_v38 = vld [vmem:[#allocation22 + $0xe8] sm:$0xf] }
  0xc9   :  { %v300_v25 = vpop.xlane.xlu0 %299 }
  0xca   :  { %v308_v26 = vmul.f32 %v3790_v22, %v300_v25  ;;  %v3813_v45 = vsub.f32 %v501_v5, %v513_v43  ;;  %v2959_v5 = vld [vmem:[#allocation18 + $0x20] sm:$0xff]  ;;  %v331_v43 = vperm.slane %v296_v30, 0 }
  0xcb   :  { %607 = vmatpush.bf16.msra.mxu2 %v2959_v5  ;;  %v2415_v5 = vld [vmem:[#allocation22 + $0xb0] sm:$0xf0] }
  0xcc   :  { %v3793_v28 = vsub.f32 %v294_v2, %v308_v26  ;;  %v3795_v29 = vsub.f32 %v295_v3, %v308_v26  ;;  %v515_v46 = vmul.f32 %v3813_v45, %v3813_v45  ;;  %v2966_v2 = vld [vmem:[#allocation19 + $0x18] sm:$0xff]  ;;  %v2976_v3 = vld [vmem:[#allocation19 + $0x68] sm:$0xff] }
  0xcd   :  { %795 = vmatpush.bf16.msra.mxu3 %v2966_v2  ;;  %806 = vmatpush.bf16.msrb.mxu0 %v2976_v3  ;;  %v3033_v3 = vld [vmem:[#allocation22 + $0xac] sm:$0xf0] }
  0xce   :  { %v311_v31 = vmul.f32 %v3793_v28, %v3793_v28  ;;  %v312_v32 = vmul.f32 %v3795_v29, %v3795_v29 }
  0xd0   :  { %v313_v34 = vadd.f32 %v312_v32, %v311_v31  ;;  %v2445_v31 = vld [vmem:[#allocation22 + $0xe0] sm:$0xf]  ;;  %v3041_v32 = vld [vmem:[#allocation22 + $0xec] sm:$0xf0] }
  0xd1   :  { %v624_v35 = vpop.xlane.xlu0 %623  ;;  %796 = vmatpush.bf16.msra.mxu3 %v2965_v6 }
  0xd2   :  { %v625_v36 = vmul.f32 %v624_v35, %v3790_v22  ;;  %314 = vadd.xlane.f32.xlu1 %v313_v34  ;;  %v2446_v35 = vor.u32 %v3041_v32, %v2445_v31 }
  0xd4   :  { %v3804_v39 = vsub.f32 %v618_v7, %v625_v36  ;;  %v3806_v40 = vsub.f32 %v619_v8, %v625_v36  ;;  %v2975_v7 = vld [vmem:[#allocation19 + $0x60] sm:$0xff]  ;;  %v2958_v8 = vld [vmem:[#allocation18 + $0x18] sm:$0xff]  ;;  %v2447_v36 = vld [vmem:[#allocation22 + $0xf0] sm:$0xf0]  ;;  %1049 = vmatpush.bf16.msrb.mxu1 %v2446_v35 }
  0xd5   :  { %807 = vmatpush.bf16.msrb.mxu0 %v2975_v7  ;;  %608 = vmatpush.bf16.msra.mxu2 %v2958_v8  ;;  %v3040_v8 = vld [vmem:[#allocation22 + $0xec] sm:$0xf] }
  0xd6   :  { %v628_v41 = vmul.f32 %v3804_v39, %v3804_v39  ;;  %v629_v42 = vmul.f32 %v3806_v40, %v3806_v40  ;;  %797 = vmatpush.bf16.msra.mxu3 %v2964_v9  ;;  %v2414_v9 = vor.u32 %v3033_v3, %v2413_v0 }
  0xd8   :  { %v630_v44 = vadd.f32 %v629_v42, %v628_v41  ;;  %v3826_v42 = vld [vmem:[#allocation10] sm:$0x3]  ;;  %1050 = vmatpush.bf16.msrb.mxu1 %v2430_v54 }
  0xd9   :  { %808 = vmatpush.bf16.msrb.mxu0 %v2974_v10  ;;  %609 = vmatpush.bf16.msra.mxu2 %v2957_v13  ;;  %v338_v61 = vperm.slane %v3826_v42, 0  ;;  %v339_v62 = vperm.slane %v3826_v42, 1  ;;  %v2418_v10 = vor.u32 %v3031_v4, %v2415_v5  ;;  %v3036_v42 = vld [vmem:[#allocation22 + $0xcc] sm:$0xf] }
  0xda   :  { %631 = vadd.xlane.f32.xlu2 %v630_v44  ;;  %798 = vmatpush.bf16.msra.mxu3 %v2963_v14  ;;  %v2450_v44 = vor.u32 %v3039_v33, %v2447_v36  ;;  %v3844_v14 = vld [vmem:[%s3940_s8] sm:$0x3] }
  0xdb   :  { %v649_v54 = vperm.slane %v3844_v14, 1 }
  0xdc   :  { %1051 = vmatpush.bf16.msrb.mxu1 %v2414_v9  ;;  %v3025_v9 = vld [vmem:[#allocation22 + $0x6c] sm:$0xf0] }
  0xdd   :  { %809 = vmatpush.bf16.msrb.mxu0 %v2973_v15  ;;  %610 = vmatpush.bf16.msra.mxu2 %v2956_v17  ;;  %v2455_v15 = vld [vmem:[#allocation22 + $0xf8] sm:$0xf0]  ;;  %v2397_v17 = vld [vmem:[#allocation22 + $0x80] sm:$0xf] }
  0xe1   :  { %810 = vmatpush.bf16.msrb.mxu0 %v2972_v18  ;;  %611 = vmatpush.bf16.msra.mxu2 %v2955_v20  ;;  %v2399_v20 = vld [vmem:[#allocation22 + $0x90] sm:$0xf0] }
  0xe2   :  { %516 = vadd.xlane.f32.xlu2 %v515_v46  ;;  %v3042_v46 = vld [vmem:[#allocation22 + $0xf4] sm:$0xf0] }
  0xe3   :  { %v2454_v49 = vor.u32 %v3042_v46, %v2453_v38 }
  0xe5   :  { %811 = vmatpush.bf16.msrb.mxu0 %v2971_v23  ;;  %1062 = vmatpush.bf16.msrb.mxu2 %v2450_v44 }
  0xe6   :  { %1075 = vmatpush.bf16.msrb.mxu3 %v2454_v49 }
  0xea   :  { %1076 = vmatpush.bf16.msrb.mxu3 %v2438_v63  ;;  %v2407_v63 = vld [vmem:[#allocation22 + $0x98] sm:$0xf0] }
 0x145   :  { %v315_v11 = vpop.xlane.xlu1 %314 }
 0x146   :  { %v316_v12 = vmul.f32 %v315_v11, %v3790_v22  ;;  %v2421_v11 = vld [vmem:[#allocation22 + $0xa8] sm:$0xf] }
 0x148   :  { %v317_v16 = vadd.f32 1e-05, %v316_v12  ;;  %v3034_v12 = vld [vmem:[#allocation22 + $0xb4] sm:$0xf0] }
 0x14a   :  { %3163 = vrsqrt.f32 %v317_v16  ;;  %vm324_vm3 = vweird.f32 %v317_v16 }
 0x14d   :  { %v632_v19 = vpop.xlane.xlu2 %631 }
 0x14e   :  { %v633_v21 = vmul.f32 %v632_v19, %v3790_v22  ;;  %v3029_v19 = vld [vmem:[#allocation22 + $0x8c] sm:$0xf0] }
 0x14f   :  { %v2398_v23 = vor.u32 %v3029_v19, %v2397_v17  ;;  %v2391_v17 = vld [vmem:[#allocation22 + $0x78] sm:$0xf0]  ;;  %v3021_v19 = vld [vmem:[#allocation22 + $0x4c] sm:$0xf0] }
 0x150   :  { %v3164_v24 = vpop.eup %3163  ;;  %v3819_v25 = vadd.f32 1e-05, %v633_v21 }
 0x151   :  { %v319_v26 = vmul.f32 %v3164_v24, %v317_v16  ;;  %vm325_vm2 = vweird.f32 %v3164_v24  ;;  %v2422_v16 = vor.u32 %v3034_v12, %v2421_v11  ;;  %1052 = vmatpush.bf16.msrb.mxu1 %v2398_v23  ;;  %v2383_v12 = vld [vmem:[#allocation22 + $0x70] sm:$0xf0]  ;;  %v2373_v23 = vld [vmem:[#allocation22 + $0x48] sm:$0xf] }
 0x152   :  { %3165 = vrsqrt.f32 %v3819_v25  ;;  %vm326_vm4 = vmor %vm324_vm3, %vm325_vm2  ;;  %vm641_vm6 = vweird.f32 %v3819_v25 }
 0x153   :  { %v320_v27 = vmul.f32 %v3164_v24, %v319_v26  ;;  %v3030_v26 = vld [vmem:[#allocation22 + $0x94] sm:$0xf0]  ;;  %1077 = vmatpush.bf16.msrb.mxu3 %v2422_v16  ;;  %v3024_v16 = vld [vmem:[#allocation22 + $0x6c] sm:$0xf] }
 0x155   :  { %v321_v34 = vmul.f32 0.5, %v320_v27  ;;  %v517_v22 = vpop.xlane.xlu2 %516 }
 0x156   :  { %v518_v41 = vmul.f32 %v517_v22, %v3802_v37  ;;  %v2431_v37 = vld [vmem:[#allocation22 + $0xd0] sm:$0xf0]  ;;  %v2458_v22 = vor.u32 %v3040_v8, %v2455_v15  ;;  %v2381_v8 = vld [vmem:[#allocation22 + $0x60] sm:$0xf] }
 0x157   :  { %v322_v47 = vsub.f32 1.5, %v321_v34  ;;  %v2434_v58 = vor.u32 %v3035_v55, %v2431_v37  ;;  %v621_v34 = vld [vmem:[#allocation15] sm:$0x3]  ;;  %v3032_v37 = vld [vmem:[#allocation22 + $0xac] sm:$0xf]  ;;  %v2382_v11 = vor.u32 %v3025_v9, %v2381_v8 }
 0x158   :  { %v3828_v52 = vpop.eup %3165  ;;  %v3830_v53 = vadd.f32 1e-05, %v518_v41  ;;  %v648_v41 = vperm.slane %v3844_v14, 0  ;;  %v656_v60 = vperm.slane %v621_v34, 1  ;;  %v3026_v14 = vld [vmem:[#allocation22 + $0x74] sm:$0xf0] }
 0x159   :  { %v323_v56 = vmul.f32 %v3164_v24, %v322_v47  ;;  %v636_v57 = vmul.f32 %v3828_v52, %v3819_v25  ;;  %1063 = vmatpush.bf16.msrb.mxu2 %v2434_v58  ;;  %vm642_vm5 = vweird.f32 %v3828_v52  ;;  %v2439_v25 = vld [vmem:[#allocation22 + $0xd8] sm:$0xf0]  ;;  %1053 = vmatpush.bf16.msrb.mxu1 %v2382_v11  ;;  %v2559_v8 = vld [vmem:[#allocation21 + $0xd0] sm:$0xf0]  ;;  %v2565_v9 = vld [vmem:[#allocation21 + $0xc8] sm:$0xf] }
 0x15a   :  { %3167 = vrsqrt.f32 %v3830_v53  ;;  %vm643_vm7 = vmor %vm641_vm6, %vm642_vm5  ;;  %v2442_v50 = vor.u32 %v3036_v42, %v2439_v25  ;;  %vm526_vm9 = vweird.f32 %v3830_v53 }
 0x15b   :  { %v637_v1 = vmul.f32 %v3828_v52, %v636_v57  ;;  %v327_v2 = vsel %vm326_vm4, %v3164_v24, %v323_v56  ;;  %v2405_v24 = vld [vmem:[#allocation22 + $0x88] sm:$0xf]  ;;  %v2423_v56 = vld [vmem:[#allocation22 + $0xb8] sm:$0xf0] }
 0x15c   :  { %v328_v6 = vmul.f32 %v327_v2, %v3793_v28  ;;  %v329_v7 = vmul.f32 %v327_v2, %v3795_v29  ;;  %v3027_v29 = vld [vmem:[#allocation22 + $0x84] sm:$0xf]  ;;  %v2426_v59 = vor.u32 %v3032_v37, %v2423_v56  ;;  %v3156_v2 = vld [vmem:[#allocation13] ss:$0 sm:$0xff]  ;;  %v3014_v37 = vld [vmem:[#allocation22 + $0x14] sm:$0xf0] }
 0x15d   :  { %v638_v13 = vmul.f32 0.5, %v637_v1  ;;  %1064 = vmatpush.bf16.msrb.mxu2 %v2418_v10  ;;  %v2402_v35 = vor.u32 %v3027_v29, %v2399_v20  ;;  %v3023_v10 = vld [vmem:[#allocation22 + $0x64] sm:$0xf]  ;;  %v3012_v56 = vld [vmem:[#allocation22 + $0xc] sm:$0xf] }
 0x15e   :  { %v335_v18 = vmul.f32 %v331_v43, %v328_v6  ;;  %v336_v28 = vmul.f32 %v332_v48, %v329_v7  ;;  %v2406_v43 = vor.u32 %v3030_v26, %v2405_v24  ;;  %v655_v48 = vperm.slane %v621_v34, 0  ;;  %v3019_v29 = vld [vmem:[#allocation22 + $0x44] sm:$0xf]  ;;  %v3022_v24 = vld [vmem:[#allocation22 + $0x54] sm:$0xf0] }
 0x15f   :  { %v639_v21 = vsub.f32 1.5, %v638_v13  ;;  %v2389_v13 = vld [vmem:[#allocation22 + $0x68] sm:$0xf]  ;;  %v2386_v15 = vor.u32 %v3023_v10, %v2383_v12  ;;  %v3017_v34 = vld [vmem:[#allocation22 + $0x2c] sm:$0xf0] }
 0x160   :  { %v3168_v27 = vpop.eup %3167  ;;  %v342_v30 = vadd.f32 %v338_v61, %v335_v18  ;;  %v343_v31 = vadd.f32 %v339_v62, %v336_v28  ;;  %1078 = vmatpush.bf16.msrb.mxu3 %v2406_v43  ;;  %v2394_v18 = vor.u32 %v3024_v16, %v2391_v17  ;;  %v2365_v28 = vld [vmem:[#allocation22 + $0x40] sm:$0xf]  ;;  %v3016_v43 = vld [vmem:[#allocation22 + $0x2c] sm:$0xf]  ;;  %v3006_v10 = vld [vmem:[#allocation21 + $0xd4] sm:$0xf0] }
 0x161   :  { %v640_v32 = vmul.f32 %v3828_v52, %v639_v21  ;;  %v521_v33 = vmul.f32 %v3168_v27, %v3830_v53  ;;  %1065 = vmatpush.bf16.msrb.mxu2 %v2402_v35  ;;  %vm527_vm8 = vweird.f32 %v3168_v27  ;;  %v2366_v20 = vor.u32 %v3021_v19, %v2365_v28  ;;  %v2367_v21 = vld [vmem:[#allocation22 + $0x50] sm:$0xf0]  ;;  %v3001_v16 = vld [vmem:[#allocation21 + $0xac] sm:$0xf0]  ;;  %v2999_v17 = vld [vmem:[#allocation21 + $0xa4] sm:$0xf] }
 0x162   :  { %v344_v36 = vpack.c.bf16 %v342_v30, %v342_v30  ;;  %v345_v38 = vpack.c.bf16 %v343_v31, %v343_v31  ;;  %vm528_vm10 = vmor %vm526_vm9, %vm527_vm8  ;;  %v2370_v26 = vor.u32 %v3019_v29, %v2367_v21  ;;  %v3020_v30 = vld [vmem:[#allocation22 + $0x4c] sm:$0xf]  ;;  %v2375_v31 = vld [vmem:[#allocation22 + $0x58] sm:$0xf0]  ;;  %v2566_v12 = vor.u32 %v3006_v10, %v2565_v9 }
 0x163   :  { %v522_v44 = vmul.f32 %v3168_v27, %v521_v33  ;;  %v644_v46 = vsel %vm643_vm7, %v3828_v52, %v640_v32  ;;  %1054 = vmatpush.bf16.msrb.mxu1 %v2366_v20  ;;  %v2378_v32 = vor.u32 %v3020_v30, %v2375_v31  ;;  %v2349_v33 = vld [vmem:[#allocation22 + $0x20] sm:$0xf]  ;;  %v2543_v28 = vld [vmem:[#allocation21 + $0xb0] sm:$0xf0]  ;;  %v2549_v19 = vld [vmem:[#allocation21 + $0xa8] sm:$0xf] }
 0x164   :  { %482 = vmatmul.bf16.vlgmr.msra.gmra.mxu0 %v344_v36  ;;  %495 = vmatmul.bf16.vlgmr.msra.gmra.mxu1 %v345_v38  ;;  %v645_v47 = vmul.f32 %v644_v46, %v3804_v39  ;;  %v646_v51 = vmul.f32 %v644_v46, %v3806_v40  ;;  %v3155_v39 = vld [vmem:[#allocation12] ss:$0 sm:$0xff]  ;;  %v3028_v40 = vld [vmem:[#allocation22 + $0x8c] sm:$0xf]  ;;  %v2350_v35 = vor.u32 %v3017_v34, %v2349_v33  ;;  %v2351_v36 = vld [vmem:[#allocation22 + $0x30] sm:$0xf0] }
 0x165   :  { %v523_v49 = vmul.f32 0.5, %v522_v44  ;;  %1088 = vmatpush.bf16.msra.mxu0 %v2458_v22  ;;  %v2410_v3 = vor.u32 %v3028_v40, %v2407_v63  ;;  %1066 = vmatpush.bf16.msrb.mxu2 %v2386_v15  ;;  %v3015_v22 = vld [vmem:[#allocation22 + $0x24] sm:$0xf]  ;;  %v2357_v38 = vld [vmem:[#allocation22 + $0x28] sm:$0xf]  ;;  %v2546_v20 = vor.u32 %v2999_v17, %v2543_v28 }
 0x166   :  { %v652_v55 = vmul.f32 %v648_v41, %v645_v47  ;;  %v653_v62 = vmul.f32 %v649_v54, %v646_v51  ;;  %v3018_v41 = vld [vmem:[#allocation22 + $0x34] sm:$0xf0]  ;;  %v2354_v42 = vor.u32 %v3015_v22, %v2351_v36  ;;  %v2359_v44 = vld [vmem:[#allocation22 + $0x38] sm:$0xf0]  ;;  %v2333_v46 = vld [vmem:[#allocation22] sm:$0xf] }
 0x167   :  { %v524_v57 = vsub.f32 1.5, %v523_v49  ;;  %v2358_v25 = vor.u32 %v3018_v41, %v2357_v38  ;;  %1055 = vmatpush.bf16.msrb.mxu1 %v2350_v35  ;;  %v2362_v47 = vor.u32 %v3016_v43, %v2359_v44  ;;  %v3011_v49 = vld [vmem:[#allocation22 + $0x4] sm:$0xf]  ;;  %v2581_v40 = vld [vmem:[#allocation21 + $0xe8] sm:$0xf] }
 0x168   :  { %v659_v52 = vadd.f32 %v655_v48, %v652_v55  ;;  %v660_v5 = vadd.f32 %v656_v60, %v653_v62  ;;  %v3013_v48 = vld [vmem:[#allocation22 + $0xc] sm:$0xf0]  ;;  %v2341_v55 = vld [vmem:[#allocation22 + $0x8] sm:$0xf]  ;;  %v2575_v62 = vld [vmem:[#allocation21 + $0xf0] sm:$0xf0] }
 0x169   :  { %v525_v58 = vmul.f32 %v3168_v27, %v524_v57  ;;  %1089 = vmatpush.bf16.msra.mxu0 %v2442_v50  ;;  %1067 = vmatpush.bf16.msrb.mxu2 %v2370_v26  ;;  %v2335_v50 = vld [vmem:[#allocation22 + $0x10] sm:$0xf0]  ;;  %v2334_v51 = vor.u32 %v3013_v48, %v2333_v46  ;;  %v2342_v57 = vor.u32 %v3014_v37, %v2341_v55  ;;  %v3002_v29 = vld [vmem:[#allocation21 + $0xb4] sm:$0xf0]  ;;  %v2997_v30 = vld [vmem:[#allocation21 + $0x8c] sm:$0xf0] }
 0x16a   :  { %v661_v61 = vpack.c.bf16 %v659_v52, %v659_v52  ;;  %v662_v7 = vpack.c.bf16 %v660_v5, %v660_v5  ;;  %v2338_v54 = vor.u32 %v3011_v49, %v2335_v50  ;;  %v2343_v52 = vld [vmem:[#allocation22 + $0x18] sm:$0xf0]  ;;  %v2557_v5 = vld [vmem:[#allocation21 + $0xc0] sm:$0xf]  ;;  %v2550_v21 = vor.u32 %v3002_v29, %v2549_v19  ;;  %v2995_v31 = vld [vmem:[#allocation21 + $0x84] sm:$0xf] }
 0x16b   :  { %v529_v0 = vsel %vm528_vm10, %v3168_v27, %v525_v58  ;;  %v2374_v27 = vor.u32 %v3022_v24, %v2373_v23  ;;  %v2573_v58 = vld [vmem:[#allocation21 + $0xe0] sm:$0xf]  ;;  %1056 = vmatpush.bf16.msrb.mxu1 %v2334_v51  ;;  %v3000_v23 = vld [vmem:[#allocation21 + $0xac] sm:$0xf]  ;;  %v2551_v24 = vld [vmem:[#allocation21 + $0xb8] sm:$0xf0] }
 0x16c   :  { %799 = vmatmul.bf16.vlgmr.msra.gmra.mxu3 %v661_v61  ;;  %v530_v1 = vmul.f32 %v529_v0, %v3813_v45  ;;  %v2390_v45 = vor.u32 %v3026_v14, %v2389_v13  ;;  %v3007_v61 = vld [vmem:[#allocation21 + $0xe4] sm:$0xf]  ;;  %v3010_v0 = vld [vmem:[#allocation21 + $0xf4] sm:$0xf0]  ;;  %v3004_v13 = vld [vmem:[#allocation21 + $0xcc] sm:$0xf]  ;;  %v2554_v26 = vor.u32 %v3000_v23, %v2551_v24 }
 0x16d   :  { %1090 = vmatpush.bf16.msra.mxu0 %v2426_v59  ;;  %1068 = vmatpush.bf16.msrb.mxu2 %v2354_v42  ;;  %v2346_v59 = vor.u32 %v3012_v56, %v2343_v52  ;;  %v2578_v63 = vor.u32 %v3007_v61, %v2575_v62  ;;  %v2567_v14 = vld [vmem:[#allocation21 + $0xd8] sm:$0xf0]  ;;  %v2527_v33 = vld [vmem:[#allocation21 + $0x90] sm:$0xf0]  ;;  %v2533_v34 = vld [vmem:[#allocation21 + $0x88] sm:$0xf] }
 0x16e   :  { %v534_v4 = vmul.f32 %v3155_v39, %v530_v1  ;;  %1079 = vmatpush.bf16.msrb.mxu3 %v2390_v45  ;;  %v3009_v39 = vld [vmem:[#allocation21 + $0xec] sm:$0xf0]  ;;  %v3008_v1 = vld [vmem:[#allocation21 + $0xec] sm:$0xf]  ;;  %v2570_v15 = vor.u32 %v3004_v13, %v2567_v14  ;;  %v2541_v45 = vld [vmem:[#allocation21 + $0xa0] sm:$0xf]  ;;  %v2530_v35 = vor.u32 %v2995_v31, %v2527_v33  ;;  %v817_v33 = vstv %s3970_s25 }
 0x16f   :  { %v2574_v60 = vor.u32 %v3009_v39, %v2573_v58  ;;  %v2998_v22 = vld [vmem:[#allocation21 + $0x94] sm:$0xf0]  ;;  %v2996_v38 = vld [vmem:[#allocation21 + $0x8c] sm:$0xf]  ;;  %v2535_v41 = vld [vmem:[#allocation21 + $0x98] sm:$0xf0] }
 0x170   :  { %v538_v6 = vadd.f32 %v3156_v2, %v534_v4  ;;  %v2583_v2 = vld [vmem:[#allocation21 + $0xf8] sm:$0xf0]  ;;  %v2534_v36 = vor.u32 %v2998_v22, %v2533_v34  ;;  %v2538_v42 = vor.u32 %v2996_v38, %v2535_v41  ;;  %v2993_v43 = vld [vmem:[#allocation21 + $0x6c] sm:$0xf0]  ;;  %v2991_v44 = vld [vmem:[#allocation21 + $0x64] sm:$0xf] }
 0x171   :  { %1091 = vmatpush.bf16.msra.mxu0 %v2410_v3  ;;  %1069 = vmatpush.bf16.msrb.mxu2 %v2338_v54  ;;  %v2582_v3 = vor.u32 %v3010_v0, %v2581_v40  ;;  %v2586_v4 = vor.u32 %v3008_v1, %v2583_v2  ;;  %v2517_v48 = vld [vmem:[#allocation21 + $0x68] sm:$0xf]  ;;  %v2994_v49 = vld [vmem:[#allocation21 + $0x74] sm:$0xf0]  ;;  %v2992_v54 = vld [vmem:[#allocation21 + $0x6c] sm:$0xf] }
 0x172   :  { %v539_v53 = vpack.c.bf16 %v538_v6, %v538_v6  ;;  %1080 = vmatpush.bf16.msrb.mxu3 %v2374_v27  ;;  %1261 = vmatpush.bf16.msra.mxu1 %v2574_v60  ;;  %v3005_v6 = vld [vmem:[#allocation21 + $0xcc] sm:$0xf0]  ;;  %v2525_v27 = vld [vmem:[#allocation21 + $0x80] sm:$0xf]  ;;  %v2518_v51 = vor.u32 %v2994_v49, %v2517_v48  ;;  %v2519_v55 = vld [vmem:[#allocation21 + $0x78] sm:$0xf0] }
 0x173   :  { %v2493_v37 = vld [vmem:[#allocation21 + $0x40] sm:$0xf]  ;;  %v2522_v56 = vor.u32 %v2992_v54, %v2519_v55  ;;  %v2987_v52 = vld [vmem:[#allocation21 + $0x44] sm:$0xf]  ;;  %v2495_v58 = vld [vmem:[#allocation21 + $0x50] sm:$0xf0] }
 0x174   :  { %612 = vmatmul.bf16.vlgmr.msra.gmra.mxu2 %v539_v53  ;;  %812 = vmatmul.bf16.vlgmr.msrb.gmra.mxu0 %v662_v7  ;;  %v3003_v53 = vld [vmem:[#allocation21 + $0xc4] sm:$0xf]  ;;  %v2558_v7 = vor.u32 %v3005_v6, %v2557_v5  ;;  %v2498_v61 = vor.u32 %v2987_v52, %v2495_v58  ;;  %v2501_v62 = vld [vmem:[#allocation21 + $0x48] sm:$0xf]  ;;  %v2990_v40 = vld [vmem:[#allocation21 + $0x54] sm:$0xf0] }
 0x175   :  { %1092 = vmatpush.bf16.msra.mxu0 %v2394_v18  ;;  %1274 = vmatpush.bf16.msra.mxu2 %v2578_v63  ;;  %v2562_v11 = vor.u32 %v3003_v53, %v2559_v8  ;;  %v2542_v18 = vor.u32 %v3001_v16, %v2541_v45  ;;  %v2988_v63 = vld [vmem:[#allocation21 + $0x4c] sm:$0xf]  ;;  %v2502_v0 = vor.u32 %v2990_v40, %v2501_v62  ;;  %v2503_v1 = vld [vmem:[#allocation21 + $0x58] sm:$0xf0]  ;;  %v2477_v2 = vld [vmem:[#allocation21 + $0x20] sm:$0xf] }
 0x176   :  { %1081 = vmatpush.bf16.msrb.mxu3 %v2358_v25  ;;  %1262 = vmatpush.bf16.msra.mxu1 %v2558_v7  ;;  %v2509_v25 = vld [vmem:[#allocation21 + $0x60] sm:$0xf]  ;;  %v2983_v5 = vld [vmem:[#allocation21 + $0x24] sm:$0xf]  ;;  %v2479_v6 = vld [vmem:[#allocation21 + $0x30] sm:$0xf0] }
 0x177   :  { %v2510_v46 = vor.u32 %v2993_v43, %v2509_v25  ;;  %v2485_v53 = vld [vmem:[#allocation21 + $0x28] sm:$0xf]  ;;  %v2986_v8 = vld [vmem:[#allocation21 + $0x34] sm:$0xf0]  ;;  %v2984_v9 = vld [vmem:[#allocation21 + $0x2c] sm:$0xf] }
 0x178   :  { %v2487_v10 = vld [vmem:[#allocation21 + $0x38] sm:$0xf0]  ;;  %v2461_v13 = vld [vmem:[#allocation21] sm:$0xf]  ;;  %v2981_v14 = vld [vmem:[#allocation21 + $0xc] sm:$0xf0] }
 0x179   :  { %1093 = vmatpush.bf16.msra.mxu0 %v2378_v32  ;;  %1275 = vmatpush.bf16.msra.mxu2 %v2562_v11  ;;  %v2526_v32 = vor.u32 %v2997_v30, %v2525_v27  ;;  %v2482_v11 = vor.u32 %v2983_v5, %v2479_v6  ;;  %v2490_v45 = vor.u32 %v2984_v9, %v2487_v10  ;;  %v2463_v16 = vld [vmem:[#allocation21 + $0x10] sm:$0xf0]  ;;  %v2469_v17 = vld [vmem:[#allocation21 + $0x8] sm:$0xf]  ;;  %v2980_v28 = vld [vmem:[#allocation21 + $0xc] sm:$0xf] }
 0x17a   :  { %1082 = vmatpush.bf16.msrb.mxu3 %v2342_v57  ;;  %1263 = vmatpush.bf16.msra.mxu1 %v2542_v18  ;;  %v2989_v57 = vld [vmem:[#allocation21 + $0x4c] sm:$0xf0]  ;;  %v2982_v18 = vld [vmem:[#allocation21 + $0x14] sm:$0xf0]  ;;  %v2471_v19 = vld [vmem:[#allocation21 + $0x18] sm:$0xf0]  ;;  %v2462_v29 = vor.u32 %v2981_v14, %v2461_v13 }
 0x17b   :  { %v2494_v60 = vor.u32 %v2989_v57, %v2493_v37  ;;  %v2470_v24 = vor.u32 %v2982_v18, %v2469_v17  ;;  %v2709_v48 = vld [vmem:[#allocation24 + $0xf0] sm:$0xf]  ;;  %v3090_v54 = vld [vmem:[#allocation24 + $0x174] sm:$0xf0]  ;;  %v2637_v58 = vld [vmem:[#allocation24 + $0x60] sm:$0xf] }
 0x17c   :  { %v3106_v57 = vld [vmem:[#allocation24 + $0x1f4] sm:$0xf0]  ;;  %v2765_v62 = vld [vmem:[#allocation24 + $0x160] sm:$0xf]  ;;  %v3088_v40 = vld [vmem:[#allocation24 + $0x164] sm:$0xf0] }
 0x17d   :  { %1094 = vmatpush.bf16.msra.mxu0 %v2362_v47  ;;  %1276 = vmatpush.bf16.msra.mxu2 %v2546_v20  ;;  %v2511_v47 = vld [vmem:[#allocation21 + $0x70] sm:$0xf0]  ;;  %v3054_v5 = vld [vmem:[#allocation24 + $0x54] sm:$0xf0]  ;;  %v2693_v6 = vld [vmem:[#allocation24 + $0xd0] sm:$0xf] }
 0x17e   :  { %1287 = vmatpush.bf16.msra.mxu3 %v2582_v3  ;;  %1264 = vmatpush.bf16.msra.mxu1 %v2526_v32  ;;  %v2514_v50 = vor.u32 %v2991_v44, %v2511_v47  ;;  %v2985_v3 = vld [vmem:[#allocation21 + $0x2c] sm:$0xf0]  ;;  %v820_v32 = vstv %s819_s26  ;;  %v3058_v47 = vld [vmem:[#allocation24 + $0x74] sm:$0xf0]  ;;  %v3068_v18 = vld [vmem:[#allocation24 + $0xc4] sm:$0xf0] }
 0x17f   :  { %v2478_v7 = vor.u32 %v2985_v3, %v2477_v2  ;;  %v3104_v2 = vld [vmem:[#allocation24 + $0x1e4] sm:$0xf0]  ;;  %v3086_v10 = vld [vmem:[#allocation24 + $0x154] sm:$0xf0] }
 0x180   :  { %v3102_v13 = vld [vmem:[#allocation24 + $0x1d4] sm:$0xf0] }
 0x181   :  { %1095 = vmatpush.bf16.msra.mxu0 %v2346_v59  ;;  %1277 = vmatpush.bf16.msra.mxu2 %v2530_v35 }
 0x182   :  { %1288 = vmatpush.bf16.msra.mxu3 %v2566_v12  ;;  %1265 = vmatpush.bf16.msra.mxu1 %v2510_v46  ;;  %v2486_v12 = vor.u32 %v2986_v8, %v2485_v53  ;;  %v2645_v46 = vld [vmem:[#allocation24 + $0x70] sm:$0xf] }
 0x183   :  { %v2646_v49 = vor.u32 %v3058_v47, %v2645_v46  ;;  %v2757_v8 = vld [vmem:[#allocation24 + $0x150] sm:$0xf]  ;;  %v3064_v46 = vld [vmem:[#allocation24 + $0xa4] sm:$0xf0]  ;;  %v2733_v47 = vld [vmem:[#allocation24 + $0x120] sm:$0xf] }
 0x185   :  { %1300 = vmatpush.bf16.msrb.mxu0 %v2586_v4  ;;  %1278 = vmatpush.bf16.msra.mxu2 %v2514_v50  ;;  %v2506_v4 = vor.u32 %v2988_v63, %v2503_v1  ;;  %v3074_v50 = vld [vmem:[#allocation24 + $0xf4] sm:$0xf0]  ;;  %v2829_v1 = vld [vmem:[#allocation24 + $0x1e0] sm:$0xf] }
 0x186   :  { %1289 = vmatpush.bf16.msra.mxu3 %v2550_v21  ;;  %1266 = vmatpush.bf16.msra.mxu1 %v2494_v60  ;;  %v2710_v55 = vor.u32 %v3074_v50, %v2709_v48  ;;  %v2830_v3 = vor.u32 %v3104_v2, %v2829_v1  ;;  %v3080_v48 = vld [vmem:[#allocation24 + $0x124] sm:$0xf0]  ;;  %v2589_v2 = vld [vmem:[#allocation24] sm:$0xf] }
 0x187   :  { %v2734_v50 = vor.u32 %v3080_v48, %v2733_v47  ;;  %v3069_v47 = vld [vmem:[#allocation24 + $0xd4] sm:$0xf]  ;;  %v2695_v48 = vld [vmem:[#allocation24 + $0xd8] sm:$0xf0] }
 0x189   :  { %1301 = vmatpush.bf16.msrb.mxu0 %v2570_v15  ;;  %1279 = vmatpush.bf16.msra.mxu2 %v2498_v61  ;;  %v2979_v15 = vld [vmem:[#allocation21 + $0x4] sm:$0xf]  ;;  %v3072_v61 = vld [vmem:[#allocation24 + $0xe4] sm:$0xf0] }
 0x18a   :  { %1290 = vmatpush.bf16.msra.mxu3 %v2534_v36  ;;  %1267 = vmatpush.bf16.msra.mxu1 %v2478_v7  ;;  %v2466_v23 = vor.u32 %v2979_v15, %v2463_v16  ;;  %v3070_v7 = vld [vmem:[#allocation24 + $0xd4] sm:$0xf0]  ;;  %v2621_v15 = vld [vmem:[#allocation24 + $0x40] sm:$0xf] }
 0x18b   :  { %v2694_v9 = vor.u32 %v3070_v7, %v2693_v6  ;;  %v2685_v16 = vld [vmem:[#allocation24 + $0xc0] sm:$0xf]  ;;  %v3060_v6 = vld [vmem:[#allocation24 + $0x84] sm:$0xf0] }
 0x18c   :  { %v3076_v7 = vld [vmem:[#allocation24 + $0x104] sm:$0xf0] }
 0x18d   :  { %1302 = vmatpush.bf16.msrb.mxu0 %v2554_v26  ;;  %1280 = vmatpush.bf16.msra.mxu2 %v2482_v11  ;;  %v2474_v26 = vor.u32 %v2980_v28, %v2471_v19  ;;  %v2821_v11 = vld [vmem:[#allocation24 + $0x1d0] sm:$0xf]  ;;  %v2749_v28 = vld [vmem:[#allocation24 + $0x140] sm:$0xf]  ;;  %v3084_v19 = vld [vmem:[#allocation24 + $0x144] sm:$0xf0] }
 0x18e   :  { %1291 = vmatpush.bf16.msra.mxu3 %v2518_v51  ;;  %1268 = vmatpush.bf16.msra.mxu1 %v2462_v29  ;;  %v2773_v51 = vld [vmem:[#allocation24 + $0x170] sm:$0xf]  ;;  %v2822_v14 = vor.u32 %v3102_v13, %v2821_v11  ;;  %v2686_v29 = vor.u32 %v3068_v18, %v2685_v16  ;;  %v2781_v11 = vld [vmem:[#allocation24 + $0x180] sm:$0xf]  ;;  %v3057_v13 = vld [vmem:[#allocation24 + $0x74] sm:$0xf] }
 0x18f   :  { %v2774_v37 = vor.u32 %v3090_v54, %v2773_v51  ;;  %v2797_v51 = vld [vmem:[#allocation24 + $0x1a0] sm:$0xf]  ;;  %v3096_v54 = vld [vmem:[#allocation24 + $0x1a4] sm:$0xf0]  ;;  %v3073_v16 = vld [vmem:[#allocation24 + $0xf4] sm:$0xf] }
 0x191   :  { %1303 = vmatpush.bf16.msrb.mxu0 %v2538_v42  ;;  %1281 = vmatpush.bf16.msra.mxu2 %v2466_v23  ;;  %v3100_v23 = vld [vmem:[#allocation24 + $0x1c4] sm:$0xf0] }
 0x192   :  { %1292 = vmatpush.bf16.msra.mxu3 %v2502_v0  ;;  %v2766_v0 = vor.u32 %v3088_v40, %v2765_v62 }
 0x195   :  { %1304 = vmatpush.bf16.msrb.mxu0 %v2522_v56  ;;  %v2837_v56 = vld [vmem:[#allocation24 + $0x1f0] sm:$0xf] }
 0x196   :  { %1293 = vmatpush.bf16.msra.mxu3 %v2486_v12  ;;  %v2838_v52 = vor.u32 %v3106_v57, %v2837_v56  ;;  %v2758_v12 = vor.u32 %v3086_v10, %v2757_v8  ;;  %v2597_v56 = vld [vmem:[#allocation24 + $0x10] sm:$0xf]  ;;  %v3046_v57 = vld [vmem:[#allocation24 + $0x14] sm:$0xf0] }
 0x199   :  { %1305 = vmatpush.bf16.msrb.mxu0 %v2506_v4  ;;  %v2629_v4 = vld [vmem:[#allocation24 + $0x50] sm:$0xf] }
 0x19a   :  { %1294 = vmatpush.bf16.msra.mxu3 %v2470_v24  ;;  %v2630_v53 = vor.u32 %v3054_v5, %v2629_v4  ;;  %v2653_v4 = vld [vmem:[#allocation24 + $0x80] sm:$0xf] }
 0x19d   :  { %1306 = vmatpush.bf16.msrb.mxu0 %v2490_v45  ;;  %v3052_v45 = vld [vmem:[#allocation24 + $0x44] sm:$0xf0] }
 0x19e   :  { %v2622_v17 = vor.u32 %v3052_v45, %v2621_v15  ;;  %v2647_v45 = vld [vmem:[#allocation24 + $0x78] sm:$0xf0] }
 0x1a1   :  { %1307 = vmatpush.bf16.msrb.mxu0 %v2474_v26  ;;  %v2613_v26 = vld [vmem:[#allocation24 + $0x30] sm:$0xf] }
 0x1e1   :  { %v3859_v39 = vpop.f32.mrf.mxu0  ;;  %v3861_v59 = vpop.f32.mrf.mxu1 }
 0x1e2   :  { %v497_v43 = vadd.f32 %v3861_v59, %v3859_v39  ;;  %v3056_v39 = vld [vmem:[#allocation24 + $0x64] sm:$0xf0]  ;;  %v2701_v59 = vld [vmem:[#allocation24 + $0xe0] sm:$0xf] }
 0x1e3   :  { %v2638_v60 = vor.u32 %v3056_v39, %v2637_v58  ;;  %v2702_v63 = vor.u32 %v3072_v61, %v2701_v59  ;;  %v2598_v39 = vor.u32 %v3046_v57, %v2597_v56  ;;  %v3062_v59 = vld [vmem:[#allocation24 + $0x94] sm:$0xf0]  ;;  %v3101_v57 = vld [vmem:[#allocation24 + $0x1d4] sm:$0xf] }
 0x1e4   :  { %v823_v44 = vpack.c.bf16 %v497_v43, %v497_v43  ;;  %v2669_v43 = vld [vmem:[#allocation24 + $0xa0] sm:$0xf]  ;;  %v3078_v61 = vld [vmem:[#allocation24 + $0x114] sm:$0xf0] }
 0x1e9   :  { %v485_v20 = vpop.f32.mrf.mxu0  ;;  %v498_v21 = vpop.f32.mrf.mxu1 }
 0x1ea   :  { %v2750_v20 = vor.u32 %v3084_v19, %v2749_v28  ;;  %v2813_v21 = vld [vmem:[#allocation24 + $0x1c0] sm:$0xf]  ;;  %v2650_v28 = vor.u32 %v3057_v13, %v2647_v45 }
 0x1eb   :  { %v2814_v24 = vor.u32 %v3100_v23, %v2813_v21  ;;  %v3105_v21 = vld [vmem:[#allocation24 + $0x1f4] sm:$0xf] }
 0x1ef   :  { %v800_v27 = vpop.f32.mrf.mxu3 }
 0x1f1   :  { %v813_v30 = vpop.f32.mrf.mxu0 }
 0x1f2   :  { %v814_v31 = vadd.f32 %v813_v30, %v800_v27  ;;  %v3050_v27 = vld [vmem:[#allocation24 + $0x34] sm:$0xf0] }
 0x1f3   :  { %v2614_v30 = vor.u32 %v3050_v27, %v2613_v26  ;;  %v2839_v27 = vld [vmem:[#allocation24 + $0x1f8] sm:$0xf0] }
 0x1f4   :  { %v821_v35 = vmul.f32 %v820_v32, %v814_v31  ;;  %v2677_v31 = vld [vmem:[#allocation24 + $0xb0] sm:$0xf]  ;;  %v3066_v32 = vld [vmem:[#allocation24 + $0xb4] sm:$0xf0] }
 0x1f7   :  { %v613_v34 = vpop.f32.mrf.mxu2  ;;  %v802_v22 = vpop.f32.mrf.mxu3 }
 0x1f8   :  { %v818_v36 = vmul.f32 %v817_v33, %v613_v34  ;;  %v2741_v33 = vld [vmem:[#allocation24 + $0x130] sm:$0xf]  ;;  %v2678_v34 = vor.u32 %v3066_v32, %v2677_v31  ;;  %v3082_v22 = vld [vmem:[#allocation24 + $0x134] sm:$0xf0]  ;;  %v2639_v31 = vld [vmem:[#allocation24 + $0x68] sm:$0xf0]  ;;  %v2842_v32 = vor.u32 %v3105_v21, %v2839_v27 }
 0x1f9   :  { %v815_v38 = vpop.f32.mrf.mxu0  ;;  %v3081_v27 = vld [vmem:[#allocation24 + $0x134] sm:$0xf] }
 0x1fa   :  { %v822_v41 = vadd.f32 %v821_v35, %v818_v36  ;;  %v2805_v35 = vld [vmem:[#allocation24 + $0x1b0] sm:$0xf]  ;;  %v3098_v36 = vld [vmem:[#allocation24 + $0x1b4] sm:$0xf0]  ;;  %v2742_v38 = vor.u32 %v3082_v22, %v2741_v33  ;;  %v2703_v22 = vld [vmem:[#allocation24 + $0xe8] sm:$0xf0] }
 0x1fc   :  { %v856_v42 = vpack.c.bf16 %v822_v41, %v822_v41  ;;  %v2806_v41 = vor.u32 %v3098_v36, %v2805_v35  ;;  %v3087_v35 = vld [vmem:[#allocation24 + $0x164] sm:$0xf] }
 0x1fe   :  { %1057 = vmatmul.bf16.vlgmr.msrb.gmra.mxu1 %v856_v42  ;;  %1070 = vmatmul.bf16.vlgmr.msrb.gmra.mxu2 %v856_v42 }
 0x1ff   :  { %1083 = vmatmul.bf16.vlgmr.msrb.gmra.mxu3 %v856_v42  ;;  %1096 = vmatmul.bf16.vlgmr.msra.gmra.mxu0 %v856_v42  ;;  %v615_v25 = vpop.f32.mrf.mxu2  ;;  %v2605_v42 = vld [vmem:[#allocation24 + $0x20] sm:$0xf] }
 0x200   :  { %1773 = vmatpush.bf16.msrb.mxu1 %v2646_v49  ;;  %1786 = vmatpush.bf16.msrb.mxu2 %v2710_v55  ;;  %v3048_v25 = vld [vmem:[#allocation24 + $0x24] sm:$0xf0]  ;;  %v2670_v49 = vor.u32 %v3064_v46, %v2669_v43  ;;  %v2798_v55 = vor.u32 %v3096_v54, %v2797_v51  ;;  %v2631_v46 = vld [vmem:[#allocation24 + $0x58] sm:$0xf0] }
 0x201   :  { %1799 = vmatpush.bf16.msrb.mxu3 %v2774_v37  ;;  %1812 = vmatpush.bf16.msra.mxu0 %v2838_v52  ;;  %v2661_v52 = vld [vmem:[#allocation24 + $0x90] sm:$0xf] }
 0x202   :  { %v2662_v62 = vor.u32 %v3062_v59, %v2661_v52  ;;  %v2823_v52 = vld [vmem:[#allocation24 + $0x1d8] sm:$0xf0]  ;;  %v2698_v59 = vor.u32 %v3069_v47, %v2695_v48  ;;  %v2671_v47 = vld [vmem:[#allocation24 + $0xa8] sm:$0xf0]  ;;  %v3079_v48 = vld [vmem:[#allocation24 + $0x124] sm:$0xf] }
 0x204   :  { %1774 = vmatpush.bf16.msrb.mxu1 %v2638_v60  ;;  %1787 = vmatpush.bf16.msrb.mxu2 %v2702_v63  ;;  %v2725_v60 = vld [vmem:[#allocation24 + $0x110] sm:$0xf] }
 0x205   :  { %1800 = vmatpush.bf16.msrb.mxu3 %v2766_v0  ;;  %1813 = vmatpush.bf16.msra.mxu0 %v2830_v3  ;;  %v2726_v40 = vor.u32 %v3078_v61, %v2725_v60  ;;  %v2789_v63 = vld [vmem:[#allocation24 + $0x190] sm:$0xf]  ;;  %v3094_v0 = vld [vmem:[#allocation24 + $0x194] sm:$0xf0]  ;;  %v3044_v3 = vld [vmem:[#allocation24 + $0x4] sm:$0xf0] }
 0x206   :  { %v2790_v1 = vor.u32 %v3094_v0, %v2789_v63  ;;  %v2590_v5 = vor.u32 %v3044_v3, %v2589_v2  ;;  %v3051_v61 = vld [vmem:[#allocation24 + $0x44] sm:$0xf]  ;;  %v2826_v0 = vor.u32 %v3101_v57, %v2823_v52  ;;  %v2751_v3 = vld [vmem:[#allocation24 + $0x148] sm:$0xf0] }
 0x207   :  { %v3083_v2 = vld [vmem:[#allocation24 + $0x144] sm:$0xf] }
 0x208   :  { %1775 = vmatpush.bf16.msrb.mxu1 %v2630_v53  ;;  %1788 = vmatpush.bf16.msrb.mxu2 %v2694_v9  ;;  %v2717_v53 = vld [vmem:[#allocation24 + $0x100] sm:$0xf]  ;;  %v2654_v9 = vor.u32 %v3060_v6, %v2653_v4  ;;  %v3099_v6 = vld [vmem:[#allocation24 + $0x1c4] sm:$0xf] }
 0x209   :  { %1801 = vmatpush.bf16.msrb.mxu3 %v2758_v12  ;;  %1814 = vmatpush.bf16.msra.mxu0 %v2822_v14  ;;  %v2718_v10 = vor.u32 %v3076_v7, %v2717_v53  ;;  %v3092_v12 = vld [vmem:[#allocation24 + $0x184] sm:$0xf0]  ;;  %v2815_v53 = vld [vmem:[#allocation24 + $0x1c8] sm:$0xf0] }
 0x20a   :  { %v2782_v15 = vor.u32 %v3092_v12, %v2781_v11  ;;  %v2754_v12 = vor.u32 %v3083_v2, %v2751_v3  ;;  %v3061_v3 = vld [vmem:[#allocation24 + $0x94] sm:$0xf] }
 0x20c   :  { %1776 = vmatpush.bf16.msrb.mxu1 %v2622_v17  ;;  %1789 = vmatpush.bf16.msrb.mxu2 %v2686_v29  ;;  %v2711_v17 = vld [vmem:[#allocation24 + $0xf8] sm:$0xf0]  ;;  %v3089_v29 = vld [vmem:[#allocation24 + $0x174] sm:$0xf] }
 0x20d   :  { %1802 = vmatpush.bf16.msrb.mxu3 %v2750_v20  ;;  %1815 = vmatpush.bf16.msra.mxu0 %v2814_v24  ;;  %v2714_v19 = vor.u32 %v3073_v16, %v2711_v17  ;;  %v2775_v20 = vld [vmem:[#allocation24 + $0x178] sm:$0xf0]  ;;  %v3882_v24 = vld [vmem:[%s3947_s15] sm:$0xf]  ;;  %v3049_v16 = vld [vmem:[#allocation24 + $0x34] sm:$0xf] }
 0x20e   :  { %1269 = vmatmul.bf16.vlgmr.msra.gmra.mxu1 %v823_v44  ;;  %1282 = vmatmul.bf16.vlgmr.msra.gmra.mxu2 %v823_v44  ;;  %v2778_v26 = vor.u32 %v3089_v29, %v2775_v20  ;;  %v1315_v54 = vperm.slane %v3882_v24, 0 }
 0x20f   :  { %1295 = vmatmul.bf16.vlgmr.msra.gmra.mxu3 %v823_v44  ;;  %1308 = vmatmul.bf16.vlgmr.msrb.gmra.mxu0 %v823_v44  ;;  %v2606_v44 = vor.u32 %v3048_v25, %v2605_v42  ;;  %v2831_v42 = vld [vmem:[#allocation24 + $0x1e8] sm:$0xf0] }
 0x210   :  { %1777 = vmatpush.bf16.msrb.mxu1 %v2614_v30  ;;  %1790 = vmatpush.bf16.msrb.mxu2 %v2678_v34  ;;  %v3055_v30 = vld [vmem:[#allocation24 + $0x64] sm:$0xf] }
 0x211   :  { %1803 = vmatpush.bf16.msrb.mxu3 %v2742_v38  ;;  %1816 = vmatpush.bf16.msra.mxu0 %v2806_v41  ;;  %v2642_v33 = vor.u32 %v3055_v30, %v2639_v31  ;;  %v3071_v34 = vld [vmem:[#allocation24 + $0xe4] sm:$0xf]  ;;  %v2767_v38 = vld [vmem:[#allocation24 + $0x168] sm:$0xf0] }
 0x212   :  { %v2706_v36 = vor.u32 %v3071_v34, %v2703_v22  ;;  %v3103_v41 = vld [vmem:[#allocation24 + $0x1e4] sm:$0xf]  ;;  %v2770_v25 = vor.u32 %v3087_v35, %v2767_v38  ;;  %v3097_v34 = vld [vmem:[#allocation24 + $0x1b4] sm:$0xf]  ;;  %v2807_v22 = vld [vmem:[#allocation24 + $0x1b8] sm:$0xf0] }
 0x213   :  { %v2834_v43 = vor.u32 %v3103_v41, %v2831_v42  ;;  %v2810_v41 = vor.u32 %v3097_v34, %v2807_v22  ;;  %v3047_v42 = vld [vmem:[#allocation24 + $0x24] sm:$0xf] }
 0x214   :  { %1778 = vmatpush.bf16.msrb.mxu1 %v2606_v44  ;;  %1791 = vmatpush.bf16.msrb.mxu2 %v2670_v49  ;;  %v3053_v44 = vld [vmem:[#allocation24 + $0x54] sm:$0xf] }
 0x215   :  { %1804 = vmatpush.bf16.msrb.mxu3 %v2734_v50  ;;  %1817 = vmatpush.bf16.msra.mxu0 %v2798_v55  ;;  %v3085_v49 = vld [vmem:[#allocation24 + $0x154] sm:$0xf]  ;;  %v2759_v50 = vld [vmem:[#allocation24 + $0x158] sm:$0xf0]  ;;  %v1318_v55 = vperm.slane %v3882_v24, 3  ;;  %v2634_v56 = vor.u32 %v3053_v44, %v2631_v46 }
 0x216   :  { %v2762_v60 = vor.u32 %v3085_v49, %v2759_v50  ;;  %v2735_v49 = vld [vmem:[#allocation24 + $0x128] sm:$0xf0] }
 0x217   :  { %v2738_v52 = vor.u32 %v3079_v48, %v2735_v49 }
 0x218   :  { %1779 = vmatpush.bf16.msrb.mxu1 %v2598_v39  ;;  %1792 = vmatpush.bf16.msrb.mxu2 %v2662_v62  ;;  %v2623_v62 = vld [vmem:[#allocation24 + $0x48] sm:$0xf0] }
 0x219   :  { %1805 = vmatpush.bf16.msrb.mxu3 %v2726_v40  ;;  %1818 = vmatpush.bf16.msra.mxu0 %v2790_v1  ;;  %v3067_v40 = vld [vmem:[#allocation24 + $0xc4] sm:$0xf]  ;;  %v2687_v1 = vld [vmem:[#allocation24 + $0xc8] sm:$0xf0] }
 0x21a   :  { %v2690_v11 = vor.u32 %v3067_v40, %v2687_v1  ;;  %v2599_v40 = vld [vmem:[#allocation24 + $0x18] sm:$0xf0] }
 0x21c   :  { %1780 = vmatpush.bf16.msrb.mxu1 %v2590_v5  ;;  %1793 = vmatpush.bf16.msrb.mxu2 %v2654_v9  ;;  %v2626_v9 = vor.u32 %v3051_v61, %v2623_v62  ;;  %v3045_v62 = vld [vmem:[#allocation24 + $0x14] sm:$0xf] }
 0x21d   :  { %1806 = vmatpush.bf16.msrb.mxu3 %v2718_v10  ;;  %1819 = vmatpush.bf16.msra.mxu0 %v2782_v15  ;;  %v2818_v15 = vor.u32 %v3099_v6, %v2815_v53  ;;  %v2602_v2 = vor.u32 %v3045_v62, %v2599_v40  ;;  %v3122_v62 = vld [vmem:[#allocation25 + $0x78] sm:$0xff] }
 0x21e   :  { %v3110_v40 = vld [vmem:[#allocation25 + $0x18] sm:$0xff] }
 0x220   :  { %1825 = vmatpush.bf16.msra.mxu1 %v2650_v28  ;;  %1838 = vmatpush.bf16.msra.mxu2 %v2714_v19  ;;  %v2615_v28 = vld [vmem:[#allocation24 + $0x38] sm:$0xf0] }
 0x221   :  { %1851 = vmatpush.bf16.msra.mxu3 %v2778_v26  ;;  %1864 = vmatpush.bf16.msrb.mxu0 %v2842_v32  ;;  %v2618_v21 = vor.u32 %v3049_v16, %v2615_v28  ;;  %v2679_v26 = vld [vmem:[#allocation24 + $0xb8] sm:$0xf0]  ;;  %v2591_v16 = vld [vmem:[#allocation24 + $0x8] sm:$0xf0] }
 0x222   :  { %v2655_v28 = vld [vmem:[#allocation24 + $0x88] sm:$0xf0] }
 0x224   :  { %1826 = vmatpush.bf16.msra.mxu1 %v2642_v33  ;;  %1839 = vmatpush.bf16.msra.mxu2 %v2706_v36  ;;  %v2743_v33 = vld [vmem:[#allocation24 + $0x138] sm:$0xf0] }
 0x225   :  { %1852 = vmatpush.bf16.msra.mxu3 %v2770_v25  ;;  %1865 = vmatpush.bf16.msrb.mxu0 %v2834_v43  ;;  %v2746_v38 = vor.u32 %v3081_v27, %v2743_v33  ;;  %v2607_v25 = vld [vmem:[#allocation24 + $0x28] sm:$0xf0]  ;;  %v3063_v43 = vld [vmem:[#allocation24 + $0xa4] sm:$0xf] }
 0x228   :  { %1827 = vmatpush.bf16.msra.mxu1 %v2634_v56  ;;  %1840 = vmatpush.bf16.msra.mxu2 %v2698_v59 }
 0x229   :  { %1853 = vmatpush.bf16.msra.mxu3 %v2762_v60  ;;  %1866 = vmatpush.bf16.msrb.mxu0 %v2826_v0 }
 0x22c   :  { %1828 = vmatpush.bf16.msra.mxu1 %v2626_v9  ;;  %1841 = vmatpush.bf16.msra.mxu2 %v2690_v11  ;;  %v2727_v9 = vld [vmem:[#allocation24 + $0x118] sm:$0xf0]  ;;  %v3093_v11 = vld [vmem:[#allocation24 + $0x194] sm:$0xf] }
 0x22d   :  { %1854 = vmatpush.bf16.msra.mxu3 %v2754_v12  ;;  %1867 = vmatpush.bf16.msrb.mxu0 %v2818_v15 }
 0x230   :  { %1829 = vmatpush.bf16.msra.mxu1 %v2618_v21  ;;  %v2719_v21 = vld [vmem:[#allocation24 + $0x108] sm:$0xf0] }
 0x231   :  { %1855 = vmatpush.bf16.msra.mxu3 %v2746_v38  ;;  %1868 = vmatpush.bf16.msrb.mxu0 %v2810_v41 }
 0x235   :  { %1856 = vmatpush.bf16.msra.mxu3 %v2738_v52 }
 0x27b   :  { %v3871_v37 = vpop.f32.mrf.mxu1 }
 0x27c   :  { %v3873_v58 = vpop.f32.mrf.mxu0 }
 0x281   :  { %v3875_v8 = vpop.f32.mrf.mxu2 }
 0x282   :  { %v3877_v14 = vpop.f32.mrf.mxu3 }
 0x283   :  { %v1060_v18 = vpop.f32.mrf.mxu1 }
 0x284   :  { %v1099_v23 = vpop.f32.mrf.mxu0  ;;  %v1317_v18 = vperm.slane %v3882_v24, 2 }
 0x285   :  { %v3065_v23 = vld [vmem:[#allocation24 + $0xb4] sm:$0xf] }
 0x289   :  { %v1073_v51 = vpop.f32.mrf.mxu2 }
 0x28a   :  { %v1086_v39 = vpop.f32.mrf.mxu3 }
 0x28b   :  { %v1270_v63 = vpop.f32.mrf.mxu1  ;;  %v2799_v39 = vld [vmem:[#allocation24 + $0x1a8] sm:$0xf0] }
 0x28c   :  { %v1271_v4 = vadd.f32 %v1270_v63, %v3871_v37  ;;  %v1309_v5 = vpop.f32.mrf.mxu0  ;;  %v1316_v37 = vperm.slane %v3882_v24, 1  ;;  %v2682_v24 = vor.u32 %v3065_v23, %v2679_v26  ;;  %v3091_v23 = vld [vmem:[#allocation24 + $0x184] sm:$0xf]  ;;  %v2783_v26 = vld [vmem:[#allocation24 + $0x188] sm:$0xf0] }
 0x28d   :  { %v1310_v7 = vadd.f32 %v1309_v5, %v3873_v58 }
 0x28e   :  { %v3888_v10 = vadd.f32 %v1315_v54, %v1271_v4  ;;  %1842 = vmatpush.bf16.msra.mxu2 %v2682_v24  ;;  %v2674_v54 = vor.u32 %v3063_v43, %v2671_v47  ;;  %v2663_v4 = vld [vmem:[#allocation24 + $0x98] sm:$0xf0]  ;;  %v2786_v24 = vor.u32 %v3091_v23, %v2783_v26 }
 0x28f   :  { %v3890_v13 = vadd.f32 %v1318_v55, %v1310_v7  ;;  %v3095_v55 = vld [vmem:[#allocation24 + $0x1a4] sm:$0xf]  ;;  %v2666_v53 = vor.u32 %v3061_v3, %v2663_v4  ;;  %v3077_v7 = vld [vmem:[#allocation24 + $0x114] sm:$0xf] }
 0x290   :  { %v1331_v45 = vmul.f32 0.044715, %v3888_v10  ;;  %v2802_v61 = vor.u32 %v3095_v55, %v2799_v39  ;;  %v2730_v15 = vor.u32 %v3077_v7, %v2727_v9  ;;  %v1327_v41 = vmul.f32 0.5, %v3888_v10  ;;  %v1433_v3 = vld [vmem:[%s3949_s17] sm:$0x3]  ;;  %v3118_v9 = vld [vmem:[#allocation25 + $0x58] sm:$0xff] }
 0x291   :  { %v1334_v17 = vmul.f32 0.044715, %v3890_v13  ;;  %v1283_v58 = vpop.f32.mrf.mxu2  ;;  %v3107_v4 = vld [vmem:[#allocation25] sm:$0xff] }
 0x292   :  { %v1335_v19 = vmul.f32 %v1331_v45, %v3888_v10  ;;  %v1284_v29 = vadd.f32 %v1283_v58, %v3875_v8  ;;  %v1296_v20 = vpop.f32.mrf.mxu3  ;;  %1843 = vmatpush.bf16.msra.mxu2 %v2674_v54  ;;  %1869 = vmatpush.bf16.msrb.mxu0 %v2802_v61  ;;  %v2791_v45 = vld [vmem:[#allocation24 + $0x198] sm:$0xf0]  ;;  %v3111_v61 = vld [vmem:[#allocation25 + $0x20] sm:$0xff] }
 0x293   :  { %v1338_v30 = vmul.f32 %v1334_v17, %v3890_v13  ;;  %v1297_v31 = vadd.f32 %v1296_v20, %v3877_v14  ;;  %v1272_v32 = vpop.f32.mrf.mxu1  ;;  %v2610_v14 = vor.u32 %v3047_v42, %v2607_v25  ;;  %v2794_v58 = vor.u32 %v3093_v11, %v2791_v45  ;;  %1857 = vmatpush.bf16.msra.mxu3 %v2730_v15  ;;  %v3117_v15 = vld [vmem:[#allocation25 + $0x50] sm:$0xff] }
 0x294   :  { %v1339_v35 = vmul.f32 %v1335_v19, %v3888_v10  ;;  %v3901_v8 = vadd.f32 %v1316_v37, %v1284_v29  ;;  %v1311_v36 = vpop.f32.mrf.mxu0  ;;  %v3043_v37 = vld [vmem:[#allocation24 + $0x4] sm:$0xf] }
 0x295   :  { %v1342_v44 = vmul.f32 %v1338_v30, %v3890_v13  ;;  %v3904_v46 = vadd.f32 %v1317_v18, %v1297_v31  ;;  %1830 = vmatpush.bf16.msra.mxu1 %v2610_v14  ;;  %v3059_v18 = vld [vmem:[#allocation24 + $0x84] sm:$0xf]  ;;  %v2594_v20 = vor.u32 %v3043_v37, %v2591_v16 }
 0x296   :  { %v1343_v50 = vadd.f32 %v1339_v35, %v3888_v10  ;;  %v1332_v51 = vmul.f32 0.044715, %v3901_v8  ;;  %v3075_v19 = vld [vmem:[#allocation24 + $0x104] sm:$0xf]  ;;  %1844 = vmatpush.bf16.msra.mxu2 %v2666_v53  ;;  %v2658_v30 = vor.u32 %v3059_v18, %v2655_v28  ;;  %1870 = vmatpush.bf16.msrb.mxu0 %v2794_v58  ;;  %v1328_v42 = vmul.f32 0.5, %v3901_v8  ;;  %v3116_v18 = vld [vmem:[#allocation25 + $0x48] sm:$0xff] }
 0x297   :  { %v1346_v56 = vadd.f32 %v1342_v44, %v3890_v13  ;;  %v1333_v57 = vmul.f32 0.044715, %v3904_v46  ;;  %v2722_v31 = vor.u32 %v3075_v19, %v2719_v21  ;;  %v1329_v43 = vmul.f32 0.5, %v3904_v46 }
 0x298   :  { %v1347_v59 = vmul.f32 0.7978846, %v1343_v50  ;;  %v1336_v60 = vmul.f32 %v1332_v51, %v3901_v8  ;;  %v1330_v44 = vmul.f32 0.5, %v3890_v13  ;;  %v3114_v13 = vld [vmem:[#allocation25 + $0x38] sm:$0xff]  ;;  %v1435_v53 = vperm.slane %v1433_v3, 0 }
 0x299   :  { %v1350_v63 = vmul.f32 0.7978846, %v1346_v56  ;;  %v1337_v0 = vmul.f32 %v1333_v57, %v3904_v46  ;;  %v1285_v1 = vpop.f32.mrf.mxu2  ;;  %1831 = vmatpush.bf16.msra.mxu1 %v2602_v2  ;;  %1858 = vmatpush.bf16.msra.mxu3 %v2722_v31  ;;  %v3120_v2 = vld [vmem:[#allocation25 + $0x68] sm:$0xff] }
 0x29a   :  { %v1340_v5 = vmul.f32 %v1336_v60, %v3901_v8  ;;  %v1298_v6 = vpop.f32.mrf.mxu3  ;;  %3169 = vtanh.f32 %v1347_v59  ;;  %1845 = vmatpush.bf16.msra.mxu2 %v2658_v30  ;;  %1871 = vmatpush.bf16.msrb.mxu0 %v2786_v24  ;;  %v3112_v60 = vld [vmem:[#allocation25 + $0x28] sm:$0xff] }
 0x29b   :  { %v1341_v12 = vmul.f32 %v1337_v0, %v3904_v46  ;;  %3171 = vtanh.f32 %v1350_v63  ;;  %v3109_v63 = vld [vmem:[#allocation25 + $0x10] sm:$0xff]  ;;  %v3108_v1 = vld [vmem:[#allocation25 + $0x8] sm:$0xff] }
 0x29c   :  { %v1344_v17 = vadd.f32 %v1340_v5, %v3901_v8  ;;  %v3121_v0 = vld [vmem:[#allocation25 + $0x70] sm:$0xff]  ;;  %v3119_v5 = vld [vmem:[#allocation25 + $0x60] sm:$0xff] }
 0x29d   :  { %v1345_v29 = vadd.f32 %v1341_v12, %v3904_v46  ;;  %1832 = vmatpush.bf16.msra.mxu1 %v2594_v20  ;;  %v3113_v46 = vld [vmem:[#allocation25 + $0x30] sm:$0xff]  ;;  %v3115_v20 = vld [vmem:[#allocation25 + $0x40] sm:$0xff] }
 0x29e   :  { %v1348_v27 = vmul.f32 0.7978846, %v1344_v17 }
 0x29f   :  { %v1349_v32 = vmul.f32 0.7978846, %v1345_v29 }
 0x2a0   :  { %3173 = vtanh.f32 %v1348_v27  ;;  %v3170_v33 = vpop.eup %3169  ;;  %v1436_v27 = vperm.slane %v1433_v3, 1 }
 0x2a1   :  { %3175 = vtanh.f32 %v1349_v32  ;;  %v3172_v34 = vpop.eup %3171  ;;  %v1355_v22 = vadd.f32 1.0, %v3170_v33 }
 0x2a2   :  { %v1358_v36 = vadd.f32 1.0, %v3172_v34 }
 0x2a3   :  { %v1359_v47 = vmul.f32 %v1355_v22, %v1327_v41 }
 0x2a4   :  { %v1362_v50 = vmul.f32 %v1358_v36, %v1330_v44 }
 0x2a6   :  { %v3174_v35 = vpop.eup %3173 }
 0x2a7   :  { %v3176_v38 = vpop.eup %3175  ;;  %v1356_v25 = vadd.f32 1.0, %v3174_v35 }
 0x2a8   :  { %v1357_v14 = vadd.f32 1.0, %v3176_v38 }
 0x2a9   :  { %v1360_v48 = vmul.f32 %v1356_v25, %v1328_v42 }
 0x2aa   :  { %v1361_v49 = vmul.f32 %v1357_v14, %v1329_v43 }
 0x2ab   :  { %v1363_v51 = vpack.c.bf16 %v1360_v48, %v1359_v47 }
 0x2ac   :  { %v1364_v54 = vpack.c.bf16 %v1362_v50, %v1361_v49 }
 0x2ad   :  { %v1441_v55 = vunpack.c.l.b16 %v1363_v51  ;;  %v1442_v56 = vunpack.c.h.b16 %v1363_v51 }
 0x2ae   :  { %v1443_v57 = vunpack.c.l.b16 %v1364_v54  ;;  %v1444_v52 = vunpack.c.h.b16 %v1364_v54 }
 0x2af   :  { %v1445_v39 = vpack.c.b16 %v1441_v55, %v1441_v55  ;;  %v1446_v10 = vpack.c.b16 %v1442_v56, %v1442_v56 }
 0x2b0   :  { %v1447_v59 = vpack.c.b16 %v1443_v57, %v1443_v57  ;;  %v1448_v8 = vpack.c.b16 %v1444_v52, %v1444_v52 }
 0x2b1   :  { %1781 = vmatmul.bf16.vlgmr.msrb.gmra.mxu1 %v1445_v39  ;;  %1794 = vmatmul.bf16.vlgmr.msrb.gmra.mxu2 %v1446_v10 }
 0x2b2   :  { %1807 = vmatmul.bf16.vlgmr.msrb.gmra.mxu3 %v1447_v59  ;;  %1820 = vmatmul.bf16.vlgmr.msra.gmra.mxu0 %v1448_v8 }
 0x2b3   :  { %2029 = vmatpush.bf16.msrb.mxu1 %v3114_v13  ;;  %2042 = vmatpush.bf16.msrb.mxu2 %v3122_v62  ;;  %v3129_v13 = vld [vmem:[#allocation27 + $0x30] sm:$0xff] }
 0x2b7   :  { %2030 = vmatpush.bf16.msrb.mxu1 %v3113_v46  ;;  %2043 = vmatpush.bf16.msrb.mxu2 %v3121_v0  ;;  %v3128_v46 = vld [vmem:[#allocation27 + $0x28] sm:$0xff] }
 0x2bb   :  { %2031 = vmatpush.bf16.msrb.mxu1 %v3112_v60  ;;  %2044 = vmatpush.bf16.msrb.mxu2 %v3120_v2  ;;  %v3127_v60 = vld [vmem:[#allocation27 + $0x20] sm:$0xff] }
 0x2bc   :  { %v3157_v2 = vld [vmem:[%s3951_s19] ss:$0 sm:$0xff]  ;;  %s3608_s19 = smov [#allocation28]  }
 0x2bd   :  { %s2152_s7 = sshll.u32 %s3608_s19, 4  ;;  %s2153_s7 = int_to_ptr.vmem [resolvable:$true] %s2152_s7 }
 0x2bf   :  { %2032 = vmatpush.bf16.msrb.mxu1 %v3111_v61  ;;  %2045 = vmatpush.bf16.msrb.mxu2 %v3119_v5  ;;  %v3126_v61 = vld [vmem:[#allocation27 + $0x18] sm:$0xff] }
 0x2c1   :  { %1833 = vmatmul.bf16.vlgmr.msra.gmra.mxu1 %v1445_v39  ;;  %1846 = vmatmul.bf16.vlgmr.msra.gmra.mxu2 %v1446_v10 }
 0x2c2   :  { %1859 = vmatmul.bf16.vlgmr.msra.gmra.mxu3 %v1447_v59  ;;  %1872 = vmatmul.bf16.vlgmr.msrb.gmra.mxu0 %v1448_v8  ;;  %v3130_v8 = vld [vmem:[#allocation27 + $0x38] sm:$0xff] }
 0x2c3   :  { %2033 = vmatpush.bf16.msrb.mxu1 %v3110_v40  ;;  %2046 = vmatpush.bf16.msrb.mxu2 %v3118_v9  ;;  %v3125_v40 = vld [vmem:[#allocation27 + $0x10] sm:$0xff] }
 0x2c4   :  { %2133 = vmatpush.bf16.msrb.mxu3 %v3130_v8 }
 0x2c7   :  { %2034 = vmatpush.bf16.msrb.mxu1 %v3109_v63  ;;  %2047 = vmatpush.bf16.msrb.mxu2 %v3117_v15  ;;  %v3124_v63 = vld [vmem:[#allocation27 + $0x8] sm:$0xff] }
 0x2c8   :  { %2134 = vmatpush.bf16.msrb.mxu3 %v3129_v13 }
 0x2cb   :  { %2035 = vmatpush.bf16.msrb.mxu1 %v3108_v1  ;;  %2048 = vmatpush.bf16.msrb.mxu2 %v3116_v18  ;;  %v3123_v1 = vld [vmem:[#allocation27] sm:$0xff] }
 0x2cc   :  { %2135 = vmatpush.bf16.msrb.mxu3 %v3128_v46 }
 0x2cf   :  { %2036 = vmatpush.bf16.msrb.mxu1 %v3107_v4  ;;  %2049 = vmatpush.bf16.msrb.mxu2 %v3115_v20 }
 0x2d0   :  { %2136 = vmatpush.bf16.msrb.mxu3 %v3127_v60 }
 0x2d4   :  { %2137 = vmatpush.bf16.msrb.mxu3 %v3126_v61 }
 0x2d8   :  { %2138 = vmatpush.bf16.msrb.mxu3 %v3125_v40 }
 0x2dc   :  { %2139 = vmatpush.bf16.msrb.mxu3 %v3124_v63 }
 0x2e0   :  { %2140 = vmatpush.bf16.msrb.mxu3 %v3123_v1 }
 0x32e   :  { %v1782_v6 = vpop.f32.mrf.mxu1 }
 0x32f   :  { %v1821_v7 = vpop.f32.mrf.mxu0  ;;  %v1783_v11 = vadd.f32 %v1782_v6, %v1435_v53 }
 0x334   :  { %v1795_v12 = vpop.f32.mrf.mxu2 }
 0x335   :  { %v1796_v45 = vadd.f32 %v1795_v12, %v1783_v11  ;;  %v1808_v37 = vpop.f32.mrf.mxu3 }
 0x336   :  { %v1784_v16 = vpop.f32.mrf.mxu1 }
 0x337   :  { %v1809_v17 = vadd.f32 %v1808_v37, %v1796_v45  ;;  %v1823_v58 = vpop.f32.mrf.mxu0 }
 0x338   :  { %v3158_v58 = vld [vmem:[%s3953_s21] ss:$0 sm:$0xff] }
 0x339   :  { %v1822_v28 = vadd.f32 %v1821_v7, %v1809_v17 }
 0x33b   :  { %v1879_v19 = vmul.f32 0.044715, %v1822_v28  ;;  %v1877_v14 = vmul.f32 0.5, %v1822_v28 }
 0x33c   :  { %v1797_v29 = vpop.f32.mrf.mxu2 }
 0x33d   :  { %v1881_v21 = vmul.f32 %v1879_v19, %v1822_v28  ;;  %v1810_v23 = vpop.f32.mrf.mxu3 }
 0x33e   :  { %v1834_v26 = vpop.f32.mrf.mxu1 }
 0x33f   :  { %v1873_v30 = vpop.f32.mrf.mxu0  ;;  %v1883_v31 = vmul.f32 %v1881_v21, %v1822_v28  ;;  %v1835_v24 = vadd.f32 %v1834_v26, %v1436_v27 }
 0x341   :  { %v1885_v32 = vadd.f32 %v1883_v31, %v1822_v28 }
 0x343   :  { %v1887_v33 = vmul.f32 0.7978846, %v1885_v32 }
 0x344   :  { %v1847_v34 = vpop.f32.mrf.mxu2 }
 0x345   :  { %v1848_v22 = vadd.f32 %v1847_v34, %v1835_v24  ;;  %v1860_v35 = vpop.f32.mrf.mxu3  ;;  %3177 = vtanh.f32 %v1887_v33 }
 0x346   :  { %v1836_v36 = vpop.f32.mrf.mxu1 }
 0x347   :  { %v1861_v38 = vadd.f32 %v1860_v35, %v1848_v22  ;;  %v1875_v41 = vpop.f32.mrf.mxu0 }
 0x349   :  { %v1874_v42 = vadd.f32 %v1873_v30, %v1861_v38 }
 0x34b   :  { %v3178_v25 = vpop.eup %3177  ;;  %v1880_v43 = vmul.f32 0.044715, %v1874_v42  ;;  %v1878_v52 = vmul.f32 0.5, %v1874_v42 }
 0x34c   :  { %v1849_v44 = vpop.f32.mrf.mxu2  ;;  %v1891_v47 = vadd.f32 1.0, %v3178_v25 }
 0x34d   :  { %v1882_v48 = vmul.f32 %v1880_v43, %v1874_v42  ;;  %v1862_v49 = vpop.f32.mrf.mxu3 }
 0x34e   :  { %v1893_v50 = vmul.f32 %v1891_v47, %v1877_v14 }
 0x34f   :  { %v1884_v51 = vmul.f32 %v1882_v48, %v1874_v42 }
 0x350   :  { %v1895_v54 = vpack.c.bf16 %v1893_v50, %v1893_v50 }
 0x351   :  { %v1886_v55 = vadd.f32 %v1884_v51, %v1874_v42 }
 0x352   :  { %2037 = vmatmul.bf16.vlgmr.msrb.gmra.mxu1 %v1895_v54 }
 0x353   :  { %v1888_v56 = vmul.f32 0.7978846, %v1886_v55 }
 0x355   :  { %3179 = vtanh.f32 %v1888_v56 }
 0x35b   :  { %v3180_v57 = vpop.eup %3179 }
 0x35c   :  { %v1892_v39 = vadd.f32 1.0, %v3180_v57 }
 0x35e   :  { %v1894_v10 = vmul.f32 %v1892_v39, %v1878_v52 }
 0x360   :  { %v1896_v59 = vpack.c.bf16 %v1894_v10, %v1894_v10 }
 0x362   :  { %2050 = vmatmul.bf16.vlgmr.msrb.gmra.mxu2 %v1896_v59 }
 0x3cf   :  { %v2038_v62 = vpop.f32.mrf.mxu1 }
 0x3d0   :  { %v2039_v3 = vadd.f32 %v3157_v2, %v2038_v62 }
 0x3d7   :  { %v2040_v0 = vpop.f32.mrf.mxu1 }
 0x3e5   :  { %v2051_v4 = vpop.f32.mrf.mxu2 }
 0x3e6   :  { %v2052_v5 = vadd.f32 %v2051_v4, %v2039_v3 }
 0x3e8   :  { %v2056_v6 = vmul.f32 0.044715, %v2052_v5  ;;  %v2055_v45 = vmul.f32 0.5, %v2052_v5 }
 0x3ea   :  { %v2057_v53 = vmul.f32 %v2056_v6, %v2052_v5 }
 0x3ec   :  { %v2058_v7 = vmul.f32 %v2057_v53, %v2052_v5 }
 0x3ed   :  { %v2053_v9 = vpop.f32.mrf.mxu2 }
 0x3ee   :  { %v2059_v11 = vadd.f32 %v2058_v7, %v2052_v5 }
 0x3f0   :  { %v2060_v12 = vmul.f32 0.7978846, %v2059_v11 }
 0x3f2   :  { %3181 = vtanh.f32 %v2060_v12 }
 0x3f8   :  { %v3182_v15 = vpop.eup %3181 }
 0x3f9   :  { %v2062_v37 = vadd.f32 1.0, %v3182_v15 }
 0x3fb   :  { %v2063_v16 = vmul.f32 %v2062_v37, %v2055_v45 }
 0x3fd   :  { %v2064_v17 = vpack.c.bf16 %v2063_v16, %v2063_v16 }
 0x3ff   :  { %2141 = vmatmul.bf16.vlgmr.msrb.gmra.mxu3 %v2064_v17 }
 0x482   :  { %v2142_v18 = vpop.f32.mrf.mxu3 }
 0x483   :  { %v2143_v28 = vadd.f32 %v3158_v58, %v2142_v18 }
 0x485   :  { %2146 = vst [vmem:[#allocation28] sm:$0xff] %v2143_v28 }
 0x486   :  { %2157 = dma.vmem_to_hbm [thread:$0]  %s2153_s7, 128, %s2155_s24, [#allocation6]  }
 0x48a   :  { %v2144_v19 = vpop.f32.mrf.mxu3 }
 0x48b   :  { %3583 = dma.done.wait [#allocation6], 128  }
 0x48c   :  { %3584 = vsyncadd [#allocation6], 4294967168 }
 0x48d   :  { %2162 = vsyncpa [#allocation5], 1 }
 0x48e   :  { %2163 = vsyncpa [#allocation8], 1 }
 0x48f   :  { %2164 = vsyncpa [#allocation11], 1 }
 0x490   :  { %2165 = vsyncpa [#allocation14], 1 }
 0x491   :  { %2166 = vsyncpa [#allocation17], 1 }
 0x492   :  { %2167 = vsyncpa [#allocation20], 1 }
 0x493   :  { %2168 = vsyncpa [#allocation23], 1 }
 0x494   :  { %2169 = vsyncpa [#allocation26], 1 }
 0x495   :  { %2170 = vsyncpa [#allocation6], 1 }

</bundles_post_ra>
